<compile_context>
chip_gen: v5e
topology: v5e:2x2
jax: 0.10.0
libtpu: 0.0.40
codegen_flags: <defaults>
</compile_context>

<pallas_src>
import math

import jax
import jax.numpy as jnp
from jax import lax
from jax.experimental import pallas as pl
from jax.experimental.pallas import tpu as pltpu

NEG_SLOPE = 0.01          # F.leaky_relu default negative_slope
EPS_DIFFPOOL = 1e-15      # PyG dense_diff_pool EPS


def _leaky(x):
    return jnp.where(x >= 0, x, NEG_SLOPE * x)


def _sum_all(x):
    # full reduction of a 2-D or 3-D array to a (1, 1) f32 (no rank-0 values)
    s = jnp.sum(x, axis=-1, keepdims=True)
    s = jnp.sum(s, axis=-2, keepdims=True)
    if s.ndim == 3:
        tot = s[0]
        for b in range(1, s.shape[0]):
            tot = tot + s[b]
        return tot
    return s


def _finish_sage(out, bn_scale, bn_shift):
    # F.normalize(p=2, dim=-1), folded BatchNorm, leaky_relu.
    # TODO(synk): BatchNorm is eval-mode (running stats folded into scale/shift),
    #             not training-mode batch statistics.
    inv_nrm = lax.rsqrt(jnp.maximum(jnp.sum(out * out, axis=-1, keepdims=True), 1e-24))
    out = out * inv_nrm
    return _leaky(out * bn_scale + bn_shift)


def _sage_vec(agg, x, w_rel, b_rel, w_root, bn_scale, bn_shift):
    # DenseSAGEConv with in_channels == 1: lin_rel/lin_root are (1, C) rows, so the
    # "matmuls" are pure VPU broadcast-multiplies.
    # TODO(synk): self-loops (`add_loop`) are not added, matching modern PyG
    #             DenseSAGEConv whose forward(x, adj) the GNN wrapper calls.
    out = agg * w_rel + x * w_root + b_rel                      # (B, M, C)
    return _finish_sage(out, bn_scale, bn_shift)


def _sage_mat(agg, x, w_rel, b_rel, w_root, bn_scale, bn_shift):
    # DenseSAGEConv with matrix weights (Fin, C); weights broadcast to the batch so
    # the einsums are the standard batched MXU pattern.
    B = agg.shape[0]
    wrb = jnp.broadcast_to(w_rel[None], (B,) + w_rel.shape)
    wtb = jnp.broadcast_to(w_root[None], (B,) + w_root.shape)
    out = (jnp.einsum('bmf,bfc->bmc', agg, wrb, preferred_element_type=jnp.float32)
           + jnp.einsum('bmf,bfc->bmc', x, wtb, preferred_element_type=jnp.float32)
           + b_rel)
    return _finish_sage(out, bn_scale, bn_shift)


def _diff_pool(x, adj, logits):
    # dense_diff_pool (batched): softmax(s), s^T x, s^T adj s, direct link loss.
    m = jnp.max(logits, axis=-1, keepdims=True)
    e = jnp.exp(logits - m)
    s = e / jnp.sum(e, axis=-1, keepdims=True)                                  # exact divide
    sT = jnp.swapaxes(s, 1, 2)                                                  # (B, C, M)
    xp = jnp.einsum('bcm,bmf->bcf', sT, x, preferred_element_type=jnp.float32)  # (B, C, F)
    sa = jnp.einsum('bcm,bmn->bcn', sT, adj, preferred_element_type=jnp.float32)  # (B, C, M)
    oadj = jnp.einsum('bcm,bmd->bcd', sa, s, preferred_element_type=jnp.float32)  # (B, C, C)
    sst = jnp.einsum('bnc,bmc->bnm', s, s, preferred_element_type=jnp.float32)    # (B, M, M)
    diff = adj - sst
    link_sq = _sum_all(diff * diff)                                             # (1, 1)
    ent = _sum_all(-s * jnp.log(s + EPS_DIFFPOOL))                              # (1, 1)
    return xp, oadj, link_sq, ent


# ---------------------------------------------------------------------------
# Parameter packing: one (R, 128) f32 slab, 8-row aligned blocks, static index.
# ---------------------------------------------------------------------------
def _pack_params(flat):
    blocks, index, off = [], {}, 0
    for name, arr in flat.items():
        arr = jnp.asarray(arr, jnp.float32)
        r, c = arr.shape
        rp = -(-r // 8) * 8
        blk = jnp.zeros((rp, 128), jnp.float32).at[:r, :c].set(arr)
        blocks.append(blk)
        index[name] = (off, r, c)
        off += rp
    return jnp.concatenate(blocks, axis=0), index


# ---------------------------------------------------------------------------
# Single fused pallas_call for the whole forward
# ---------------------------------------------------------------------------
def net_diff_pool1_forward(x_input, adj, params):
    B, N, _ = x_input.shape
    slab, index = _pack_params(params)
    x_row = jnp.swapaxes(x_input, 1, 2)                    # (B, 1, N) -- host side, free

    def kernel(xc_ref, xr_ref, adj_ref, p_ref, out_ref):
        def P(name):
            off, r, c = index[name]
            return p_ref[off:off + r, 0:c]                 # static slice of the slab

        def sage_v(agg, x, pre):
            return _sage_vec(agg, x, P(pre + '.w_rel'), P(pre + '.b_rel'),
                             P(pre + '.w_root'), P(pre + '.bn_scale'), P(pre + '.bn_shift'))

        def sage_m(agg, x, pre):
            return _sage_mat(agg, x, P(pre + '.w_rel'), P(pre + '.b_rel'),
                             P(pre + '.w_root'), P(pre + '.bn_scale'), P(pre + '.bn_shift'))

        xc = xc_ref[...]                                   # (B, N, 1)
        xr = xr_ref[...]                                   # (B, 1, N)
        adj0 = adj_ref[...]                                # (B, N, N)

        deg0 = jnp.sum(adj0, axis=-1, keepdims=True)       # (B, N, 1)
        inv_deg0 = 1.0 / jnp.maximum(deg0, 1.0)

        # ---- gnn0_embed: neighbour mean on the VPU (row-form x), in_channels=1 SAGE
        agg0 = jnp.sum(adj0 * xr, axis=-1, keepdims=True) * inv_deg0             # (B, N, 1)
        h = sage_v(agg0, xc, 'gnn0')                                             # (B, N, F)

        # ---- lin0_1times1 (F -> 1), kept as a column
        w0 = P('lin0.w')                                                          # (1, F)
        b0 = P('lin0.b')                                                          # (1, 1)
        x1 = jnp.sum(h * w0, axis=-1, keepdims=True) + b0                         # (B, N, 1)

        # ---- shared neighbour mean for gnn1_pool / gnn1_embed without a 1-lane matmul:
        #      adj @ (h w0 + b0) == (adj @ h) w0 + b0 * deg   (exact refactoring)
        aggH = jnp.einsum('bij,bjf->bif', adj0, h, preferred_element_type=jnp.float32)
        agg1 = (jnp.sum(aggH * w0, axis=-1, keepdims=True) + b0 * deg0) * inv_deg0  # (B, N, 1)

        s1 = sage_v(agg1, x1, 'gnn1_pool')                                        # (B, N, C1)
        e1 = sage_v(agg1, x1, 'gnn1_embed')                                       # (B, N, F)
        xp1, adj1, link_sq1, ent1 = _diff_pool(e1, adj0, s1)                      # (B,C1,F),(B,C1,C1)

        # ---- stage 2 (shared aggregation again)
        deg1 = jnp.sum(adj1, axis=-1, keepdims=True)
        agg2 = (jnp.einsum('bij,bjf->bif', adj1, xp1, preferred_element_type=jnp.float32)
                / jnp.maximum(deg1, 1.0))                                         # (B, C1, F)
        s2 = sage_m(agg2, xp1, 'gnn2_pool')                                       # (B, C1, C2)
        e2 = sage_m(agg2, xp1, 'gnn2_embed')                                      # (B, C1, F)
        xp2, adj2, link_sq2, ent2 = _diff_pool(e2, adj1, s2)                      # (B,C2,F),(B,C2,C2)

        # ---- stage 3
        deg2 = jnp.sum(adj2, axis=-1, keepdims=True)
        agg3 = (jnp.einsum('bij,bjf->bif', adj2, xp2, preferred_element_type=jnp.float32)
                / jnp.maximum(deg2, 1.0))
        x3 = sage_m(agg3, xp2, 'gnn3_embed')                                      # (B, C2, F)

        C1 = s1.shape[-1]
        C2 = x3.shape[1]
        Fh = x3.shape[-1]

        # ---- MLP head, carried on lanes: lin1times1 -> leaky -> lin1 -> BN -> leaky -> lin2
        w1x1 = P('lin1x1.w')                                                      # (1, F)
        w1x1_b = jnp.broadcast_to(w1x1[None], (B, 1, Fh))
        hrow = _leaky(jnp.einsum('bqf,bcf->bqc', w1x1_b, x3,
                                 preferred_element_type=jnp.float32)
                      + P('lin1x1.b'))                                            # (B, 1, C2)
        w_lin1 = P('lin1.w')                                                      # (C2, C2) (in,out)
        w_lin1_b = jnp.broadcast_to(w_lin1[None], (B, C2, C2))
        z = (jnp.einsum('bqc,bcd->bqd', hrow, w_lin1_b,
                        preferred_element_type=jnp.float32) + P('lin1.b'))        # (B, 1, C2)
        z = _leaky(z * P('bn1.scale') + P('bn1.shift'))
        o = jnp.sum(z * P('lin2.w'), axis=-1, keepdims=True) + P('lin2.b')        # (B, 1, 1)

        # ---- losses: torch.norm(adj - s s^T) / adj.numel() and (-s log s).sum(-1).mean()
        link = (jnp.sqrt(link_sq1) * (1.0 / (B * N * N))
                + jnp.sqrt(link_sq2) * (1.0 / (B * C1 * C1)))                     # (1, 1)
        ent = ent1 * (1.0 / (B * N)) + ent2 * (1.0 / (B * C1))                    # (1, 1)

        # ---- one lane-dense output slab: lanes [0..B-1]=per-graph out, B=link, B+1=ent
        ci = lax.broadcasted_iota(jnp.int32, (1, 128), 1)
        row = jnp.where(ci == 0, o[0], 0.0)
        for b in range(1, B):
            row = row + jnp.where(ci == b, o[b], 0.0)
        row = row + jnp.where(ci == B, link, 0.0) + jnp.where(ci == B + 1, ent, 0.0)
        out_ref[...] = jnp.broadcast_to(row, (8, 128))

    vmem = pl.BlockSpec(memory_space=pltpu.MemorySpace.VMEM)
    res = pl.pallas_call(
        kernel,
        out_shape=jax.ShapeDtypeStruct((8, 128), jnp.float32),
        in_specs=[vmem, vmem, vmem, vmem],
        out_specs=vmem,
    )(x_input, x_row, adj, slab)

    out = res[0, :B].reshape(B, 1)
    link = res[0, B]
    ent = res[0, B + 1]
    return out, link, ent


# ---------------------------------------------------------------------------
# Parameters (deterministic, PyTorch-default-style init), flat dict of 2-D arrays
# ---------------------------------------------------------------------------
def _linear_init(key, fan_in, fan_out):
    kw, kb = jax.random.split(key)
    bound = 1.0 / math.sqrt(fan_in)
    w = jax.random.uniform(kw, (fan_in, fan_out), jnp.float32, -bound, bound)
    b = jax.random.uniform(kb, (1, fan_out), jnp.float32, -bound, bound)
    return w, b


def _bn_fold(num_feat, eps=1e-5):
    gamma = jnp.ones((1, num_feat), jnp.float32)
    beta = jnp.zeros((1, num_feat), jnp.float32)
    rmean = jnp.zeros((1, num_feat), jnp.float32)
    rvar = jnp.ones((1, num_feat), jnp.float32)
    scale = gamma / jnp.sqrt(rvar + eps)
    return scale, beta - rmean * scale


def _sage_params(flat, prefix, key, fin, fout):
    k1, k2 = jax.random.split(key)
    w_rel, b_rel = _linear_init(k1, fin, fout)        # lin_rel (with bias)
    w_root, _ = _linear_init(k2, fin, fout)           # lin_root (no bias)
    sc, sh = _bn_fold(fout)
    flat[prefix + '.w_rel'] = w_rel
    flat[prefix + '.b_rel'] = b_rel
    flat[prefix + '.w_root'] = w_root
    flat[prefix + '.bn_scale'] = sc
    flat[prefix + '.bn_shift'] = sh


def make_params(key, F, C1, C2):
    ks = jax.random.split(key, 10)
    flat = {}
    _sage_params(flat, 'gnn0', ks[0], 1, F)
    w, b = _linear_init(ks[1], F, 1)
    flat['lin0.w'], flat['lin0.b'] = w.T, b            # (1, F), (1, 1)
    _sage_params(flat, 'gnn1_pool', ks[2], 1, C1)
    _sage_params(flat, 'gnn1_embed', ks[3], 1, F)
    _sage_params(flat, 'gnn2_pool', ks[4], F, C2)
    _sage_params(flat, 'gnn2_embed', ks[5], F, F)
    _sage_params(flat, 'gnn3_embed', ks[6], F, F)
    w, b = _linear_init(ks[7], F, 1)
    flat['lin1x1.w'], flat['lin1x1.b'] = w.T, b        # (1, F), (1, 1)
    w, b = _linear_init(ks[8], C2, C2)
    flat['lin1.w'], flat['lin1.b'] = w, b              # (C2, C2) (in,out), (1, C2)
    sc, sh = _bn_fold(C2)
    flat['bn1.scale'], flat['bn1.shift'] = sc, sh      # (1, C2)
    w, b = _linear_init(ks[9], C2, 1)
    flat['lin2.w'], flat['lin2.b'] = w.T, b            # (1, C2), (1, 1)
    return flat


if __name__ == "__main__":
    B, N = 2, 16              # batch, nodes
    F = 32                    # hidden_channels == out_channels
    C1 = 16                   # out_clusters
    SHRINK = 0.25
    C2 = int(C1 * SHRINK)     # = 4  (>= 2, as the module asserts)

    key = jax.random.PRNGKey(0)
    kx, kadj = jax.random.split(key)
    x_input = jax.random.normal(kx, (B, N, 1), jnp.float32)
    a = jax.random.uniform(kadj, (B, N, N), jnp.float32)
    adj = ((a + jnp.swapaxes(a, 1, 2)) * 0.5 > 0.5).astype(jnp.float32)  # symmetric 0/1

    params = make_params(jax.random.PRNGKey(42), F, C1, C2)

    fwd = jax.jit(lambda xi, aj: net_diff_pool1_forward(xi, aj, params))
    out, link_loss, ent_loss = fwd(x_input, adj)
    jax.block_until_ready((out, link_loss, ent_loss))
    assert out.shape == (B, 1)
    assert bool(jnp.all(jnp.isfinite(out)))
    assert bool(jnp.isfinite(link_loss)) and bool(jnp.isfinite(ent_loss))
    print("KERNEL_OK")
</pallas_src>

<mosaic_0001>
module attributes {stable_mosaic.version = 11 : i64} {
  func.func @kernel(%arg0: memref<2x16x1xf32, #tpu.memory_space<vmem>>, %arg1: memref<2x1x16xf32, #tpu.memory_space<vmem>>, %arg2: memref<2x16x16xf32, #tpu.memory_space<vmem>>, %arg3: memref<464x128xf32, #tpu.memory_space<vmem>>, %arg4: memref<8x128xf32, #tpu.memory_space<vmem>>) attributes {dimension_semantics = [], scalar_prefetch = 0 : i64, scratch_operands = 0 : i64, tpu.core_type = #tpu.core_type<tc>} {
    %c0 = arith.constant 0 : index
    %c0_0 = arith.constant 0 : index
    %c0_1 = arith.constant 0 : index
    %0 = vector.load %arg0[%c0, %c0_0, %c0_1] : memref<2x16x1xf32, #tpu.memory_space<vmem>>, vector<2x16x1xf32>
    %c0_2 = arith.constant 0 : index
    %c0_3 = arith.constant 0 : index
    %c0_4 = arith.constant 0 : index
    %1 = vector.load %arg1[%c0_2, %c0_3, %c0_4] : memref<2x1x16xf32, #tpu.memory_space<vmem>>, vector<2x1x16xf32>
    %c0_5 = arith.constant 0 : index
    %c0_6 = arith.constant 0 : index
    %c0_7 = arith.constant 0 : index
    %2 = vector.load %arg2[%c0_5, %c0_6, %c0_7] : memref<2x16x16xf32, #tpu.memory_space<vmem>>, vector<2x16x16xf32>
    %cst = arith.constant dense<0.000000e+00> : vector<2x16xf32>
    %3 = vector.multi_reduction <add>, %2, %cst [2] : vector<2x16x16xf32> to vector<2x16xf32>
    %4 = vector.shape_cast %3 : vector<2x16xf32> to vector<2x16x1xf32>
    %cst_8 = arith.constant 1.000000e+00 : f32
    %5 = vector.broadcast %cst_8 : f32 to vector<2x16x1xf32>
    %6 = arith.maximumf %4, %5 : vector<2x16x1xf32>
    %cst_9 = arith.constant 1.000000e+00 : f32
    %7 = vector.broadcast %cst_9 : f32 to vector<2x16x1xf32>
    %8 = arith.divf %7, %6 : vector<2x16x1xf32>
    %9 = vector.broadcast %1 : vector<2x1x16xf32> to vector<2x16x16xf32>
    %10 = arith.mulf %2, %9 : vector<2x16x16xf32>
    %cst_10 = arith.constant dense<0.000000e+00> : vector<2x16xf32>
    %11 = vector.multi_reduction <add>, %10, %cst_10 [2] : vector<2x16x16xf32> to vector<2x16xf32>
    %12 = vector.shape_cast %11 : vector<2x16xf32> to vector<2x16x1xf32>
    %13 = arith.mulf %12, %8 : vector<2x16x1xf32>
    %c0_11 = arith.constant 0 : index
    %c0_12 = arith.constant 0 : index
    %14 = vector.load %arg3[%c0_11, %c0_12] : memref<464x128xf32, #tpu.memory_space<vmem>>, vector<1x32xf32>
    %c8 = arith.constant 8 : index
    %c0_13 = arith.constant 0 : index
    %15 = vector.load %arg3[%c8, %c0_13] : memref<464x128xf32, #tpu.memory_space<vmem>>, vector<1x32xf32>
    %c16 = arith.constant 16 : index
    %c0_14 = arith.constant 0 : index
    %16 = vector.load %arg3[%c16, %c0_14] : memref<464x128xf32, #tpu.memory_space<vmem>>, vector<1x32xf32>
    %c24 = arith.constant 24 : index
    %c0_15 = arith.constant 0 : index
    %17 = vector.load %arg3[%c24, %c0_15] : memref<464x128xf32, #tpu.memory_space<vmem>>, vector<1x32xf32>
    %c32 = arith.constant 32 : index
    %c0_16 = arith.constant 0 : index
    %18 = vector.load %arg3[%c32, %c0_16] : memref<464x128xf32, #tpu.memory_space<vmem>>, vector<1x32xf32>
    %19 = vector.shape_cast %14 : vector<1x32xf32> to vector<1x1x32xf32>
    %20 = vector.broadcast %13 : vector<2x16x1xf32> to vector<2x16x32xf32>
    %21 = vector.broadcast %19 : vector<1x1x32xf32> to vector<2x16x32xf32>
    %22 = arith.mulf %20, %21 : vector<2x16x32xf32>
    %23 = vector.shape_cast %16 : vector<1x32xf32> to vector<1x1x32xf32>
    %24 = vector.broadcast %0 : vector<2x16x1xf32> to vector<2x16x32xf32>
    %25 = vector.broadcast %23 : vector<1x1x32xf32> to vector<2x16x32xf32>
    %26 = arith.mulf %24, %25 : vector<2x16x32xf32>
    %27 = arith.addf %22, %26 : vector<2x16x32xf32>
    %28 = vector.shape_cast %15 : vector<1x32xf32> to vector<1x1x32xf32>
    %29 = vector.broadcast %28 : vector<1x1x32xf32> to vector<2x16x32xf32>
    %30 = arith.addf %27, %29 : vector<2x16x32xf32>
    %31 = arith.mulf %30, %30 : vector<2x16x32xf32>
    %cst_17 = arith.constant dense<0.000000e+00> : vector<2x16xf32>
    %32 = vector.multi_reduction <add>, %31, %cst_17 [2] : vector<2x16x32xf32> to vector<2x16xf32>
    %33 = vector.shape_cast %32 : vector<2x16xf32> to vector<2x16x1xf32>
    %cst_18 = arith.constant 1.000000e-24 : f32
    %34 = vector.broadcast %cst_18 : f32 to vector<2x16x1xf32>
    %35 = arith.maximumf %33, %34 : vector<2x16x1xf32>
    %36 = math.rsqrt %35 : vector<2x16x1xf32>
    %37 = vector.broadcast %36 : vector<2x16x1xf32> to vector<2x16x32xf32>
    %38 = arith.mulf %30, %37 : vector<2x16x32xf32>
    %39 = vector.shape_cast %17 : vector<1x32xf32> to vector<1x1x32xf32>
    %40 = vector.broadcast %39 : vector<1x1x32xf32> to vector<2x16x32xf32>
    %41 = arith.mulf %38, %40 : vector<2x16x32xf32>
    %42 = vector.shape_cast %18 : vector<1x32xf32> to vector<1x1x32xf32>
    %43 = vector.broadcast %42 : vector<1x1x32xf32> to vector<2x16x32xf32>
    %44 = arith.addf %41, %43 : vector<2x16x32xf32>
    %cst_19 = arith.constant 0.000000e+00 : f32
    %45 = vector.broadcast %cst_19 : f32 to vector<2x16x32xf32>
    %46 = arith.cmpf oge, %44, %45 : vector<2x16x32xf32>
    %cst_20 = arith.constant 0.00999999977 : f32
    %47 = vector.broadcast %cst_20 : f32 to vector<2x16x32xf32>
    %48 = arith.mulf %47, %44 : vector<2x16x32xf32>
    %49 = arith.select %46, %44, %48 : vector<2x16x32xi1>, vector<2x16x32xf32>
    %c40 = arith.constant 40 : index
    %c0_21 = arith.constant 0 : index
    %50 = vector.load %arg3[%c40, %c0_21] : memref<464x128xf32, #tpu.memory_space<vmem>>, vector<1x32xf32>
    %c48 = arith.constant 48 : index
    %c0_22 = arith.constant 0 : index
    %51 = vector.load %arg3[%c48, %c0_22] : memref<464x128xf32, #tpu.memory_space<vmem>>, vector<1x1xf32>
    %52 = vector.shape_cast %50 : vector<1x32xf32> to vector<1x1x32xf32>
    %53 = vector.broadcast %52 : vector<1x1x32xf32> to vector<2x16x32xf32>
    %54 = arith.mulf %49, %53 : vector<2x16x32xf32>
    %cst_23 = arith.constant dense<0.000000e+00> : vector<2x16xf32>
    %55 = vector.multi_reduction <add>, %54, %cst_23 [2] : vector<2x16x32xf32> to vector<2x16xf32>
    %56 = vector.shape_cast %55 : vector<2x16xf32> to vector<2x16x1xf32>
    %57 = vector.shape_cast %51 : vector<1x1xf32> to vector<1x1x1xf32>
    %58 = vector.broadcast %57 : vector<1x1x1xf32> to vector<2x16x1xf32>
    %59 = arith.addf %56, %58 : vector<2x16x1xf32>
    "tpu.trace_start"() <{level = 10 : i32, message = "bij,bjf->bif"}> : () -> ()
    %cst_24 = arith.constant dense<0.000000e+00> : vector<2x16x32xf32>
    %60 = tpu.matmul %2, %49, %cst_24 {dimension_numbers = #tpu.dot_dimension_numbers<[2], [1], [1], [2], [0, 0, 0, 1, 1, 2], [0], [0]>} : vector<2x16x16xf32>, vector<2x16x32xf32>, vector<2x16x32xf32> -> vector<2x16x32xf32>
    "tpu.trace_stop"() : () -> ()
    %61 = vector.shape_cast %50 : vector<1x32xf32> to vector<1x1x32xf32>
    %62 = vector.broadcast %61 : vector<1x1x32xf32> to vector<2x16x32xf32>
    %63 = arith.mulf %60, %62 : vector<2x16x32xf32>
    %cst_25 = arith.constant dense<0.000000e+00> : vector<2x16xf32>
    %64 = vector.multi_reduction <add>, %63, %cst_25 [2] : vector<2x16x32xf32> to vector<2x16xf32>
    %65 = vector.shape_cast %64 : vector<2x16xf32> to vector<2x16x1xf32>
    %66 = vector.shape_cast %51 : vector<1x1xf32> to vector<1x1x1xf32>
    %67 = vector.broadcast %66 : vector<1x1x1xf32> to vector<2x16x1xf32>
    %68 = arith.mulf %67, %4 : vector<2x16x1xf32>
    %69 = arith.addf %65, %68 : vector<2x16x1xf32>
    %70 = arith.mulf %69, %8 : vector<2x16x1xf32>
    %c56 = arith.constant 56 : index
    %c0_26 = arith.constant 0 : index
    %71 = vector.load %arg3[%c56, %c0_26] : memref<464x128xf32, #tpu.memory_space<vmem>>, vector<1x16xf32>
    %c64 = arith.constant 64 : index
    %c0_27 = arith.constant 0 : index
    %72 = vector.load %arg3[%c64, %c0_27] : memref<464x128xf32, #tpu.memory_space<vmem>>, vector<1x16xf32>
    %c72 = arith.constant 72 : index
    %c0_28 = arith.constant 0 : index
    %73 = vector.load %arg3[%c72, %c0_28] : memref<464x128xf32, #tpu.memory_space<vmem>>, vector<1x16xf32>
    %c80 = arith.constant 80 : index
    %c0_29 = arith.constant 0 : index
    %74 = vector.load %arg3[%c80, %c0_29] : memref<464x128xf32, #tpu.memory_space<vmem>>, vector<1x16xf32>
    %c88 = arith.constant 88 : index
    %c0_30 = arith.constant 0 : index
    %75 = vector.load %arg3[%c88, %c0_30] : memref<464x128xf32, #tpu.memory_space<vmem>>, vector<1x16xf32>
    %76 = vector.shape_cast %71 : vector<1x16xf32> to vector<1x1x16xf32>
    %77 = vector.broadcast %70 : vector<2x16x1xf32> to vector<2x16x16xf32>
    %78 = vector.broadcast %76 : vector<1x1x16xf32> to vector<2x16x16xf32>
    %79 = arith.mulf %77, %78 : vector<2x16x16xf32>
    %80 = vector.shape_cast %73 : vector<1x16xf32> to vector<1x1x16xf32>
    %81 = vector.broadcast %59 : vector<2x16x1xf32> to vector<2x16x16xf32>
    %82 = vector.broadcast %80 : vector<1x1x16xf32> to vector<2x16x16xf32>
    %83 = arith.mulf %81, %82 : vector<2x16x16xf32>
    %84 = arith.addf %79, %83 : vector<2x16x16xf32>
    %85 = vector.shape_cast %72 : vector<1x16xf32> to vector<1x1x16xf32>
    %86 = vector.broadcast %85 : vector<1x1x16xf32> to vector<2x16x16xf32>
    %87 = arith.addf %84, %86 : vector<2x16x16xf32>
    %88 = arith.mulf %87, %87 : vector<2x16x16xf32>
    %cst_31 = arith.constant dense<0.000000e+00> : vector<2x16xf32>
    %89 = vector.multi_reduction <add>, %88, %cst_31 [2] : vector<2x16x16xf32> to vector<2x16xf32>
    %90 = vector.shape_cast %89 : vector<2x16xf32> to vector<2x16x1xf32>
    %cst_32 = arith.constant 1.000000e-24 : f32
    %91 = vector.broadcast %cst_32 : f32 to vector<2x16x1xf32>
    %92 = arith.maximumf %90, %91 : vector<2x16x1xf32>
    %93 = math.rsqrt %92 : vector<2x16x1xf32>
    %94 = vector.broadcast %93 : vector<2x16x1xf32> to vector<2x16x16xf32>
    %95 = arith.mulf %87, %94 : vector<2x16x16xf32>
    %96 = vector.shape_cast %74 : vector<1x16xf32> to vector<1x1x16xf32>
    %97 = vector.broadcast %96 : vector<1x1x16xf32> to vector<2x16x16xf32>
    %98 = arith.mulf %95, %97 : vector<2x16x16xf32>
    %99 = vector.shape_cast %75 : vector<1x16xf32> to vector<1x1x16xf32>
    %100 = vector.broadcast %99 : vector<1x1x16xf32> to vector<2x16x16xf32>
    %101 = arith.addf %98, %100 : vector<2x16x16xf32>
    %cst_33 = arith.constant 0.000000e+00 : f32
    %102 = vector.broadcast %cst_33 : f32 to vector<2x16x16xf32>
    %103 = arith.cmpf oge, %101, %102 : vector<2x16x16xf32>
    %cst_34 = arith.constant 0.00999999977 : f32
    %104 = vector.broadcast %cst_34 : f32 to vector<2x16x16xf32>
    %105 = arith.mulf %104, %101 : vector<2x16x16xf32>
    %106 = arith.select %103, %101, %105 : vector<2x16x16xi1>, vector<2x16x16xf32>
    %c96 = arith.constant 96 : index
    %c0_35 = arith.constant 0 : index
    %107 = vector.load %arg3[%c96, %c0_35] : memref<464x128xf32, #tpu.memory_space<vmem>>, vector<1x32xf32>
    %c104 = arith.constant 104 : index
    %c0_36 = arith.constant 0 : index
    %108 = vector.load %arg3[%c104, %c0_36] : memref<464x128xf32, #tpu.memory_space<vmem>>, vector<1x32xf32>
    %c112 = arith.constant 112 : index
    %c0_37 = arith.constant 0 : index
    %109 = vector.load %arg3[%c112, %c0_37] : memref<464x128xf32, #tpu.memory_space<vmem>>, vector<1x32xf32>
    %c120 = arith.constant 120 : index
    %c0_38 = arith.constant 0 : index
    %110 = vector.load %arg3[%c120, %c0_38] : memref<464x128xf32, #tpu.memory_space<vmem>>, vector<1x32xf32>
    %c128 = arith.constant 128 : index
    %c0_39 = arith.constant 0 : index
    %111 = vector.load %arg3[%c128, %c0_39] : memref<464x128xf32, #tpu.memory_space<vmem>>, vector<1x32xf32>
    %112 = vector.shape_cast %107 : vector<1x32xf32> to vector<1x1x32xf32>
    %113 = vector.broadcast %70 : vector<2x16x1xf32> to vector<2x16x32xf32>
    %114 = vector.broadcast %112 : vector<1x1x32xf32> to vector<2x16x32xf32>
    %115 = arith.mulf %113, %114 : vector<2x16x32xf32>
    %116 = vector.shape_cast %109 : vector<1x32xf32> to vector<1x1x32xf32>
    %117 = vector.broadcast %59 : vector<2x16x1xf32> to vector<2x16x32xf32>
    %118 = vector.broadcast %116 : vector<1x1x32xf32> to vector<2x16x32xf32>
    %119 = arith.mulf %117, %118 : vector<2x16x32xf32>
    %120 = arith.addf %115, %119 : vector<2x16x32xf32>
    %121 = vector.shape_cast %108 : vector<1x32xf32> to vector<1x1x32xf32>
    %122 = vector.broadcast %121 : vector<1x1x32xf32> to vector<2x16x32xf32>
    %123 = arith.addf %120, %122 : vector<2x16x32xf32>
    %124 = arith.mulf %123, %123 : vector<2x16x32xf32>
    %cst_40 = arith.constant dense<0.000000e+00> : vector<2x16xf32>
    %125 = vector.multi_reduction <add>, %124, %cst_40 [2] : vector<2x16x32xf32> to vector<2x16xf32>
    %126 = vector.shape_cast %125 : vector<2x16xf32> to vector<2x16x1xf32>
    %cst_41 = arith.constant 1.000000e-24 : f32
    %127 = vector.broadcast %cst_41 : f32 to vector<2x16x1xf32>
    %128 = arith.maximumf %126, %127 : vector<2x16x1xf32>
    %129 = math.rsqrt %128 : vector<2x16x1xf32>
    %130 = vector.broadcast %129 : vector<2x16x1xf32> to vector<2x16x32xf32>
    %131 = arith.mulf %123, %130 : vector<2x16x32xf32>
    %132 = vector.shape_cast %110 : vector<1x32xf32> to vector<1x1x32xf32>
    %133 = vector.broadcast %132 : vector<1x1x32xf32> to vector<2x16x32xf32>
    %134 = arith.mulf %131, %133 : vector<2x16x32xf32>
    %135 = vector.shape_cast %111 : vector<1x32xf32> to vector<1x1x32xf32>
    %136 = vector.broadcast %135 : vector<1x1x32xf32> to vector<2x16x32xf32>
    %137 = arith.addf %134, %136 : vector<2x16x32xf32>
    %cst_42 = arith.constant 0.000000e+00 : f32
    %138 = vector.broadcast %cst_42 : f32 to vector<2x16x32xf32>
    %139 = arith.cmpf oge, %137, %138 : vector<2x16x32xf32>
    %cst_43 = arith.constant 0.00999999977 : f32
    %140 = vector.broadcast %cst_43 : f32 to vector<2x16x32xf32>
    %141 = arith.mulf %140, %137 : vector<2x16x32xf32>
    %142 = arith.select %139, %137, %141 : vector<2x16x32xi1>, vector<2x16x32xf32>
    %cst_44 = arith.constant dense<0xFF800000> : vector<2x16xf32>
    %143 = vector.multi_reduction <maximumf>, %106, %cst_44 [2] : vector<2x16x16xf32> to vector<2x16xf32>
    %144 = vector.shape_cast %143 : vector<2x16xf32> to vector<2x16x1xf32>
    %145 = vector.broadcast %144 : vector<2x16x1xf32> to vector<2x16x16xf32>
    %146 = arith.subf %106, %145 : vector<2x16x16xf32>
    %147 = math.exp %146 : vector<2x16x16xf32>
    %cst_45 = arith.constant dense<0.000000e+00> : vector<2x16xf32>
    %148 = vector.multi_reduction <add>, %147, %cst_45 [2] : vector<2x16x16xf32> to vector<2x16xf32>
    %149 = vector.shape_cast %148 : vector<2x16xf32> to vector<2x16x1xf32>
    %150 = vector.broadcast %149 : vector<2x16x1xf32> to vector<2x16x16xf32>
    %151 = arith.divf %147, %150 : vector<2x16x16xf32>
    %152 = tpu.transpose %151, [0, 2, 1] : vector<2x16x16xf32> -> vector<2x16x16xf32>
    "tpu.trace_start"() <{level = 10 : i32, message = "bcm,bmf->bcf"}> : () -> ()
    %cst_46 = arith.constant dense<0.000000e+00> : vector<2x16x32xf32>
    %153 = tpu.matmul %152, %142, %cst_46 {dimension_numbers = #tpu.dot_dimension_numbers<[2], [1], [1], [2], [0, 0, 0, 1, 1, 2], [0], [0]>} : vector<2x16x16xf32>, vector<2x16x32xf32>, vector<2x16x32xf32> -> vector<2x16x32xf32>
    "tpu.trace_stop"() : () -> ()
    "tpu.trace_start"() <{level = 10 : i32, message = "bcm,bmn->bcn"}> : () -> ()
    %cst_47 = arith.constant dense<0.000000e+00> : vector<2x16x16xf32>
    %154 = tpu.matmul %152, %2, %cst_47 {dimension_numbers = #tpu.dot_dimension_numbers<[2], [1], [1], [2], [0, 0, 0, 1, 1, 2], [0], [0]>} : vector<2x16x16xf32>, vector<2x16x16xf32>, vector<2x16x16xf32> -> vector<2x16x16xf32>
    "tpu.trace_stop"() : () -> ()
    "tpu.trace_start"() <{level = 10 : i32, message = "bcm,bmd->bcd"}> : () -> ()
    %cst_48 = arith.constant dense<0.000000e+00> : vector<2x16x16xf32>
    %155 = tpu.matmul %154, %151, %cst_48 {dimension_numbers = #tpu.dot_dimension_numbers<[2], [1], [1], [2], [0, 0, 0, 1, 1, 2], [0], [0]>} : vector<2x16x16xf32>, vector<2x16x16xf32>, vector<2x16x16xf32> -> vector<2x16x16xf32>
    "tpu.trace_stop"() : () -> ()
    "tpu.trace_start"() <{level = 10 : i32, message = "bnc,bmc->bnm"}> : () -> ()
    %cst_49 = arith.constant dense<0.000000e+00> : vector<2x16x16xf32>
    %156 = tpu.matmul %151, %151, %cst_49 {dimension_numbers = #tpu.dot_dimension_numbers<[2], [2], [1], [1], [0, 0, 0, 1, 1, 1], [0], [0]>} : vector<2x16x16xf32>, vector<2x16x16xf32>, vector<2x16x16xf32> -> vector<2x16x16xf32>
    "tpu.trace_stop"() : () -> ()
    %157 = arith.subf %2, %156 : vector<2x16x16xf32>
    %158 = arith.mulf %157, %157 : vector<2x16x16xf32>
    %cst_50 = arith.constant dense<0.000000e+00> : vector<2x16xf32>
    %159 = vector.multi_reduction <add>, %158, %cst_50 [2] : vector<2x16x16xf32> to vector<2x16xf32>
    %160 = vector.shape_cast %159 : vector<2x16xf32> to vector<2x16x1xf32>
    %cst_51 = arith.constant dense<0.000000e+00> : vector<2x1xf32>
    %161 = vector.multi_reduction <add>, %160, %cst_51 [1] : vector<2x16x1xf32> to vector<2x1xf32>
    %162 = vector.shape_cast %161 : vector<2x1xf32> to vector<2x1x1xf32>
    %163 = vector.extract_strided_slice %162 {offsets = [0, 0, 0], sizes = [1, 1, 1], strides = [1, 1, 1]} : vector<2x1x1xf32> to vector<1x1x1xf32>
    %164 = vector.shape_cast %163 : vector<1x1x1xf32> to vector<1x1xf32>
    %165 = vector.extract_strided_slice %162 {offsets = [1, 0, 0], sizes = [1, 1, 1], strides = [1, 1, 1]} : vector<2x1x1xf32> to vector<1x1x1xf32>
    %166 = vector.shape_cast %165 : vector<1x1x1xf32> to vector<1x1xf32>
    %167 = arith.addf %164, %166 : vector<1x1xf32>
    %cst_52 = arith.constant 0.000000e+00 : f32
    %168 = vector.broadcast %cst_52 : f32 to vector<2x16x16xf32>
    %169 = arith.subf %168, %151 : vector<2x16x16xf32>
    %cst_53 = arith.constant 1.000000e-15 : f32
    %170 = vector.broadcast %cst_53 : f32 to vector<2x16x16xf32>
    %171 = arith.addf %151, %170 : vector<2x16x16xf32>
    %172 = math.log %171 : vector<2x16x16xf32>
    %173 = arith.mulf %169, %172 : vector<2x16x16xf32>
    %cst_54 = arith.constant dense<0.000000e+00> : vector<2x16xf32>
    %174 = vector.multi_reduction <add>, %173, %cst_54 [2] : vector<2x16x16xf32> to vector<2x16xf32>
    %175 = vector.shape_cast %174 : vector<2x16xf32> to vector<2x16x1xf32>
    %cst_55 = arith.constant dense<0.000000e+00> : vector<2x1xf32>
    %176 = vector.multi_reduction <add>, %175, %cst_55 [1] : vector<2x16x1xf32> to vector<2x1xf32>
    %177 = vector.shape_cast %176 : vector<2x1xf32> to vector<2x1x1xf32>
    %178 = vector.extract_strided_slice %177 {offsets = [0, 0, 0], sizes = [1, 1, 1], strides = [1, 1, 1]} : vector<2x1x1xf32> to vector<1x1x1xf32>
    %179 = vector.shape_cast %178 : vector<1x1x1xf32> to vector<1x1xf32>
    %180 = vector.extract_strided_slice %177 {offsets = [1, 0, 0], sizes = [1, 1, 1], strides = [1, 1, 1]} : vector<2x1x1xf32> to vector<1x1x1xf32>
    %181 = vector.shape_cast %180 : vector<1x1x1xf32> to vector<1x1xf32>
    %182 = arith.addf %179, %181 : vector<1x1xf32>
    %cst_56 = arith.constant dense<0.000000e+00> : vector<2x16xf32>
    %183 = vector.multi_reduction <add>, %155, %cst_56 [2] : vector<2x16x16xf32> to vector<2x16xf32>
    %184 = vector.shape_cast %183 : vector<2x16xf32> to vector<2x16x1xf32>
    "tpu.trace_start"() <{level = 10 : i32, message = "bij,bjf->bif"}> : () -> ()
    %cst_57 = arith.constant dense<0.000000e+00> : vector<2x16x32xf32>
    %185 = tpu.matmul %155, %153, %cst_57 {dimension_numbers = #tpu.dot_dimension_numbers<[2], [1], [1], [2], [0, 0, 0, 1, 1, 2], [0], [0]>} : vector<2x16x16xf32>, vector<2x16x32xf32>, vector<2x16x32xf32> -> vector<2x16x32xf32>
    "tpu.trace_stop"() : () -> ()
    %cst_58 = arith.constant 1.000000e+00 : f32
    %186 = vector.broadcast %cst_58 : f32 to vector<2x16x1xf32>
    %187 = arith.maximumf %184, %186 : vector<2x16x1xf32>
    %188 = vector.broadcast %187 : vector<2x16x1xf32> to vector<2x16x32xf32>
    %189 = arith.divf %185, %188 : vector<2x16x32xf32>
    %c136 = arith.constant 136 : index
    %c0_59 = arith.constant 0 : index
    %190 = vector.load %arg3[%c136, %c0_59] : memref<464x128xf32, #tpu.memory_space<vmem>>, vector<32x4xf32>
    %c168 = arith.constant 168 : index
    %c0_60 = arith.constant 0 : index
    %191 = vector.load %arg3[%c168, %c0_60] : memref<464x128xf32, #tpu.memory_space<vmem>>, vector<1x4xf32>
    %c176 = arith.constant 176 : index
    %c0_61 = arith.constant 0 : index
    %192 = vector.load %arg3[%c176, %c0_61] : memref<464x128xf32, #tpu.memory_space<vmem>>, vector<32x4xf32>
    %c208 = arith.constant 208 : index
    %c0_62 = arith.constant 0 : index
    %193 = vector.load %arg3[%c208, %c0_62] : memref<464x128xf32, #tpu.memory_space<vmem>>, vector<1x4xf32>
    %c216 = arith.constant 216 : index
    %c0_63 = arith.constant 0 : index
    %194 = vector.load %arg3[%c216, %c0_63] : memref<464x128xf32, #tpu.memory_space<vmem>>, vector<1x4xf32>
    %195 = vector.shape_cast %190 : vector<32x4xf32> to vector<1x32x4xf32>
    %196 = vector.shape_cast %195 : vector<1x32x4xf32> to vector<1x32x4xf32>
    %197 = vector.broadcast %196 : vector<1x32x4xf32> to vector<2x32x4xf32>
    %198 = vector.shape_cast %192 : vector<32x4xf32> to vector<1x32x4xf32>
    %199 = vector.shape_cast %198 : vector<1x32x4xf32> to vector<1x32x4xf32>
    %200 = vector.broadcast %199 : vector<1x32x4xf32> to vector<2x32x4xf32>
    "tpu.trace_start"() <{level = 10 : i32, message = "bmf,bfc->bmc"}> : () -> ()
    %cst_64 = arith.constant dense<0.000000e+00> : vector<2x16x4xf32>
    %201 = tpu.matmul %189, %197, %cst_64 {dimension_numbers = #tpu.dot_dimension_numbers<[2], [1], [1], [2], [0, 0, 0, 1, 1, 2], [0], [0]>} : vector<2x16x32xf32>, vector<2x32x4xf32>, vector<2x16x4xf32> -> vector<2x16x4xf32>
    %cst_65 = arith.constant dense<0.000000e+00> : vector<2x16x4xf32>
    %202 = tpu.matmul %153, %200, %cst_65 {dimension_numbers = #tpu.dot_dimension_numbers<[2], [1], [1], [2], [0, 0, 0, 1, 1, 2], [0], [0]>} : vector<2x16x32xf32>, vector<2x32x4xf32>, vector<2x16x4xf32> -> vector<2x16x4xf32>
    "tpu.trace_stop"() : () -> ()
    %203 = arith.addf %201, %202 : vector<2x16x4xf32>
    %204 = vector.shape_cast %191 : vector<1x4xf32> to vector<1x1x4xf32>
    %205 = vector.broadcast %204 : vector<1x1x4xf32> to vector<2x16x4xf32>
    %206 = arith.addf %203, %205 : vector<2x16x4xf32>
    %207 = arith.mulf %206, %206 : vector<2x16x4xf32>
    %cst_66 = arith.constant dense<0.000000e+00> : vector<2x16xf32>
    %208 = vector.multi_reduction <add>, %207, %cst_66 [2] : vector<2x16x4xf32> to vector<2x16xf32>
    %209 = vector.shape_cast %208 : vector<2x16xf32> to vector<2x16x1xf32>
    %cst_67 = arith.constant 1.000000e-24 : f32
    %210 = vector.broadcast %cst_67 : f32 to vector<2x16x1xf32>
    %211 = arith.maximumf %209, %210 : vector<2x16x1xf32>
    %212 = math.rsqrt %211 : vector<2x16x1xf32>
    %213 = vector.broadcast %212 : vector<2x16x1xf32> to vector<2x16x4xf32>
    %214 = arith.mulf %206, %213 : vector<2x16x4xf32>
    %215 = vector.shape_cast %193 : vector<1x4xf32> to vector<1x1x4xf32>
    %216 = vector.broadcast %215 : vector<1x1x4xf32> to vector<2x16x4xf32>
    %217 = arith.mulf %214, %216 : vector<2x16x4xf32>
    %218 = vector.shape_cast %194 : vector<1x4xf32> to vector<1x1x4xf32>
    %219 = vector.broadcast %218 : vector<1x1x4xf32> to vector<2x16x4xf32>
    %220 = arith.addf %217, %219 : vector<2x16x4xf32>
    %cst_68 = arith.constant 0.000000e+00 : f32
    %221 = vector.broadcast %cst_68 : f32 to vector<2x16x4xf32>
    %222 = arith.cmpf oge, %220, %221 : vector<2x16x4xf32>
    %cst_69 = arith.constant 0.00999999977 : f32
    %223 = vector.broadcast %cst_69 : f32 to vector<2x16x4xf32>
    %224 = arith.mulf %223, %220 : vector<2x16x4xf32>
    %225 = arith.select %222, %220, %224 : vector<2x16x4xi1>, vector<2x16x4xf32>
    %c224 = arith.constant 224 : index
    %c0_70 = arith.constant 0 : index
    %226 = vector.load %arg3[%c224, %c0_70] : memref<464x128xf32, #tpu.memory_space<vmem>>, vector<32x32xf32>
    %c256 = arith.constant 256 : index
    %c0_71 = arith.constant 0 : index
    %227 = vector.load %arg3[%c256, %c0_71] : memref<464x128xf32, #tpu.memory_space<vmem>>, vector<1x32xf32>
    %c264 = arith.constant 264 : index
    %c0_72 = arith.constant 0 : index
    %228 = vector.load %arg3[%c264, %c0_72] : memref<464x128xf32, #tpu.memory_space<vmem>>, vector<32x32xf32>
    %c296 = arith.constant 296 : index
    %c0_73 = arith.constant 0 : index
    %229 = vector.load %arg3[%c296, %c0_73] : memref<464x128xf32, #tpu.memory_space<vmem>>, vector<1x32xf32>
    %c304 = arith.constant 304 : index
    %c0_74 = arith.constant 0 : index
    %230 = vector.load %arg3[%c304, %c0_74] : memref<464x128xf32, #tpu.memory_space<vmem>>, vector<1x32xf32>
    %231 = vector.shape_cast %226 : vector<32x32xf32> to vector<1x32x32xf32>
    %232 = vector.shape_cast %231 : vector<1x32x32xf32> to vector<1x32x32xf32>
    %233 = vector.broadcast %232 : vector<1x32x32xf32> to vector<2x32x32xf32>
    %234 = vector.shape_cast %228 : vector<32x32xf32> to vector<1x32x32xf32>
    %235 = vector.shape_cast %234 : vector<1x32x32xf32> to vector<1x32x32xf32>
    %236 = vector.broadcast %235 : vector<1x32x32xf32> to vector<2x32x32xf32>
    "tpu.trace_start"() <{level = 10 : i32, message = "bmf,bfc->bmc"}> : () -> ()
    %cst_75 = arith.constant dense<0.000000e+00> : vector<2x16x32xf32>
    %237 = tpu.matmul %189, %233, %cst_75 {dimension_numbers = #tpu.dot_dimension_numbers<[2], [1], [1], [2], [0, 0, 0, 1, 1, 2], [0], [0]>} : vector<2x16x32xf32>, vector<2x32x32xf32>, vector<2x16x32xf32> -> vector<2x16x32xf32>
    %cst_76 = arith.constant dense<0.000000e+00> : vector<2x16x32xf32>
    %238 = tpu.matmul %153, %236, %cst_76 {dimension_numbers = #tpu.dot_dimension_numbers<[2], [1], [1], [2], [0, 0, 0, 1, 1, 2], [0], [0]>} : vector<2x16x32xf32>, vector<2x32x32xf32>, vector<2x16x32xf32> -> vector<2x16x32xf32>
    "tpu.trace_stop"() : () -> ()
    %239 = arith.addf %237, %238 : vector<2x16x32xf32>
    %240 = vector.shape_cast %227 : vector<1x32xf32> to vector<1x1x32xf32>
    %241 = vector.broadcast %240 : vector<1x1x32xf32> to vector<2x16x32xf32>
    %242 = arith.addf %239, %241 : vector<2x16x32xf32>
    %243 = arith.mulf %242, %242 : vector<2x16x32xf32>
    %cst_77 = arith.constant dense<0.000000e+00> : vector<2x16xf32>
    %244 = vector.multi_reduction <add>, %243, %cst_77 [2] : vector<2x16x32xf32> to vector<2x16xf32>
    %245 = vector.shape_cast %244 : vector<2x16xf32> to vector<2x16x1xf32>
    %cst_78 = arith.constant 1.000000e-24 : f32
    %246 = vector.broadcast %cst_78 : f32 to vector<2x16x1xf32>
    %247 = arith.maximumf %245, %246 : vector<2x16x1xf32>
    %248 = math.rsqrt %247 : vector<2x16x1xf32>
    %249 = vector.broadcast %248 : vector<2x16x1xf32> to vector<2x16x32xf32>
    %250 = arith.mulf %242, %249 : vector<2x16x32xf32>
    %251 = vector.shape_cast %229 : vector<1x32xf32> to vector<1x1x32xf32>
    %252 = vector.broadcast %251 : vector<1x1x32xf32> to vector<2x16x32xf32>
    %253 = arith.mulf %250, %252 : vector<2x16x32xf32>
    %254 = vector.shape_cast %230 : vector<1x32xf32> to vector<1x1x32xf32>
    %255 = vector.broadcast %254 : vector<1x1x32xf32> to vector<2x16x32xf32>
    %256 = arith.addf %253, %255 : vector<2x16x32xf32>
    %cst_79 = arith.constant 0.000000e+00 : f32
    %257 = vector.broadcast %cst_79 : f32 to vector<2x16x32xf32>
    %258 = arith.cmpf oge, %256, %257 : vector<2x16x32xf32>
    %cst_80 = arith.constant 0.00999999977 : f32
    %259 = vector.broadcast %cst_80 : f32 to vector<2x16x32xf32>
    %260 = arith.mulf %259, %256 : vector<2x16x32xf32>
    %261 = arith.select %258, %256, %260 : vector<2x16x32xi1>, vector<2x16x32xf32>
    %cst_81 = arith.constant dense<0xFF800000> : vector<2x16xf32>
    %262 = vector.multi_reduction <maximumf>, %225, %cst_81 [2] : vector<2x16x4xf32> to vector<2x16xf32>
    %263 = vector.shape_cast %262 : vector<2x16xf32> to vector<2x16x1xf32>
    %264 = vector.broadcast %263 : vector<2x16x1xf32> to vector<2x16x4xf32>
    %265 = arith.subf %225, %264 : vector<2x16x4xf32>
    %266 = math.exp %265 : vector<2x16x4xf32>
    %cst_82 = arith.constant dense<0.000000e+00> : vector<2x16xf32>
    %267 = vector.multi_reduction <add>, %266, %cst_82 [2] : vector<2x16x4xf32> to vector<2x16xf32>
    %268 = vector.shape_cast %267 : vector<2x16xf32> to vector<2x16x1xf32>
    %269 = vector.broadcast %268 : vector<2x16x1xf32> to vector<2x16x4xf32>
    %270 = arith.divf %266, %269 : vector<2x16x4xf32>
    %271 = tpu.transpose %270, [0, 2, 1] : vector<2x16x4xf32> -> vector<2x4x16xf32>
    "tpu.trace_start"() <{level = 10 : i32, message = "bcm,bmf->bcf"}> : () -> ()
    %cst_83 = arith.constant dense<0.000000e+00> : vector<2x4x32xf32>
    %272 = tpu.matmul %271, %261, %cst_83 {dimension_numbers = #tpu.dot_dimension_numbers<[2], [1], [1], [2], [0, 0, 0, 1, 1, 2], [0], [0]>} : vector<2x4x16xf32>, vector<2x16x32xf32>, vector<2x4x32xf32> -> vector<2x4x32xf32>
    "tpu.trace_stop"() : () -> ()
    "tpu.trace_start"() <{level = 10 : i32, message = "bcm,bmn->bcn"}> : () -> ()
    %cst_84 = arith.constant dense<0.000000e+00> : vector<2x4x16xf32>
    %273 = tpu.matmul %271, %155, %cst_84 {dimension_numbers = #tpu.dot_dimension_numbers<[2], [1], [1], [2], [0, 0, 0, 1, 1, 2], [0], [0]>} : vector<2x4x16xf32>, vector<2x16x16xf32>, vector<2x4x16xf32> -> vector<2x4x16xf32>
    "tpu.trace_stop"() : () -> ()
    "tpu.trace_start"() <{level = 10 : i32, message = "bcm,bmd->bcd"}> : () -> ()
    %cst_85 = arith.constant dense<0.000000e+00> : vector<2x4x4xf32>
    %274 = tpu.matmul %273, %270, %cst_85 {dimension_numbers = #tpu.dot_dimension_numbers<[2], [1], [1], [2], [0, 0, 0, 1, 1, 2], [0], [0]>} : vector<2x4x16xf32>, vector<2x16x4xf32>, vector<2x4x4xf32> -> vector<2x4x4xf32>
    "tpu.trace_stop"() : () -> ()
    "tpu.trace_start"() <{level = 10 : i32, message = "bnc,bmc->bnm"}> : () -> ()
    %cst_86 = arith.constant dense<0.000000e+00> : vector<2x16x16xf32>
    %275 = tpu.matmul %270, %270, %cst_86 {dimension_numbers = #tpu.dot_dimension_numbers<[2], [2], [1], [1], [0, 0, 0, 1, 1, 1], [0], [0]>} : vector<2x16x4xf32>, vector<2x16x4xf32>, vector<2x16x16xf32> -> vector<2x16x16xf32>
    "tpu.trace_stop"() : () -> ()
    %276 = arith.subf %155, %275 : vector<2x16x16xf32>
    %277 = arith.mulf %276, %276 : vector<2x16x16xf32>
    %cst_87 = arith.constant dense<0.000000e+00> : vector<2x16xf32>
    %278 = vector.multi_reduction <add>, %277, %cst_87 [2] : vector<2x16x16xf32> to vector<2x16xf32>
    %279 = vector.shape_cast %278 : vector<2x16xf32> to vector<2x16x1xf32>
    %cst_88 = arith.constant dense<0.000000e+00> : vector<2x1xf32>
    %280 = vector.multi_reduction <add>, %279, %cst_88 [1] : vector<2x16x1xf32> to vector<2x1xf32>
    %281 = vector.shape_cast %280 : vector<2x1xf32> to vector<2x1x1xf32>
    %282 = vector.extract_strided_slice %281 {offsets = [0, 0, 0], sizes = [1, 1, 1], strides = [1, 1, 1]} : vector<2x1x1xf32> to vector<1x1x1xf32>
    %283 = vector.shape_cast %282 : vector<1x1x1xf32> to vector<1x1xf32>
    %284 = vector.extract_strided_slice %281 {offsets = [1, 0, 0], sizes = [1, 1, 1], strides = [1, 1, 1]} : vector<2x1x1xf32> to vector<1x1x1xf32>
    %285 = vector.shape_cast %284 : vector<1x1x1xf32> to vector<1x1xf32>
    %286 = arith.addf %283, %285 : vector<1x1xf32>
    %cst_89 = arith.constant 0.000000e+00 : f32
    %287 = vector.broadcast %cst_89 : f32 to vector<2x16x4xf32>
    %288 = arith.subf %287, %270 : vector<2x16x4xf32>
    %cst_90 = arith.constant 1.000000e-15 : f32
    %289 = vector.broadcast %cst_90 : f32 to vector<2x16x4xf32>
    %290 = arith.addf %270, %289 : vector<2x16x4xf32>
    %291 = math.log %290 : vector<2x16x4xf32>
    %292 = arith.mulf %288, %291 : vector<2x16x4xf32>
    %cst_91 = arith.constant dense<0.000000e+00> : vector<2x16xf32>
    %293 = vector.multi_reduction <add>, %292, %cst_91 [2] : vector<2x16x4xf32> to vector<2x16xf32>
    %294 = vector.shape_cast %293 : vector<2x16xf32> to vector<2x16x1xf32>
    %cst_92 = arith.constant dense<0.000000e+00> : vector<2x1xf32>
    %295 = vector.multi_reduction <add>, %294, %cst_92 [1] : vector<2x16x1xf32> to vector<2x1xf32>
    %296 = vector.shape_cast %295 : vector<2x1xf32> to vector<2x1x1xf32>
    %297 = vector.extract_strided_slice %296 {offsets = [0, 0, 0], sizes = [1, 1, 1], strides = [1, 1, 1]} : vector<2x1x1xf32> to vector<1x1x1xf32>
    %298 = vector.shape_cast %297 : vector<1x1x1xf32> to vector<1x1xf32>
    %299 = vector.extract_strided_slice %296 {offsets = [1, 0, 0], sizes = [1, 1, 1], strides = [1, 1, 1]} : vector<2x1x1xf32> to vector<1x1x1xf32>
    %300 = vector.shape_cast %299 : vector<1x1x1xf32> to vector<1x1xf32>
    %301 = arith.addf %298, %300 : vector<1x1xf32>
    %cst_93 = arith.constant dense<0.000000e+00> : vector<2x4xf32>
    %302 = vector.multi_reduction <add>, %274, %cst_93 [2] : vector<2x4x4xf32> to vector<2x4xf32>
    %303 = vector.shape_cast %302 : vector<2x4xf32> to vector<2x4x1xf32>
    "tpu.trace_start"() <{level = 10 : i32, message = "bij,bjf->bif"}> : () -> ()
    %cst_94 = arith.constant dense<0.000000e+00> : vector<2x4x32xf32>
    %304 = tpu.matmul %274, %272, %cst_94 {dimension_numbers = #tpu.dot_dimension_numbers<[2], [1], [1], [2], [0, 0, 0, 1, 1, 2], [0], [0]>} : vector<2x4x4xf32>, vector<2x4x32xf32>, vector<2x4x32xf32> -> vector<2x4x32xf32>
    "tpu.trace_stop"() : () -> ()
    %cst_95 = arith.constant 1.000000e+00 : f32
    %305 = vector.broadcast %cst_95 : f32 to vector<2x4x1xf32>
    %306 = arith.maximumf %303, %305 : vector<2x4x1xf32>
    %307 = vector.broadcast %306 : vector<2x4x1xf32> to vector<2x4x32xf32>
    %308 = arith.divf %304, %307 : vector<2x4x32xf32>
    %c312 = arith.constant 312 : index
    %c0_96 = arith.constant 0 : index
    %309 = vector.load %arg3[%c312, %c0_96] : memref<464x128xf32, #tpu.memory_space<vmem>>, vector<32x32xf32>
    %c344 = arith.constant 344 : index
    %c0_97 = arith.constant 0 : index
    %310 = vector.load %arg3[%c344, %c0_97] : memref<464x128xf32, #tpu.memory_space<vmem>>, vector<1x32xf32>
    %c352 = arith.constant 352 : index
    %c0_98 = arith.constant 0 : index
    %311 = vector.load %arg3[%c352, %c0_98] : memref<464x128xf32, #tpu.memory_space<vmem>>, vector<32x32xf32>
    %c384 = arith.constant 384 : index
    %c0_99 = arith.constant 0 : index
    %312 = vector.load %arg3[%c384, %c0_99] : memref<464x128xf32, #tpu.memory_space<vmem>>, vector<1x32xf32>
    %c392 = arith.constant 392 : index
    %c0_100 = arith.constant 0 : index
    %313 = vector.load %arg3[%c392, %c0_100] : memref<464x128xf32, #tpu.memory_space<vmem>>, vector<1x32xf32>
    %314 = vector.shape_cast %309 : vector<32x32xf32> to vector<1x32x32xf32>
    %315 = vector.shape_cast %314 : vector<1x32x32xf32> to vector<1x32x32xf32>
    %316 = vector.broadcast %315 : vector<1x32x32xf32> to vector<2x32x32xf32>
    %317 = vector.shape_cast %311 : vector<32x32xf32> to vector<1x32x32xf32>
    %318 = vector.shape_cast %317 : vector<1x32x32xf32> to vector<1x32x32xf32>
    %319 = vector.broadcast %318 : vector<1x32x32xf32> to vector<2x32x32xf32>
    "tpu.trace_start"() <{level = 10 : i32, message = "bmf,bfc->bmc"}> : () -> ()
    %cst_101 = arith.constant dense<0.000000e+00> : vector<2x4x32xf32>
    %320 = tpu.matmul %308, %316, %cst_101 {dimension_numbers = #tpu.dot_dimension_numbers<[2], [1], [1], [2], [0, 0, 0, 1, 1, 2], [0], [0]>} : vector<2x4x32xf32>, vector<2x32x32xf32>, vector<2x4x32xf32> -> vector<2x4x32xf32>
    %cst_102 = arith.constant dense<0.000000e+00> : vector<2x4x32xf32>
    %321 = tpu.matmul %272, %319, %cst_102 {dimension_numbers = #tpu.dot_dimension_numbers<[2], [1], [1], [2], [0, 0, 0, 1, 1, 2], [0], [0]>} : vector<2x4x32xf32>, vector<2x32x32xf32>, vector<2x4x32xf32> -> vector<2x4x32xf32>
    "tpu.trace_stop"() : () -> ()
    %322 = arith.addf %320, %321 : vector<2x4x32xf32>
    %323 = vector.shape_cast %310 : vector<1x32xf32> to vector<1x1x32xf32>
    %324 = vector.broadcast %323 : vector<1x1x32xf32> to vector<2x4x32xf32>
    %325 = arith.addf %322, %324 : vector<2x4x32xf32>
    %326 = arith.mulf %325, %325 : vector<2x4x32xf32>
    %cst_103 = arith.constant dense<0.000000e+00> : vector<2x4xf32>
    %327 = vector.multi_reduction <add>, %326, %cst_103 [2] : vector<2x4x32xf32> to vector<2x4xf32>
    %328 = vector.shape_cast %327 : vector<2x4xf32> to vector<2x4x1xf32>
    %cst_104 = arith.constant 1.000000e-24 : f32
    %329 = vector.broadcast %cst_104 : f32 to vector<2x4x1xf32>
    %330 = arith.maximumf %328, %329 : vector<2x4x1xf32>
    %331 = math.rsqrt %330 : vector<2x4x1xf32>
    %332 = vector.broadcast %331 : vector<2x4x1xf32> to vector<2x4x32xf32>
    %333 = arith.mulf %325, %332 : vector<2x4x32xf32>
    %334 = vector.shape_cast %312 : vector<1x32xf32> to vector<1x1x32xf32>
    %335 = vector.broadcast %334 : vector<1x1x32xf32> to vector<2x4x32xf32>
    %336 = arith.mulf %333, %335 : vector<2x4x32xf32>
    %337 = vector.shape_cast %313 : vector<1x32xf32> to vector<1x1x32xf32>
    %338 = vector.broadcast %337 : vector<1x1x32xf32> to vector<2x4x32xf32>
    %339 = arith.addf %336, %338 : vector<2x4x32xf32>
    %cst_105 = arith.constant 0.000000e+00 : f32
    %340 = vector.broadcast %cst_105 : f32 to vector<2x4x32xf32>
    %341 = arith.cmpf oge, %339, %340 : vector<2x4x32xf32>
    %cst_106 = arith.constant 0.00999999977 : f32
    %342 = vector.broadcast %cst_106 : f32 to vector<2x4x32xf32>
    %343 = arith.mulf %342, %339 : vector<2x4x32xf32>
    %344 = arith.select %341, %339, %343 : vector<2x4x32xi1>, vector<2x4x32xf32>
    %c400 = arith.constant 400 : index
    %c0_107 = arith.constant 0 : index
    %345 = vector.load %arg3[%c400, %c0_107] : memref<464x128xf32, #tpu.memory_space<vmem>>, vector<1x32xf32>
    %346 = vector.shape_cast %345 : vector<1x32xf32> to vector<1x1x32xf32>
    %347 = vector.shape_cast %346 : vector<1x1x32xf32> to vector<1x1x32xf32>
    %348 = vector.broadcast %347 : vector<1x1x32xf32> to vector<2x1x32xf32>
    "tpu.trace_start"() <{level = 10 : i32, message = "bqf,bcf->bqc"}> : () -> ()
    %cst_108 = arith.constant dense<0.000000e+00> : vector<2x1x4xf32>
    %349 = tpu.matmul %348, %344, %cst_108 {dimension_numbers = #tpu.dot_dimension_numbers<[2], [2], [1], [1], [0, 0, 0, 1, 1, 1], [0], [0]>} : vector<2x1x32xf32>, vector<2x4x32xf32>, vector<2x1x4xf32> -> vector<2x1x4xf32>
    "tpu.trace_stop"() : () -> ()
    %c408 = arith.constant 408 : index
    %c0_109 = arith.constant 0 : index
    %350 = vector.load %arg3[%c408, %c0_109] : memref<464x128xf32, #tpu.memory_space<vmem>>, vector<1x1xf32>
    %351 = vector.shape_cast %350 : vector<1x1xf32> to vector<1x1x1xf32>
    %352 = vector.broadcast %351 : vector<1x1x1xf32> to vector<2x1x4xf32>
    %353 = arith.addf %349, %352 : vector<2x1x4xf32>
    %cst_110 = arith.constant 0.000000e+00 : f32
    %354 = vector.broadcast %cst_110 : f32 to vector<2x1x4xf32>
    %355 = arith.cmpf oge, %353, %354 : vector<2x1x4xf32>
    %cst_111 = arith.constant 0.00999999977 : f32
    %356 = vector.broadcast %cst_111 : f32 to vector<2x1x4xf32>
    %357 = arith.mulf %356, %353 : vector<2x1x4xf32>
    %358 = arith.select %355, %353, %357 : vector<2x1x4xi1>, vector<2x1x4xf32>
    %c416 = arith.constant 416 : index
    %c0_112 = arith.constant 0 : index
    %359 = vector.load %arg3[%c416, %c0_112] : memref<464x128xf32, #tpu.memory_space<vmem>>, vector<4x4xf32>
    %360 = vector.shape_cast %359 : vector<4x4xf32> to vector<1x4x4xf32>
    %361 = vector.shape_cast %360 : vector<1x4x4xf32> to vector<1x4x4xf32>
    %362 = vector.broadcast %361 : vector<1x4x4xf32> to vector<2x4x4xf32>
    "tpu.trace_start"() <{level = 10 : i32, message = "bqc,bcd->bqd"}> : () -> ()
    %cst_113 = arith.constant dense<0.000000e+00> : vector<2x1x4xf32>
    %363 = tpu.matmul %358, %362, %cst_113 {dimension_numbers = #tpu.dot_dimension_numbers<[2], [1], [1], [2], [0, 0, 0, 1, 1, 2], [0], [0]>} : vector<2x1x4xf32>, vector<2x4x4xf32>, vector<2x1x4xf32> -> vector<2x1x4xf32>
    "tpu.trace_stop"() : () -> ()
    %c424 = arith.constant 424 : index
    %c0_114 = arith.constant 0 : index
    %364 = vector.load %arg3[%c424, %c0_114] : memref<464x128xf32, #tpu.memory_space<vmem>>, vector<1x4xf32>
    %365 = vector.shape_cast %364 : vector<1x4xf32> to vector<1x1x4xf32>
    %366 = vector.broadcast %365 : vector<1x1x4xf32> to vector<2x1x4xf32>
    %367 = arith.addf %363, %366 : vector<2x1x4xf32>
    %c432 = arith.constant 432 : index
    %c0_115 = arith.constant 0 : index
    %368 = vector.load %arg3[%c432, %c0_115] : memref<464x128xf32, #tpu.memory_space<vmem>>, vector<1x4xf32>
    %369 = vector.shape_cast %368 : vector<1x4xf32> to vector<1x1x4xf32>
    %370 = vector.broadcast %369 : vector<1x1x4xf32> to vector<2x1x4xf32>
    %371 = arith.mulf %367, %370 : vector<2x1x4xf32>
    %c440 = arith.constant 440 : index
    %c0_116 = arith.constant 0 : index
    %372 = vector.load %arg3[%c440, %c0_116] : memref<464x128xf32, #tpu.memory_space<vmem>>, vector<1x4xf32>
    %373 = vector.shape_cast %372 : vector<1x4xf32> to vector<1x1x4xf32>
    %374 = vector.broadcast %373 : vector<1x1x4xf32> to vector<2x1x4xf32>
    %375 = arith.addf %371, %374 : vector<2x1x4xf32>
    %cst_117 = arith.constant 0.000000e+00 : f32
    %376 = vector.broadcast %cst_117 : f32 to vector<2x1x4xf32>
    %377 = arith.cmpf oge, %375, %376 : vector<2x1x4xf32>
    %cst_118 = arith.constant 0.00999999977 : f32
    %378 = vector.broadcast %cst_118 : f32 to vector<2x1x4xf32>
    %379 = arith.mulf %378, %375 : vector<2x1x4xf32>
    %380 = arith.select %377, %375, %379 : vector<2x1x4xi1>, vector<2x1x4xf32>
    %c448 = arith.constant 448 : index
    %c0_119 = arith.constant 0 : index
    %381 = vector.load %arg3[%c448, %c0_119] : memref<464x128xf32, #tpu.memory_space<vmem>>, vector<1x4xf32>
    %382 = vector.shape_cast %381 : vector<1x4xf32> to vector<1x1x4xf32>
    %383 = vector.broadcast %382 : vector<1x1x4xf32> to vector<2x1x4xf32>
    %384 = arith.mulf %380, %383 : vector<2x1x4xf32>
    %cst_120 = arith.constant dense<0.000000e+00> : vector<2x1xf32>
    %385 = vector.multi_reduction <add>, %384, %cst_120 [2] : vector<2x1x4xf32> to vector<2x1xf32>
    %386 = vector.shape_cast %385 : vector<2x1xf32> to vector<2x1x1xf32>
    %c456 = arith.constant 456 : index
    %c0_121 = arith.constant 0 : index
    %387 = vector.load %arg3[%c456, %c0_121] : memref<464x128xf32, #tpu.memory_space<vmem>>, vector<1x1xf32>
    %388 = vector.shape_cast %387 : vector<1x1xf32> to vector<1x1x1xf32>
    %389 = vector.broadcast %388 : vector<1x1x1xf32> to vector<2x1x1xf32>
    %390 = arith.addf %386, %389 : vector<2x1x1xf32>
    %391 = math.sqrt %167 : vector<1x1xf32>
    %cst_122 = arith.constant 0.001953125 : f32
    %392 = vector.broadcast %cst_122 : f32 to vector<1x1xf32>
    %393 = arith.mulf %391, %392 : vector<1x1xf32>
    %394 = math.sqrt %286 : vector<1x1xf32>
    %cst_123 = arith.constant 0.001953125 : f32
    %395 = vector.broadcast %cst_123 : f32 to vector<1x1xf32>
    %396 = arith.mulf %394, %395 : vector<1x1xf32>
    %397 = arith.addf %393, %396 : vector<1x1xf32>
    %cst_124 = arith.constant 3.125000e-02 : f32
    %398 = vector.broadcast %cst_124 : f32 to vector<1x1xf32>
    %399 = arith.mulf %182, %398 : vector<1x1xf32>
    %cst_125 = arith.constant 3.125000e-02 : f32
    %400 = vector.broadcast %cst_125 : f32 to vector<1x1xf32>
    %401 = arith.mulf %301, %400 : vector<1x1xf32>
    %402 = arith.addf %399, %401 : vector<1x1xf32>
    %403 = tpu.iota {dimensions = array<i32: 1>} : vector<1x128xi32>
    %c0_i32 = arith.constant 0 : i32
    %404 = vector.broadcast %c0_i32 : i32 to vector<1x128xi32>
    %405 = arith.cmpi eq, %403, %404 : vector<1x128xi32>
    %406 = vector.extract_strided_slice %390 {offsets = [0, 0, 0], sizes = [1, 1, 1], strides = [1, 1, 1]} : vector<2x1x1xf32> to vector<1x1x1xf32>
    %407 = vector.shape_cast %406 : vector<1x1x1xf32> to vector<1x1xf32>
    %cst_126 = arith.constant 0.000000e+00 : f32
    %408 = vector.shape_cast %407 : vector<1x1xf32> to vector<1x1xf32>
    %409 = vector.broadcast %408 : vector<1x1xf32> to vector<1x128xf32>
    %410 = vector.broadcast %cst_126 : f32 to vector<1x128xf32>
    %411 = arith.select %405, %409, %410 : vector<1x128xi1>, vector<1x128xf32>
    %c1_i32 = arith.constant 1 : i32
    %412 = vector.broadcast %c1_i32 : i32 to vector<1x128xi32>
    %413 = arith.cmpi eq, %403, %412 : vector<1x128xi32>
    %414 = vector.extract_strided_slice %390 {offsets = [1, 0, 0], sizes = [1, 1, 1], strides = [1, 1, 1]} : vector<2x1x1xf32> to vector<1x1x1xf32>
    %415 = vector.shape_cast %414 : vector<1x1x1xf32> to vector<1x1xf32>
    %cst_127 = arith.constant 0.000000e+00 : f32
    %416 = vector.shape_cast %415 : vector<1x1xf32> to vector<1x1xf32>
    %417 = vector.broadcast %416 : vector<1x1xf32> to vector<1x128xf32>
    %418 = vector.broadcast %cst_127 : f32 to vector<1x128xf32>
    %419 = arith.select %413, %417, %418 : vector<1x128xi1>, vector<1x128xf32>
    %420 = arith.addf %411, %419 : vector<1x128xf32>
    %c2_i32 = arith.constant 2 : i32
    %421 = vector.broadcast %c2_i32 : i32 to vector<1x128xi32>
    %422 = arith.cmpi eq, %403, %421 : vector<1x128xi32>
    %cst_128 = arith.constant 0.000000e+00 : f32
    %423 = vector.shape_cast %397 : vector<1x1xf32> to vector<1x1xf32>
    %424 = vector.broadcast %423 : vector<1x1xf32> to vector<1x128xf32>
    %425 = vector.broadcast %cst_128 : f32 to vector<1x128xf32>
    %426 = arith.select %422, %424, %425 : vector<1x128xi1>, vector<1x128xf32>
    %427 = arith.addf %420, %426 : vector<1x128xf32>
    %c3_i32 = arith.constant 3 : i32
    %428 = vector.broadcast %c3_i32 : i32 to vector<1x128xi32>
    %429 = arith.cmpi eq, %403, %428 : vector<1x128xi32>
    %cst_129 = arith.constant 0.000000e+00 : f32
    %430 = vector.shape_cast %402 : vector<1x1xf32> to vector<1x1xf32>
    %431 = vector.broadcast %430 : vector<1x1xf32> to vector<1x128xf32>
    %432 = vector.broadcast %cst_129 : f32 to vector<1x128xf32>
    %433 = arith.select %429, %431, %432 : vector<1x128xi1>, vector<1x128xf32>
    %434 = arith.addf %427, %433 : vector<1x128xf32>
    %435 = vector.shape_cast %434 : vector<1x128xf32> to vector<1x128xf32>
    %436 = vector.broadcast %435 : vector<1x128xf32> to vector<8x128xf32>
    %c0_130 = arith.constant 0 : index
    %c0_131 = arith.constant 0 : index
    %437 = vector.load %arg4[%c0_130, %c0_131] : memref<8x128xf32, #tpu.memory_space<vmem>>, vector<8x128xf32>
    tpu.vector_store %arg4[%c0_130, %c0_131], %436 {strides = array<i32>} : memref<8x128xf32, #tpu.memory_space<vmem>>, vector<8x128xf32>,
    return
  }
}

</mosaic_0001>

<bundles_post_ra>
// kernel: _lambda_.1
= control target key start
LH: loop header
LB: loop body
LE: loop exit
PB: predicated region body
PF: predicated region fallthrough
CT: control target
= control target key end

     0   :  { %vm27_vm0 = vcmask 130048   ;;  %v2737_v2 = vmov 0   ;;  %vm178_vm10 = vcmask 261120   ;;  %s3553_s2 = inlined_call_operand.vmem [shape: f32[2,16,16], index: 2, kind: input, shape index: {}]   ;;  %s3554_s1 = inlined_call_operand.vmem [shape: f32[2,1,16], index: 1, kind: input, shape index: {}]   ;;  %s3555_s3 = inlined_call_operand.vmem [shape: f32[464,128], index: 3, kind: input, shape index: {}]   ;;  %s3556_s0 = inlined_call_operand.vmem [shape: f32[2,16,1], index: 0, kind: input, shape index: {}]   ;;  %s3557_s4 = inlined_call_operand.vmem [shape: f32[8,128], index: 4, kind: output, shape index: {}]  }
   0x1   :  { %v2766_v0 = vld [vmem:[%s3553_s2 + $0x8] sm:$0xff]  ;;  %v2771_v1 = vld [vmem:[%s3553_s2] sm:$0xff]  ;;  %2587 = vset.pattern.permute.xlu0 %v2737_v2  ;;  %2588 = vset.pattern.permute.xlu1 %v2737_v2  ;;  %v2783_v6 = vld [vmem:[%s3553_s2 + $0x18] sm:$0xff] }
   0x2   :  { %v31_v3 = vsel %vm27_vm0, %v2766_v0, 0.0  ;;  %v28_v4 = vsel %vm27_vm0, %v2771_v1, 0.0  ;;  %v2589_v5 = vld [vmem:[%s3554_s1] ss:$0 sm:$0xff]  ;;  %2586 = vset.pattern.permute.xlu2 %v2737_v2  ;;  %v2788_v7 = vld [vmem:[%s3553_s2 + $0x10] sm:$0xff]  ;;  %v37_v11 = vsel %vm27_vm0, %v2783_v6, 0.0 }
   0x3   :  { %32 = vadd.xlane.f32.xlu0 %v31_v3  ;;  %29 = vadd.xlane.f32.xlu1 %v28_v4  ;;  %v111_v8 = vmul.f32 %v2589_v5, %v2766_v0  ;;  %v2590_v9 = vld [vmem:[%s3554_s1 + $0x1] ss:$0 sm:$0xff]  ;;  %v34_v12 = vsel %vm27_vm0, %v2788_v7, 0.0  ;;  %v110_v16 = vmul.f32 %v2589_v5, %v2771_v1  ;;  %v20_v19 = vld [vmem:[%s3556_s0 + $0x18] sm:$0xff]  ;;  %v18_v20 = vld [vmem:[%s3556_s0 + $0x8] sm:$0xff] }
   0x4   :  { %v113_v13 = vmul.f32 %v2590_v9, %v2783_v6  ;;  %v112_v15 = vmul.f32 %v2590_v9, %v2788_v7  ;;  %v17_v21 = vld [vmem:[%s3556_s0] sm:$0xff]  ;;  %v19_v22 = vld [vmem:[%s3556_s0 + $0x10] sm:$0xff]  ;;  %v2594_v62 = vld [vmem:[%s3555_s3 + $0x8] ss:$0 sm:$0xff] }
   0x5   :  { %v117_v10 = vsel %vm27_vm0, %v111_v8, 0.0  ;;  %v114_v18 = vsel %vm27_vm0, %v110_v16, 0.0  ;;  %v2841_v44 = vld [vmem:[%s3555_s3 + $0x10] ss:$0 sm:$0xff]  ;;  %v2846_v47 = vld [vmem:[%s3555_s3] ss:$0 sm:$0xff] }
   0x6   :  { %118 = vadd.xlane.f32.xlu2 %v117_v10  ;;  %v123_v14 = vsel %vm27_vm0, %v113_v13, 0.0  ;;  %v120_v17 = vsel %vm27_vm0, %v112_v15, 0.0 }
   0xb   :  { %38 = vadd.xlane.f32.xlu0 %v37_v11  ;;  %35 = vadd.xlane.f32.xlu1 %v34_v12 }
   0xe   :  { %124 = vadd.xlane.f32.xlu2 %v123_v14 }
  0x13   :  { %121 = vadd.xlane.f32.xlu1 %v120_v17  ;;  %115 = vadd.xlane.f32.xlu0 %v114_v18 }
  0x26   :  { %147 = vperm.xlu2 %2586, %v18_v20  }
  0x27   :  { %157 = vperm.xlu0 %2587, %v20_v19  }
  0x2c   :  { %142 = vperm.xlu1 %2588, %v17_v21  }
  0x2e   :  { %152 = vperm.xlu2 %2586, %v19_v22  }
  0x76   :  { %v2817_v23 = vpop.xlane.xlu0 %32  ;;  %v2819_v24 = vpop.xlane.xlu1 %29 }
  0x77   :  { %v41_v25 = vmax.f32 %v2817_v23, 1.0  ;;  %v2823_v26 = vmax.f32 %v2819_v24, 1.0 }
  0x79   :  { %2617 = vrcp.f32 %v41_v25  ;;  %v119_v27 = vpop.xlane.xlu2 %118  ;;  %v70_v34 = vand.u32 2147483648, %v41_v25  ;;  %vm64_vm1 = vweird.f32 %v41_v25  ;;  %v68_v39 = vand.u32 2147483647, %v41_v25 }
  0x7a   :  { %2619 = vrcp.f32 %v2823_v26  ;;  %vm49_vm15 = vweird.f32 %v2823_v26  ;;  %v55_v19 = vand.u32 2147483648, %v2823_v26 }
  0x7b   :  { %v71_v40 = vor.u32 1.1754944e-38, %v70_v34  ;;  %vm69_vm4 = vcmp.eq.f32.partialorder %v68_v39, 8.507059e+37 }
  0x7e   :  { %v2826_v28 = vpop.xlane.xlu0 %38  ;;  %v2828_v29 = vpop.xlane.xlu1 %35 }
  0x7f   :  { %v2618_v30 = vpop.eup %2617  ;;  %v43_v31 = vmax.f32 %v2826_v28, 1.0  ;;  %v42_v32 = vmax.f32 %v2828_v29, 1.0 }
  0x80   :  { %v60_v33 = vmul.f32 %v2618_v30, %v41_v25  ;;  %v2832_v35 = vpop.eup %2619  ;;  %vm65_vm2 = vweird.f32 %v2618_v30 }
  0x81   :  { %2621 = vrcp.f32 %v43_v31  ;;  %v2834_v37 = vpop.xlane.xlu2 %124  ;;  %v45_v41 = vmul.f32 %v2832_v35, %v2823_v26  ;;  %vm66_vm3 = vmor %vm64_vm1, %vm65_vm2  ;;  %vm94_vm5 = vweird.f32 %v43_v31  ;;  %v100_v55 = vand.u32 2147483648, %v43_v31 }
  0x82   :  { %v61_v36 = vsub.f32 1.0, %v60_v33  ;;  %2623 = vrcp.f32 %v42_v32  ;;  %v98_v60 = vand.u32 2147483647, %v43_v31  ;;  %v85_v61 = vand.u32 2147483648, %v42_v32 }
  0x83   :  { %v46_v51 = vsub.f32 1.0, %v45_v41  ;;  %v83_v3 = vand.u32 2147483647, %v42_v32  ;;  %v101_v9 = vor.u32 1.1754944e-38, %v100_v55  ;;  %vm79_vm9 = vweird.f32 %v42_v32 }
  0x84   :  { %v62_v38 = vmul.f32 %v2618_v30, %v61_v36  ;;  %vm99_vm11 = vcmp.eq.f32.partialorder %v98_v60, 8.507059e+37  ;;  %v86_v12 = vor.u32 1.1754944e-38, %v85_v61  ;;  %vm50_vm14 = vweird.f32 %v2832_v35 }
  0x85   :  { %v47_v4 = vmul.f32 %v2832_v35, %v46_v51  ;;  %vm84_vm13 = vcmp.eq.f32.partialorder %v83_v3, 8.507059e+37  ;;  %vm51_vm1 = vmor %vm49_vm15, %vm50_vm14  ;;  %v56_v36 = vor.u32 1.1754944e-38, %v55_v19 }
  0x86   :  { %v63_v42 = vadd.f32 %v2618_v30, %v62_v38  ;;  %v116_v16 = vpop.xlane.xlu0 %115  ;;  %v122_v18 = vpop.xlane.xlu1 %121 }
  0x87   :  { %v2622_v43 = vpop.eup %2621  ;;  %v48_v15 = vadd.f32 %v2832_v35, %v47_v4 }
  0x88   :  { %v2624_v45 = vpop.eup %2623  ;;  %v67_v46 = vsel %vm66_vm3, %v2618_v30, %v63_v42  ;;  %v90_v48 = vmul.f32 %v2622_v43, %v43_v31  ;;  %vm95_vm6 = vweird.f32 %v2622_v43 }
  0x89   :  { %v2848_v49 = vsel %vm69_vm4, %v71_v40, %v67_v46  ;;  %v75_v50 = vmul.f32 %v2624_v45, %v42_v32  ;;  %v148_v54 = vpop.permute.xlu2 %147  ;;  %vm2856_vm7 = vmor %vm94_vm5, %vm95_vm6  ;;  %vm80_vm8 = vweird.f32 %v2624_v45  ;;  %v52_v33 = vsel %vm51_vm1, %v2832_v35, %v48_v15 }
  0x8a   :  { %v127_v52 = vmul.f32 %v119_v27, %v2848_v49  ;;  %v91_v53 = vsub.f32 1.0, %v90_v48  ;;  %v162_v57 = vmul.f32 %v2841_v44, %v148_v54  ;;  %vm81_vm12 = vmor %vm79_vm9, %vm80_vm8  ;;  %v53_v27 = vand.u32 2147483647, %v2823_v26 }
  0x8b   :  { %v76_v56 = vsub.f32 1.0, %v75_v50 }
  0x8c   :  { %v137_v58 = vmul.f32 %v2846_v47, %v127_v52  ;;  %v92_v59 = vmul.f32 %v2622_v43, %v91_v53  ;;  %vm54_vm2 = vcmp.eq.f32.partialorder %v53_v27, 8.507059e+37 }
  0x8d   :  { %v77_v2 = vmul.f32 %v2624_v45, %v76_v56  ;;  %v2883_v39 = vsel %vm54_vm2, %v56_v36, %v52_v33 }
  0x8e   :  { %v93_v5 = vadd.f32 %v2622_v43, %v92_v59  ;;  %v166_v8 = vadd.f32 %v162_v57, %v137_v58 }
  0x8f   :  { %v78_v10 = vadd.f32 %v2624_v45, %v77_v2 }
  0x90   :  { %v97_v11 = vsel %vm2856_vm7, %v2622_v43, %v93_v5  ;;  %v2863_v13 = vadd.f32 %v2594_v62, %v166_v8  ;;  %v126_v43 = vmul.f32 %v116_v16, %v2883_v39 }
  0x91   :  { %v82_v14 = vsel %vm81_vm12, %v2624_v45, %v78_v10  ;;  %v153_v20 = vpop.permute.xlu2 %152  ;;  %v2873_v22 = vsel %vm99_vm11, %v101_v9, %v97_v11  ;;  %v2595_v11 = vld [vmem:[%s3555_s3 + $0x18] ss:$0 sm:$0xff] }
  0x92   :  { %v2867_v17 = vsel %vm84_vm13, %v86_v12, %v82_v14  ;;  %v175_v21 = vmul.f32 %v2863_v13, %v2863_v13  ;;  %v163_v30 = vmul.f32 %v2841_v44, %v153_v20  ;;  %v129_v34 = vmul.f32 %v2834_v37, %v2873_v22 }
  0x93   :  { %v128_v25 = vmul.f32 %v122_v18, %v2867_v17  ;;  %v136_v50 = vmul.f32 %v2846_v47, %v126_v43  ;;  %v2596_v18 = vld [vmem:[%s3555_s3 + $0x20] ss:$0 sm:$0xff] }
  0x94   :  { %v182_v31 = vsel %vm178_vm10, %v175_v21, 0.0  ;;  %v139_v41 = vmul.f32 %v2846_v47, %v129_v34 }
  0x95   :  { %v138_v32 = vmul.f32 %v2846_v47, %v128_v25  ;;  %183 = vadd.xlane.f32.xlu2 %v182_v31 }
  0x97   :  { %v167_v38 = vadd.f32 %v163_v30, %v138_v32 }
  0x99   :  { %v158_v40 = vpop.permute.xlu0 %157  ;;  %v2885_v26 = vadd.f32 %v2594_v62, %v167_v38 }
  0x9a   :  { %v164_v42 = vmul.f32 %v2841_v44, %v158_v40 }
  0x9b   :  { %v176_v35 = vmul.f32 %v2885_v26, %v2885_v26 }
  0x9c   :  { %v168_v45 = vadd.f32 %v164_v42, %v139_v41 }
  0x9d   :  { %v185_v37 = vsel %vm178_vm10, %v176_v35, 0.0 }
  0x9e   :  { %186 = vadd.xlane.f32.xlu2 %v185_v37  ;;  %v143_v46 = vpop.permute.xlu1 %142  ;;  %v2893_v48 = vadd.f32 %v2594_v62, %v168_v45 }
  0x9f   :  { %v161_v51 = vmul.f32 %v2841_v44, %v143_v46 }
  0xa0   :  { %v177_v52 = vmul.f32 %v2893_v48, %v2893_v48 }
  0xa1   :  { %v165_v53 = vadd.f32 %v161_v51, %v136_v50 }
  0xa2   :  { %v188_v54 = vsel %vm178_vm10, %v177_v52, 0.0 }
  0xa3   :  { %189 = vadd.xlane.f32.xlu1 %v188_v54  ;;  %v2900_v55 = vadd.f32 %v2594_v62, %v165_v53 }
  0xa5   :  { %v174_v56 = vmul.f32 %v2900_v55, %v2900_v55 }
  0xa7   :  { %v179_v57 = vsel %vm178_vm10, %v174_v56, 0.0 }
  0xa8   :  { %180 = vadd.xlane.f32.xlu0 %v179_v57 }
 0x108   :  { %v184_v58 = vpop.xlane.xlu2 %183 }
 0x109   :  { %v192_v59 = vmax.f32 %v184_v58, 1e-24 }
 0x10b   :  { %2625 = vrsqrt.f32 %v192_v59  ;;  %vm211_vm4 = vweird.f32 %v192_v59 }
 0x111   :  { %v2626_v47 = vpop.eup %2625  ;;  %v187_v44 = vpop.xlane.xlu2 %186 }
 0x112   :  { %v206_v60 = vmul.f32 %v2626_v47, %v192_v59  ;;  %v193_v61 = vmax.f32 %v187_v44, 1e-24  ;;  %vm212_vm3 = vweird.f32 %v2626_v47 }
 0x113   :  { %vm213_vm5 = vmor %vm211_vm4, %vm212_vm3 }
 0x114   :  { %v207_v63 = vmul.f32 %v2626_v47, %v206_v60  ;;  %2627 = vrsqrt.f32 %v193_v61  ;;  %vm221_vm7 = vweird.f32 %v193_v61 }
 0x116   :  { %v208_v2 = vmul.f32 0.5, %v207_v63  ;;  %v190_v3 = vpop.xlane.xlu1 %189 }
 0x117   :  { %v194_v4 = vmax.f32 %v190_v3, 1e-24 }
 0x118   :  { %v209_v62 = vsub.f32 1.5, %v208_v2 }
 0x119   :  { %2629 = vrsqrt.f32 %v194_v4  ;;  %vm231_vm12 = vweird.f32 %v194_v4 }
 0x11a   :  { %v2628_v5 = vpop.eup %2627  ;;  %v210_v8 = vmul.f32 %v2626_v47, %v209_v62 }
 0x11b   :  { %v216_v9 = vmul.f32 %v2628_v5, %v193_v61  ;;  %v181_v10 = vpop.xlane.xlu0 %180  ;;  %vm222_vm6 = vweird.f32 %v2628_v5 }
 0x11c   :  { %v214_v12 = vsel %vm213_vm5, %v2626_v47, %v210_v8  ;;  %v191_v14 = vmax.f32 %v181_v10, 1e-24  ;;  %vm223_vm9 = vmor %vm221_vm7, %vm222_vm6 }
 0x11d   :  { %v217_v15 = vmul.f32 %v2628_v5, %v216_v9  ;;  %v236_v16 = vmul.f32 %v214_v12, %v2863_v13 }
 0x11e   :  { %2631 = vrsqrt.f32 %v191_v14  ;;  %vm201_vm1 = vweird.f32 %v191_v14 }
 0x11f   :  { %v2630_v19 = vpop.eup %2629  ;;  %v218_v20 = vmul.f32 0.5, %v217_v15  ;;  %v241_v21 = vmul.f32 %v2595_v11, %v236_v16 }
 0x120   :  { %v226_v25 = vmul.f32 %v2630_v19, %v194_v4  ;;  %vm232_vm11 = vweird.f32 %v2630_v19 }
 0x121   :  { %v219_v27 = vsub.f32 1.5, %v218_v20  ;;  %v246_v30 = vadd.f32 %v2596_v18, %v241_v21  ;;  %vm233_vm13 = vmor %vm231_vm12, %vm232_vm11 }
 0x122   :  { %v227_v31 = vmul.f32 %v2630_v19, %v226_v25 }
 0x123   :  { %v220_v32 = vmul.f32 %v2628_v5, %v219_v27  ;;  %vm250_vm8 = vcmp.ge.f32.partialorder %v246_v30, 0.0  ;;  %v254_v33 = vmul.f32 0.01, %v246_v30 }
 0x124   :  { %v2632_v34 = vpop.eup %2631  ;;  %v228_v13 = vmul.f32 0.5, %v227_v31 }
 0x125   :  { %v224_v36 = vsel %vm223_vm9, %v2628_v5, %v220_v32  ;;  %v196_v38 = vmul.f32 %v2632_v34, %v191_v14  ;;  %v258_v40 = vsel %vm250_vm8, %v246_v30, %v254_v33  ;;  %vm202_vm14 = vweird.f32 %v2632_v34 }
 0x126   :  { %v237_v41 = vmul.f32 %v224_v36, %v2885_v26  ;;  %v229_v42 = vsub.f32 1.5, %v228_v13  ;;  %305 = vmatpush.msra.mxu0 %v258_v40  ;;  %v2597_v26 = vld [vmem:[%s3555_s3 + $0x28] ss:$0 sm:$0xff]  ;;  %vm203_vm2 = vmor %vm201_vm1, %vm202_vm14 }
 0x127   :  { %v197_v43 = vmul.f32 %v2632_v34, %v196_v38  ;;  %v265_v4 = vmul.f32 %v2597_v26, %v258_v40 }
 0x128   :  { %v230_v35 = vmul.f32 %v2630_v19, %v229_v42  ;;  %v242_v45 = vmul.f32 %v2595_v11, %v237_v41 }
 0x129   :  { %v198_v37 = vmul.f32 0.5, %v197_v43  ;;  %v271_v8 = vsel %vm178_vm10, %v265_v4, 0.0 }
 0x12a   :  { %v234_v46 = vsel %vm233_vm13, %v2630_v19, %v230_v35  ;;  %v247_v50 = vadd.f32 %v2596_v18, %v242_v45 }
 0x12b   :  { %v199_v51 = vsub.f32 1.5, %v198_v37  ;;  %v238_v52 = vmul.f32 %v234_v46, %v2893_v48 }
 0x12c   :  { %vm251_vm15 = vcmp.ge.f32.partialorder %v247_v50, 0.0  ;;  %v255_v53 = vmul.f32 0.01, %v247_v50 }
 0x12d   :  { %v200_v54 = vmul.f32 %v2632_v34, %v199_v51  ;;  %v243_v56 = vmul.f32 %v2595_v11, %v238_v52 }
 0x12e   :  { %v259_v57 = vsel %vm251_vm15, %v247_v50, %v255_v53 }
 0x12f   :  { %v204_v58 = vsel %vm203_vm2, %v2632_v34, %v200_v54  ;;  %v266_v59 = vmul.f32 %v2597_v26, %v259_v57  ;;  %v248_v47 = vadd.f32 %v2596_v18, %v243_v56 }
 0x130   :  { %v235_v44 = vmul.f32 %v204_v58, %v2900_v55 }
 0x131   :  { %v274_v60 = vsel %vm178_vm10, %v266_v59, 0.0  ;;  %vm252_vm3 = vcmp.ge.f32.partialorder %v248_v47, 0.0  ;;  %v256_v48 = vmul.f32 0.01, %v248_v47  ;;  %v2602_v59 = vld [vmem:[%s3555_s3 + $0x40] ss:$0 sm:$0xff] }
 0x132   :  { %275 = vadd.xlane.f32.xlu2 %v274_v60  ;;  %v240_v61 = vmul.f32 %v2595_v11, %v235_v44  ;;  %v2591_v11 = vld [vmem:[%s3555_s3 + $0x30] ss:$0 sm:$0xff] }
 0x133   :  { %v260_v63 = vsel %vm252_vm3, %v248_v47, %v256_v48  ;;  %v361_v33 = vmul.f32 %v2591_v11, %v2828_v29  ;;  %v359_v41 = vmul.f32 %v2591_v11, %v2819_v24  ;;  %v362_v37 = vmul.f32 %v2591_v11, %v2826_v28  ;;  %v2598_v28 = vld [vmem:[%s3555_s3 + $0x48] ss:$0 sm:$0xff] }
 0x134   :  { %v267_v2 = vmul.f32 %v2597_v26, %v260_v63  ;;  %334 = vmatpush.msra.mxu1 %v260_v63  ;;  %v245_v3 = vadd.f32 %v2596_v18, %v240_v61  ;;  %v360_v29 = vmul.f32 %v2591_v11, %v2817_v23  ;;  %v2955_v23 = vld [vmem:[%s3555_s3 + $0x70] ss:$0 sm:$0xff] }
 0x136   :  { %335 = vmatpush.msra.mxu1 %v259_v57  ;;  %v277_v62 = vsel %vm178_vm10, %v267_v2, 0.0  ;;  %vm249_vm4 = vcmp.ge.f32.partialorder %v245_v3, 0.0  ;;  %v253_v5 = vmul.f32 0.01, %v245_v3 }
 0x137   :  { %2512 = vmatmul.msk.f32.vlgmr.msra.gmra.mxu1 %vm27_vm0, %v2788_v7  ;;  %278 = vadd.xlane.f32.xlu0 %v277_v62 }
 0x138   :  { %v257_v55 = vsel %vm249_vm4, %v245_v3, %v253_v5  ;;  %886 = vmatpush.msrb.mxu1 %v2783_v6 }
 0x139   :  { %v264_v9 = vmul.f32 %v2597_v26, %v257_v55  ;;  %306 = vmatpush.msra.mxu0 %v257_v55 }
 0x13a   :  { %272 = vadd.xlane.f32.xlu2 %v271_v8  ;;  %2510 = vmatmul.msk.f32.vlgmr.msra.gmra.mxu0 %vm27_vm0, %v2771_v1 }
 0x13b   :  { %v268_v10 = vsel %vm178_vm10, %v264_v9, 0.0  ;;  %863 = vmatpush.msrb.mxu0 %v2766_v0  ;;  %887 = vmatpush.msrb.mxu1 %v2788_v7 }
 0x13c   :  { %269 = vadd.xlane.f32.xlu1 %v268_v10 }
 0x13d   :  { %864 = vmatpush.msrb.mxu0 %v2771_v1 }
 0x13f   :  { %2513 = vmatmul.msk.f32.gmra.mxu1 %vm27_vm0, %v2783_v6 }
 0x142   :  { %2511 = vmatmul.msk.f32.gmra.mxu0 %vm27_vm0, %v2766_v0 }
 0x1a5   :  { %v276_v12 = vpop.xlane.xlu2 %275 }
 0x1a6   :  { %v283_v14 = vadd.f32 %v2591_v11, %v276_v12 }
 0x1a8   :  { %413 = vperm.xlu1 %2588, %v283_v14  }
 0x1aa   :  { %v279_v40 = vpop.xlane.xlu0 %278 }
 0x1ab   :  { %v284_v24 = vadd.f32 %v2591_v11, %v279_v40 }
 0x1ad   :  { %v273_v32 = vpop.xlane.xlu2 %272 }
 0x1ae   :  { %v282_v52 = vadd.f32 %v2591_v11, %v273_v32 }
 0x1af   :  { %v270_v15 = vpop.xlane.xlu1 %269 }
 0x1b0   :  { %v281_v16 = vadd.f32 %v2591_v11, %v270_v15 }
 0x1b2   :  { %403 = vperm.xlu0 %2587, %v281_v16  }
 0x1b4   :  { %v337_v7 = vpop.f32.mrf.mxu1 }
 0x1b5   :  { %v345_v18 = vmul.f32 %v2597_v26, %v337_v7 }
 0x1b7   :  { %v353_v1 = vsel %vm178_vm10, %v345_v18, 0.0  ;;  %v308_v19 = vpop.f32.mrf.mxu0 }
 0x1b8   :  { %354 = vadd.xlane.f32.xlu2 %v353_v1  ;;  %v343_v6 = vmul.f32 %v2597_v26, %v308_v19 }
 0x1ba   :  { %v347_v20 = vsel %vm178_vm10, %v343_v6, 0.0 }
 0x1bc   :  { %v340_v0 = vpop.f32.mrf.mxu1 }
 0x1bd   :  { %v346_v25 = vmul.f32 %v2597_v26, %v340_v0 }
 0x1bf   :  { %v311_v21 = vpop.f32.mrf.mxu0  ;;  %v356_v30 = vsel %vm178_vm10, %v346_v25, 0.0 }
 0x1c0   :  { %v344_v27 = vmul.f32 %v2597_v26, %v311_v21 }
 0x1c2   :  { %v350_v31 = vsel %vm178_vm10, %v344_v27, 0.0 }
 0x1d2   :  { %348 = vadd.xlane.f32.xlu1 %v347_v20 }
 0x1da   :  { %357 = vadd.xlane.f32.xlu1 %v356_v30 }
 0x1dc   :  { %351 = vadd.xlane.f32.xlu0 %v350_v31 }
 0x21a   :  { %v414_v38 = vpop.permute.xlu1 %413 }
 0x21b   :  { %v424_v26 = vmul.f32 %v2598_v28, %v414_v38  ;;  %v534_v56 = vmul.f32 %v2955_v23, %v414_v38 }
 0x224   :  { %v404_v35 = vpop.permute.xlu0 %403 }
 0x225   :  { %v422_v2 = vmul.f32 %v2598_v28, %v404_v35  ;;  %v532_v3 = vmul.f32 %v2955_v23, %v404_v35  ;;  %v3012_v35 = vld [vmem:[%s3555_s3 + $0x58] ss:$0 sm:$0xff] }
 0x22b   :  { %v355_v34 = vpop.xlane.xlu2 %354 }
 0x22c   :  { %v365_v13 = vadd.f32 %v361_v33, %v355_v34 }
 0x22e   :  { %v369_v36 = vmul.f32 %v365_v13, %v2867_v17 }
 0x230   :  { %388 = vperm.xlu2 %2586, %v369_v36  }
 0x245   :  { %v349_v42 = vpop.xlane.xlu1 %348 }
 0x246   :  { %v363_v43 = vadd.f32 %v359_v41, %v349_v42  ;;  %v3007_v41 = vld [vmem:[%s3555_s3 + $0x50] ss:$0 sm:$0xff] }
 0x248   :  { %v367_v45 = vmul.f32 %v363_v43, %v2883_v39 }
 0x24a   :  { %378 = vperm.xlu1 %2588, %v367_v45  }
 0x24d   :  { %v358_v46 = vpop.xlane.xlu1 %357 }
 0x24e   :  { %v366_v50 = vadd.f32 %v362_v37, %v358_v46 }
 0x24f   :  { %v352_v51 = vpop.xlane.xlu0 %351 }
 0x250   :  { %v370_v17 = vmul.f32 %v366_v50, %v2873_v22  ;;  %v364_v53 = vadd.f32 %v360_v29, %v352_v51  ;;  %v2600_v22 = vld [vmem:[%s3555_s3 + $0x38] ss:$0 sm:$0xff] }
 0x252   :  { %v368_v54 = vmul.f32 %v364_v53, %v2848_v49  ;;  %408 = vperm.xlu1 %2588, %v282_v52   ;;  %393 = vperm.xlu2 %2586, %v370_v17   ;;  %v2963_v49 = vld [vmem:[%s3555_s3 + $0x60] ss:$0 sm:$0xff] }
 0x254   :  { %383 = vperm.xlu0 %2587, %v368_v54  }
 0x25c   :  { %418 = vperm.xlu0 %2587, %v284_v24  }
 0x28a   :  { %v389_v39 = vpop.permute.xlu2 %388 }
 0x28b   :  { %v399_v57 = vmul.f32 %v2600_v22, %v389_v39  ;;  %v529_v58 = vmul.f32 %v2963_v49, %v389_v39 }
 0x28d   :  { %v428_v47 = vadd.f32 %v424_v26, %v399_v57  ;;  %v2970_v44 = vadd.f32 %v534_v56, %v529_v58 }
 0x28f   :  { %v433_v60 = vadd.f32 %v2602_v59, %v428_v47 }
 0x291   :  { %v437_v48 = vmul.f32 %v433_v60, %v433_v60 }
 0x293   :  { %v445_v61 = vsel %vm27_vm0, %v437_v48, 0.0 }
 0x294   :  { %446 = vadd.xlane.f32.xlu1 %v445_v61 }
 0x2ac   :  { %v2990_v18 = vpop.permute.xlu2 %393 }
 0x2ad   :  { %v400_v6 = vmul.f32 %v2600_v22, %v2990_v18 }
 0x2bc   :  { %v379_v63 = vpop.permute.xlu1 %378 }
 0x2bd   :  { %v397_v4 = vmul.f32 %v2600_v22, %v379_v63  ;;  %v527_v62 = vmul.f32 %v2963_v49, %v379_v63 }
 0x2bf   :  { %v426_v5 = vadd.f32 %v422_v2, %v397_v4  ;;  %v2975_v55 = vadd.f32 %v532_v3, %v527_v62 }
 0x2c1   :  { %v2977_v8 = vadd.f32 %v2602_v59, %v426_v5 }
 0x2c3   :  { %v435_v9 = vmul.f32 %v2977_v8, %v2977_v8 }
 0x2c4   :  { %v2981_v10 = vpop.permute.xlu1 %408 }
 0x2c5   :  { %v439_v11 = vsel %vm27_vm0, %v435_v9, 0.0  ;;  %v423_v14 = vmul.f32 %v2598_v28, %v2981_v10 }
 0x2c6   :  { %440 = vadd.xlane.f32.xlu2 %v439_v11  ;;  %v2984_v12 = vpop.permute.xlu0 %383 }
 0x2c7   :  { %v398_v15 = vmul.f32 %v2600_v22, %v2984_v12 }
 0x2c9   :  { %v427_v16 = vadd.f32 %v423_v14, %v398_v15 }
 0x2cb   :  { %v2988_v7 = vadd.f32 %v2602_v59, %v427_v16 }
 0x2cd   :  { %v436_v1 = vmul.f32 %v2988_v7, %v2988_v7 }
 0x2ce   :  { %v2994_v19 = vpop.permute.xlu0 %418 }
 0x2cf   :  { %v425_v20 = vmul.f32 %v2598_v28, %v2994_v19  ;;  %v442_v0 = vsel %vm27_vm0, %v436_v1, 0.0 }
 0x2d0   :  { %443 = vadd.xlane.f32.xlu0 %v442_v0 }
 0x2d1   :  { %v429_v21 = vadd.f32 %v425_v20, %v400_v6 }
 0x2d3   :  { %v2999_v25 = vadd.f32 %v2602_v59, %v429_v21 }
 0x2d5   :  { %v438_v27 = vmul.f32 %v2999_v25, %v2999_v25 }
 0x2d7   :  { %v448_v30 = vsel %vm27_vm0, %v438_v27, 0.0 }
 0x2d8   :  { %449 = vadd.xlane.f32.xlu2 %v448_v30 }
 0x307   :  { %v447_v31 = vpop.xlane.xlu1 %446 }
 0x308   :  { %v453_v32 = vmax.f32 %v447_v31, 1e-24 }
 0x30a   :  { %2633 = vrsqrt.f32 %v453_v32  ;;  %vm481_vm6 = vweird.f32 %v453_v32 }
 0x310   :  { %v2634_v33 = vpop.eup %2633 }
 0x311   :  { %v476_v34 = vmul.f32 %v2634_v33, %v453_v32  ;;  %vm482_vm5 = vweird.f32 %v2634_v33 }
 0x312   :  { %vm483_vm7 = vmor %vm481_vm6, %vm482_vm5 }
 0x313   :  { %v477_v13 = vmul.f32 %v2634_v33, %v476_v34 }
 0x315   :  { %v478_v36 = vmul.f32 0.5, %v477_v13 }
 0x317   :  { %v479_v38 = vsub.f32 1.5, %v478_v36 }
 0x319   :  { %v480_v40 = vmul.f32 %v2634_v33, %v479_v38 }
 0x31b   :  { %v484_v42 = vsel %vm483_vm7, %v2634_v33, %v480_v40 }
 0x31c   :  { %v497_v43 = vmul.f32 %v484_v42, %v433_v60 }
 0x31e   :  { %v502_v45 = vmul.f32 %v3007_v41, %v497_v43 }
 0x320   :  { %v507_v37 = vadd.f32 %v3012_v35, %v502_v45 }
 0x322   :  { %vm511_vm8 = vcmp.ge.f32.partialorder %v507_v37, 0.0  ;;  %v515_v46 = vmul.f32 0.01, %v507_v37 }
 0x324   :  { %v3016_v29 = vsel %vm511_vm8, %v507_v37, %v515_v46 }
 0x325   :  { %v637_v50 = vsel %vm27_vm0, %v3016_v29, -inf }
 0x326   :  { %638 = vmax.xlane.f32.xlu0 %v637_v50 }
 0x339   :  { %v441_v51 = vpop.xlane.xlu2 %440 }
 0x33a   :  { %v451_v52 = vmax.f32 %v441_v51, 1e-24 }
 0x33c   :  { %2635 = vrsqrt.f32 %v451_v52  ;;  %vm461_vm11 = vweird.f32 %v451_v52 }
 0x342   :  { %v2636_v17 = vpop.eup %2635 }
 0x343   :  { %v456_v53 = vmul.f32 %v2636_v17, %v451_v52  ;;  %v444_v54 = vpop.xlane.xlu0 %443  ;;  %vm462_vm9 = vweird.f32 %v2636_v17 }
 0x344   :  { %v452_v24 = vmax.f32 %v444_v54, 1e-24  ;;  %vm463_vm12 = vmor %vm461_vm11, %vm462_vm9 }
 0x345   :  { %v457_v28 = vmul.f32 %v2636_v17, %v456_v53 }
 0x346   :  { %2637 = vrsqrt.f32 %v452_v24  ;;  %vm471_vm15 = vweird.f32 %v452_v24 }
 0x347   :  { %v458_v22 = vmul.f32 0.5, %v457_v28  ;;  %v528_v28 = vmul.f32 %v2963_v49, %v2984_v12 }
 0x349   :  { %v459_v39 = vsub.f32 1.5, %v458_v22 }
 0x34b   :  { %v460_v26 = vmul.f32 %v2636_v17, %v459_v39  ;;  %v450_v56 = vpop.xlane.xlu2 %449  ;;  %v533_v39 = vmul.f32 %v2955_v23, %v2981_v10 }
 0x34c   :  { %v2638_v57 = vpop.eup %2637  ;;  %v454_v58 = vmax.f32 %v450_v56, 1e-24  ;;  %v2605_v56 = vld [vmem:[%s3555_s3 + $0x68] ss:$0 sm:$0xff] }
 0x34d   :  { %v464_v59 = vsel %vm463_vm12, %v2636_v17, %v460_v26  ;;  %v466_v47 = vmul.f32 %v2638_v57, %v452_v24  ;;  %vm472_vm13 = vweird.f32 %v2638_v57  ;;  %v537_v26 = vadd.f32 %v533_v39, %v528_v28 }
 0x34e   :  { %v495_v60 = vmul.f32 %v464_v59, %v2977_v8  ;;  %2639 = vrsqrt.f32 %v454_v58  ;;  %vm473_vm1 = vmor %vm471_vm15, %vm472_vm13  ;;  %vm491_vm3 = vweird.f32 %v454_v58 }
 0x34f   :  { %v467_v48 = vmul.f32 %v2638_v57, %v466_v47  ;;  %v3058_v59 = vadd.f32 %v2605_v56, %v537_v26  ;;  %v530_v47 = vmul.f32 %v2963_v49, %v2990_v18 }
 0x350   :  { %v500_v61 = vmul.f32 %v3007_v41, %v495_v60 }
 0x351   :  { %v468_v63 = vmul.f32 0.5, %v467_v48  ;;  %v546_v60 = vmul.f32 %v3058_v59, %v3058_v59 }
 0x352   :  { %v505_v2 = vadd.f32 %v3012_v35, %v500_v61 }
 0x353   :  { %v469_v3 = vsub.f32 1.5, %v468_v63  ;;  %v552_v48 = vsel %vm178_vm10, %v546_v60, 0.0  ;;  %v3071_v63 = vadd.f32 %v2605_v56, %v2975_v55 }
 0x354   :  { %v2640_v4 = vpop.eup %2639  ;;  %vm509_vm14 = vcmp.ge.f32.partialorder %v505_v2, 0.0  ;;  %v513_v62 = vmul.f32 0.01, %v505_v2 }
 0x355   :  { %v470_v5 = vmul.f32 %v2638_v57, %v469_v3  ;;  %v486_v9 = vmul.f32 %v2640_v4, %v454_v58  ;;  %vm492_vm2 = vweird.f32 %v2640_v4  ;;  %v535_v58 = vmul.f32 %v2955_v23, %v2994_v19 }
 0x356   :  { %v517_v11 = vsel %vm509_vm14, %v505_v2, %v513_v62  ;;  %vm493_vm4 = vmor %vm491_vm3, %vm492_vm2  ;;  %v545_v49 = vmul.f32 %v3071_v63, %v3071_v63  ;;  %v3077_v2 = vadd.f32 %v2605_v56, %v2970_v44 }
 0x357   :  { %v474_v14 = vsel %vm473_vm1, %v2638_v57, %v470_v5  ;;  %v487_v15 = vmul.f32 %v2640_v4, %v486_v9  ;;  %v631_v8 = vsel %vm27_vm0, %v517_v11, -inf  ;;  %v539_v10 = vadd.f32 %v535_v58, %v530_v47 }
 0x358   :  { %v496_v16 = vmul.f32 %v474_v14, %v2988_v7  ;;  %632 = vmax.xlane.f32.xlu1 %v631_v8  ;;  %v549_v18 = vsel %vm178_vm10, %v545_v49, 0.0  ;;  %v547_v3 = vmul.f32 %v3077_v2, %v3077_v2 }
 0x359   :  { %v488_v1 = vmul.f32 0.5, %v487_v15  ;;  %v3065_v61 = vadd.f32 %v2605_v56, %v539_v10 }
 0x35a   :  { %v501_v6 = vmul.f32 %v3007_v41, %v496_v16 }
 0x35b   :  { %v489_v20 = vsub.f32 1.5, %v488_v1  ;;  %v548_v23 = vmul.f32 %v3065_v61, %v3065_v61 }
 0x35c   :  { %v506_v0 = vadd.f32 %v3012_v35, %v501_v6 }
 0x35d   :  { %v490_v21 = vmul.f32 %v2640_v4, %v489_v20  ;;  %v558_v19 = vsel %vm178_vm10, %v548_v23, 0.0 }
 0x35e   :  { %vm510_vm5 = vcmp.ge.f32.partialorder %v506_v0, 0.0  ;;  %v514_v27 = vmul.f32 0.01, %v506_v0 }
 0x35f   :  { %v494_v30 = vsel %vm493_vm4, %v2640_v4, %v490_v21  ;;  %v555_v4 = vsel %vm178_vm10, %v547_v3, 0.0 }
 0x360   :  { %v498_v31 = vmul.f32 %v494_v30, %v2999_v25  ;;  %v518_v32 = vsel %vm510_vm5, %v506_v0, %v514_v27 }
 0x361   :  { %v634_v33 = vsel %vm27_vm0, %v518_v32, -inf }
 0x362   :  { %635 = vmax.xlane.f32.xlu2 %v634_v33  ;;  %v503_v7 = vmul.f32 %v3007_v41, %v498_v31 }
 0x364   :  { %v508_v34 = vadd.f32 %v3012_v35, %v503_v7 }
 0x366   :  { %vm512_vm6 = vcmp.ge.f32.partialorder %v508_v34, 0.0  ;;  %v516_v13 = vmul.f32 0.01, %v508_v34 }
 0x368   :  { %v520_v36 = vsel %vm512_vm6, %v508_v34, %v516_v13 }
 0x369   :  { %v640_v38 = vsel %vm27_vm0, %v520_v36, -inf }
 0x36a   :  { %641 = vmax.xlane.f32.xlu1 %v640_v38 }
 0x399   :  { %v639_v40 = vpop.xlane.xlu0 %638 }
 0x39a   :  { %v645_v42 = vsub.f32 %v3016_v29, %v639_v40 }
 0x39c   :  { %v651_v43 = vmul.f32 1.442695, %v645_v42 }
 0x39e   :  { %2641 = vpow2.f32 %v651_v43 }
 0x3a4   :  { %v3033_v25 = vpop.eup %2641 }
 0x3a5   :  { %v661_v45 = vsel %vm27_vm0, %v3033_v25, 0.0 }
 0x3a6   :  { %662 = vadd.xlane.f32.xlu2 %v661_v45 }
 0x3cb   :  { %v633_v41 = vpop.xlane.xlu1 %632 }
 0x3cc   :  { %v643_v37 = vsub.f32 %v517_v11, %v633_v41 }
 0x3ce   :  { %v647_v35 = vmul.f32 1.442695, %v643_v37 }
 0x3d0   :  { %2643 = vpow2.f32 %v647_v35 }
 0x3d5   :  { %v636_v46 = vpop.xlane.xlu2 %635 }
 0x3d6   :  { %v3037_v50 = vpop.eup %2643  ;;  %v644_v51 = vsub.f32 %v518_v32, %v636_v46 }
 0x3d7   :  { %v655_v52 = vsel %vm27_vm0, %v3037_v50, 0.0 }
 0x3d8   :  { %v649_v29 = vmul.f32 1.442695, %v644_v51  ;;  %656 = vadd.xlane.f32.xlu0 %v655_v52 }
 0x3da   :  { %2645 = vpow2.f32 %v649_v29 }
 0x3dd   :  { %v642_v17 = vpop.xlane.xlu1 %641 }
 0x3de   :  { %v646_v53 = vsub.f32 %v520_v36, %v642_v17 }
 0x3e0   :  { %v3041_v54 = vpop.eup %2645  ;;  %v653_v24 = vmul.f32 1.442695, %v646_v53 }
 0x3e1   :  { %v658_v22 = vsel %vm27_vm0, %v3041_v54, 0.0 }
 0x3e2   :  { %2647 = vpow2.f32 %v653_v24  ;;  %659 = vadd.xlane.f32.xlu1 %v658_v22 }
 0x3e8   :  { %v3052_v57 = vpop.eup %2647 }
 0x3e9   :  { %v664_v12 = vsel %vm27_vm0, %v3052_v57, 0.0 }
 0x3ea   :  { %665 = vadd.xlane.f32.xlu0 %v664_v12 }
 0x3f2   :  { %553 = vadd.xlane.f32.xlu0 %v552_v48 }
 0x3fa   :  { %559 = vadd.xlane.f32.xlu0 %v558_v19 }
 0x402   :  { %550 = vadd.xlane.f32.xlu0 %v549_v18 }
 0x40a   :  { %556 = vadd.xlane.f32.xlu0 %v555_v4 }
 0x419   :  { %v663_v62 = vpop.xlane.xlu2 %662 }
 0x41a   :  { %2649 = vrcp.f32 %v663_v62  ;;  %v708_v11 = vand.u32 2147483648, %v663_v62  ;;  %v706_v15 = vand.u32 2147483647, %v663_v62  ;;  %vm702_vm8 = vweird.f32 %v663_v62 }
 0x41c   :  { %v709_v44 = vor.u32 1.1754944e-38, %v708_v11  ;;  %vm707_vm11 = vcmp.eq.f32.partialorder %v706_v15, 8.507059e+37  ;;  %v2607_v15 = vld [vmem:[%s3555_s3 + $0x80] ss:$0 sm:$0xff] }
 0x420   :  { %v2650_v55 = vpop.eup %2649 }
 0x421   :  { %v698_v5 = vmul.f32 %v2650_v55, %v663_v62  ;;  %vm703_vm7 = vweird.f32 %v2650_v55 }
 0x422   :  { %vm704_vm9 = vmor %vm702_vm8, %vm703_vm7 }
 0x423   :  { %v699_v9 = vsub.f32 1.0, %v698_v5  ;;  %v2606_v5 = vld [vmem:[%s3555_s3 + $0x78] ss:$0 sm:$0xff] }
 0x425   :  { %v700_v14 = vmul.f32 %v2650_v55, %v699_v9 }
 0x427   :  { %v701_v8 = vadd.f32 %v2650_v55, %v700_v14 }
 0x429   :  { %v705_v16 = vsel %vm704_vm9, %v2650_v55, %v701_v8 }
 0x42a   :  { %v710_v1 = vsel %vm707_vm11, %v709_v44, %v705_v16 }
 0x42b   :  { %v3083_v6 = vmul.f32 %v3033_v25, %v710_v1 }
 0x42d   :  { %759 = vxpose.xlu1.b32.start [1/2] (short) (narrow) %v3083_v6, 16 }
 0x44b   :  { %v657_v20 = vpop.xlane.xlu0 %656 }
 0x44c   :  { %2651 = vrcp.f32 %v657_v20  ;;  %v678_v31 = vand.u32 2147483648, %v657_v20  ;;  %v676_v33 = vand.u32 2147483647, %v657_v20  ;;  %vm672_vm13 = vweird.f32 %v657_v20 }
 0x44e   :  { %v679_v34 = vor.u32 1.1754944e-38, %v678_v31  ;;  %vm677_vm15 = vcmp.eq.f32.partialorder %v676_v33, 8.507059e+37 }
 0x452   :  { %v2652_v0 = vpop.eup %2651 }
 0x453   :  { %v668_v21 = vmul.f32 %v2652_v0, %v657_v20  ;;  %vm673_vm12 = vweird.f32 %v2652_v0 }
 0x454   :  { %vm674_vm14 = vmor %vm672_vm13, %vm673_vm12 }
 0x455   :  { %v669_v27 = vsub.f32 1.0, %v668_v21  ;;  %v660_v30 = vpop.xlane.xlu1 %659 }
 0x456   :  { %2653 = vrcp.f32 %v660_v30  ;;  %v693_v45 = vand.u32 2147483648, %v660_v30  ;;  %v691_v37 = vand.u32 2147483647, %v660_v30  ;;  %vm687_vm2 = vweird.f32 %v660_v30 }
 0x457   :  { %v670_v32 = vmul.f32 %v2652_v0, %v669_v27 }
 0x458   :  { %v694_v51 = vor.u32 1.1754944e-38, %v693_v45  ;;  %vm692_vm4 = vcmp.eq.f32.partialorder %v691_v37, 8.507059e+37 }
 0x459   :  { %v671_v7 = vadd.f32 %v2652_v0, %v670_v32 }
 0x45b   :  { %v675_v13 = vsel %vm674_vm14, %v2652_v0, %v671_v7 }
 0x45c   :  { %v2654_v36 = vpop.eup %2653  ;;  %v680_v38 = vsel %vm677_vm15, %v679_v34, %v675_v13 }
 0x45d   :  { %v3087_v40 = vmul.f32 %v3037_v50, %v680_v38  ;;  %v683_v42 = vmul.f32 %v2654_v36, %v660_v30  ;;  %v666_v43 = vpop.xlane.xlu0 %665  ;;  %vm688_vm1 = vweird.f32 %v2654_v36 }
 0x45e   :  { %2655 = vrcp.f32 %v666_v43  ;;  %vm689_vm3 = vmor %vm687_vm2, %vm688_vm1  ;;  %v723_v22 = vand.u32 2147483648, %v666_v43  ;;  %v721_v26 = vand.u32 2147483647, %v666_v43  ;;  %vm717_vm6 = vweird.f32 %v666_v43 }
 0x45f   :  { %v684_v25 = vsub.f32 1.0, %v683_v42  ;;  %727 = vxpose.xlu2.b32.start [1/2] (short) (narrow) %v3087_v40, 16 }
 0x460   :  { %v724_v58 = vor.u32 1.1754944e-38, %v723_v22  ;;  %vm722_vm8 = vcmp.eq.f32.partialorder %v721_v26, 8.507059e+37 }
 0x461   :  { %v685_v41 = vmul.f32 %v2654_v36, %v684_v25 }
 0x463   :  { %v686_v35 = vadd.f32 %v2654_v36, %v685_v41 }
 0x464   :  { %v2656_v46 = vpop.eup %2655 }
 0x465   :  { %v690_v52 = vsel %vm689_vm3, %v2654_v36, %v686_v35  ;;  %v713_v29 = vmul.f32 %v2656_v46, %v666_v43  ;;  %v554_v50 = vpop.xlane.xlu0 %553  ;;  %vm718_vm5 = vweird.f32 %v2656_v46 }
 0x466   :  { %v695_v17 = vsel %vm692_vm4, %v694_v51, %v690_v52  ;;  %v562_v53 = vmax.f32 %v554_v50, 1e-24  ;;  %vm719_vm7 = vmor %vm717_vm6, %vm718_vm5 }
 0x467   :  { %v3091_v24 = vmul.f32 %v3041_v54, %v695_v17  ;;  %v714_v28 = vsub.f32 1.0, %v713_v29 }
 0x468   :  { %2657 = vrsqrt.f32 %v562_v53  ;;  %vm581_vm11 = vweird.f32 %v562_v53 }
 0x469   :  { %v715_v39 = vmul.f32 %v2656_v46, %v714_v28  ;;  %728 = vxpose.xlu2.b32.end [2/2] (short) (narrow) %v3091_v24, 16  ;;  %2526 = vmatpush.xpose.msk.msra.mxu0 %vm27_vm0, %v3091_v24 }
 0x46b   :  { %v716_v56 = vadd.f32 %v2656_v46, %v715_v39 }
 0x46d   :  { %v720_v12 = vsel %vm719_vm7, %v2656_v46, %v716_v56  ;;  %v560_v47 = vpop.xlane.xlu0 %559  ;;  %2527 = vmatpush.xpose.msk.msra.mxu0 %vm27_vm0, %v3087_v40 }
 0x46e   :  { %v2658_v54 = vpop.eup %2657  ;;  %v725_v10 = vsel %vm722_vm8, %v724_v58, %v720_v12  ;;  %v564_v60 = vmax.f32 %v560_v47, 1e-24 }
 0x46f   :  { %v3099_v48 = vmul.f32 %v3052_v57, %v725_v10  ;;  %v576_v23 = vmul.f32 %v2658_v54, %v562_v53  ;;  %vm582_vm9 = vweird.f32 %v2658_v54  ;;  %v1234_v10 = vld [vmem:[%s3555_s3 + $0xc0] sm:$0xff] }
 0x470   :  { %2659 = vrsqrt.f32 %v564_v60  ;;  %vm583_vm12 = vmor %vm581_vm11, %vm582_vm9  ;;  %vm601_vm14 = vweird.f32 %v564_v60 }
 0x471   :  { %v577_v19 = vmul.f32 %v2658_v54, %v576_v23  ;;  %760 = vxpose.xlu1.b32.end [2/2] (short) (narrow) %v3099_v48, 16  ;;  %2530 = vmatpush.xpose.msk.msra.mxu1 %vm27_vm0, %v3099_v48  ;;  %v1232_v23 = vld [vmem:[%s3555_s3 + $0xb0] sm:$0xff] }
 0x473   :  { %v578_v49 = vmul.f32 0.5, %v577_v19  ;;  %v1454_v19 = vld [vmem:[%s3555_s3 + $0x120] sm:$0xff] }
 0x475   :  { %v579_v18 = vsub.f32 1.5, %v578_v49  ;;  %2531 = vmatpush.xpose.msk.msra.mxu1 %vm27_vm0, %v3083_v6  ;;  %v551_v3 = vpop.xlane.xlu0 %550  ;;  %v1453_v49 = vld [vmem:[%s3555_s3 + $0x118] sm:$0xff] }
 0x476   :  { %v2660_v4 = vpop.eup %2659  ;;  %v561_v62 = vmax.f32 %v551_v3, 1e-24  ;;  %v1451_v3 = vld [vmem:[%s3555_s3 + $0x108] sm:$0xff] }
 0x477   :  { %v580_v55 = vmul.f32 %v2658_v54, %v579_v18  ;;  %v596_v57 = vmul.f32 %v2660_v4, %v564_v60  ;;  %vm602_vm13 = vweird.f32 %v2660_v4  ;;  %v1233_v60 = vld [vmem:[%s3555_s3 + $0xb8] sm:$0xff]  ;;  %v1452_v18 = vld [vmem:[%s3555_s3 + $0x110] sm:$0xff] }
 0x478   :  { %2661 = vrsqrt.f32 %v561_v62  ;;  %vm603_vm15 = vmor %vm601_vm14, %vm602_vm13  ;;  %vm571_vm3 = vweird.f32 %v561_v62 }
 0x479   :  { %v584_v9 = vsel %vm583_vm12, %v2658_v54, %v580_v55  ;;  %v597_v11 = vmul.f32 %v2660_v4, %v596_v57  ;;  %v1235_v54 = vld [vmem:[%s3555_s3 + $0xc8] sm:$0xff] }
 0x47a   :  { %v606_v14 = vmul.f32 %v584_v9, %v3058_v59 }
 0x47b   :  { %v598_v8 = vmul.f32 0.5, %v597_v11 }
 0x47c   :  { %v611_v44 = vmul.f32 %v2606_v5, %v606_v14 }
 0x47d   :  { %v599_v16 = vsub.f32 1.5, %v598_v8  ;;  %v557_v1 = vpop.xlane.xlu0 %556 }
 0x47e   :  { %v2662_v20 = vpop.eup %2661  ;;  %v563_v0 = vmax.f32 %v557_v1, 1e-24  ;;  %v616_v21 = vadd.f32 %v2607_v15, %v611_v44 }
 0x47f   :  { %v600_v27 = vmul.f32 %v2660_v4, %v599_v16  ;;  %v566_v30 = vmul.f32 %v2662_v20, %v561_v62  ;;  %vm572_vm2 = vweird.f32 %v2662_v20 }
 0x480   :  { %2663 = vrsqrt.f32 %v563_v0  ;;  %vm620_vm1 = vcmp.ge.f32.partialorder %v616_v21, 0.0  ;;  %v624_v31 = vmul.f32 0.01, %v616_v21  ;;  %vm573_vm4 = vmor %vm571_vm3, %vm572_vm2  ;;  %vm591_vm7 = vweird.f32 %v563_v0 }
 0x481   :  { %v604_v59 = vsel %vm603_vm15, %v2660_v4, %v600_v27  ;;  %v567_v32 = vmul.f32 %v2662_v20, %v566_v30  ;;  %v1230_v27 = vld [vmem:[%s3555_s3 + $0xa0] sm:$0xff]  ;;  %v1229_v30 = vld [vmem:[%s3555_s3 + $0x98] sm:$0xff] }
 0x482   :  { %v628_v33 = vsel %vm620_vm1, %v616_v21, %v624_v31  ;;  %v608_v7 = vmul.f32 %v604_v59, %v3065_v61  ;;  %v1228_v31 = vld [vmem:[%s3555_s3 + $0x90] sm:$0xff]  ;;  %v1227_v59 = vld [vmem:[%s3555_s3 + $0x88] sm:$0xff] }
 0x483   :  { %v568_v34 = vmul.f32 0.5, %v567_v32  ;;  %811 = vmatpush.msra.mxu2 %v628_v33  ;;  %v1449_v32 = vld [vmem:[%s3555_s3 + $0xf8] sm:$0xff]  ;;  %v1448_v33 = vld [vmem:[%s3555_s3 + $0xf0] sm:$0xff] }
 0x484   :  { %v613_v13 = vmul.f32 %v2606_v5, %v608_v7  ;;  %v1447_v7 = vld [vmem:[%s3555_s3 + $0xe8] sm:$0xff] }
 0x485   :  { %v569_v36 = vsub.f32 1.5, %v568_v34  ;;  %v1446_v34 = vld [vmem:[%s3555_s3 + $0xe0] sm:$0xff] }
 0x486   :  { %v2664_v38 = vpop.eup %2663  ;;  %v618_v42 = vadd.f32 %v2607_v15, %v613_v13 }
 0x487   :  { %v570_v43 = vmul.f32 %v2662_v20, %v569_v36  ;;  %v586_v25 = vmul.f32 %v2664_v38, %v563_v0  ;;  %vm592_vm6 = vweird.f32 %v2664_v38 }
 0x488   :  { %vm622_vm5 = vcmp.ge.f32.partialorder %v618_v42, 0.0  ;;  %v626_v45 = vmul.f32 0.01, %v618_v42  ;;  %vm593_vm8 = vmor %vm591_vm7, %vm592_vm6 }
 0x489   :  { %v574_v41 = vsel %vm573_vm4, %v2662_v20, %v570_v43  ;;  %v587_v37 = vmul.f32 %v2664_v38, %v586_v25 }
 0x48a   :  { %v630_v35 = vsel %vm622_vm5, %v618_v42, %v626_v45  ;;  %v605_v46 = vmul.f32 %v574_v41, %v3071_v63 }
 0x48b   :  { %v588_v51 = vmul.f32 0.5, %v587_v37  ;;  %840 = vmatpush.msra.mxu3 %v630_v35 }
 0x48c   :  { %v610_v61 = vmul.f32 %v2606_v5, %v605_v46 }
 0x48d   :  { %v589_v52 = vsub.f32 1.5, %v588_v51 }
 0x48e   :  { %v615_v29 = vadd.f32 %v2607_v15, %v610_v61 }
 0x48f   :  { %v590_v50 = vmul.f32 %v2664_v38, %v589_v52 }
 0x490   :  { %vm619_vm9 = vcmp.ge.f32.partialorder %v615_v29, 0.0  ;;  %v623_v17 = vmul.f32 0.01, %v615_v29 }
 0x491   :  { %v594_v53 = vsel %vm593_vm8, %v2664_v38, %v590_v50 }
 0x492   :  { %v627_v28 = vsel %vm619_vm9, %v615_v29, %v623_v17  ;;  %v607_v22 = vmul.f32 %v594_v53, %v3077_v2 }
 0x493   :  { %812 = vmatpush.msra.mxu2 %v627_v28 }
 0x494   :  { %v612_v39 = vmul.f32 %v2606_v5, %v607_v22 }
 0x495   :  { %915 = vmatpush.msrb.mxu2 %v3091_v24 }
 0x496   :  { %v617_v63 = vadd.f32 %v2607_v15, %v612_v39 }
 0x497   :  { %916 = vmatpush.msrb.mxu2 %v3087_v40 }
 0x498   :  { %vm621_vm11 = vcmp.ge.f32.partialorder %v617_v63, 0.0  ;;  %v625_v26 = vmul.f32 0.01, %v617_v63 }
 0x49a   :  { %v629_v56 = vsel %vm621_vm11, %v617_v63, %v625_v26 }
 0x49b   :  { %841 = vmatpush.msra.mxu3 %v629_v56 }
 0x49d   :  { %944 = vmatpush.msrb.mxu3 %v3099_v48 }
 0x49f   :  { %945 = vmatpush.msrb.mxu3 %v3083_v6 }
 0x4fa   :  { %v743_v58 = vpop.trf.xlu2 }
 0x4fb   :  { %2514 = vmatmul.msk.f32.vlgmr.msra.gmra.mxu2 %vm27_vm0, %v743_v58  ;;  %2518 = vmatmul.msk.f32.vlgmr.msrb.gmra.mxu0 %vm27_vm0, %v743_v58 }
 0x4fc   :  { %1256 = vmatpush.msrb.mxu0 %v1235_v54 }
 0x4fe   :  { %1257 = vmatpush.msrb.mxu0 %v1234_v10 }
 0x500   :  { %1258 = vmatpush.msrb.mxu0 %v1233_v60 }
 0x502   :  { %v744_v2 = vpop.trf.xlu2  ;;  %1259 = vmatpush.msrb.mxu0 %v1232_v23 }
 0x503   :  { %2515 = vmatmul.msk.f32.gmra.mxu2 %vm27_vm0, %v744_v2  ;;  %2519 = vmatmul.msk.f32.gmra.mxu0 %vm27_vm0, %v744_v2 }
 0x50b   :  { %2528 = vmatmul.msk.f32.vlgmr.msra.gmra.mxu0 %vm27_vm0, %v3087_v40 }
 0x50c   :  { %1469 = vmatpush.msra.mxu0 %v1454_v19 }
 0x50d   :  { %v775_v12 = vpop.trf.xlu1 }
 0x50e   :  { %2516 = vmatmul.msk.f32.vlgmr.msra.gmra.mxu3 %vm27_vm0, %v775_v12  ;;  %2520 = vmatmul.msk.f32.vlgmr.msrb.gmra.mxu1 %vm27_vm0, %v775_v12 }
 0x50f   :  { %1285 = vmatpush.msrb.mxu1 %v1235_v54  ;;  %1470 = vmatpush.msra.mxu0 %v1453_v49 }
 0x511   :  { %1286 = vmatpush.msrb.mxu1 %v1234_v10  ;;  %1471 = vmatpush.msra.mxu0 %v1452_v18 }
 0x513   :  { %2529 = vmatmul.msk.f32.gmra.mxu0 %vm27_vm0, %v3091_v24  ;;  %1287 = vmatpush.msrb.mxu1 %v1233_v60 }
 0x514   :  { %1472 = vmatpush.msra.mxu0 %v1451_v3 }
 0x515   :  { %v776_v47 = vpop.trf.xlu1  ;;  %1288 = vmatpush.msrb.mxu1 %v1232_v23 }
 0x516   :  { %2517 = vmatmul.msk.f32.gmra.mxu3 %vm27_vm0, %v776_v47  ;;  %2521 = vmatmul.msk.f32.gmra.mxu1 %vm27_vm0, %v776_v47 }
 0x51e   :  { %2532 = vmatmul.msk.f32.vlgmr.msra.gmra.mxu1 %vm27_vm0, %v3083_v6 }
 0x51f   :  { %1492 = vmatpush.msra.mxu1 %v1454_v19 }
 0x521   :  { %1493 = vmatpush.msra.mxu1 %v1453_v49 }
 0x523   :  { %1494 = vmatpush.msra.mxu1 %v1452_v18 }
 0x525   :  { %1495 = vmatpush.msra.mxu1 %v1451_v3 }
 0x526   :  { %2533 = vmatmul.msk.f32.gmra.mxu1 %vm27_vm0, %v3099_v48 }
 0x578   :  { %v866_v4 = vpop.f32.mrf.mxu0 }
 0x579   :  { %2522 = vmatmul.msk.f32.vlgmr.msrb.gmra.mxu2 %vm27_vm0, %v866_v4 }
 0x57e   :  { %v814_v62 = vpop.f32.mrf.mxu2 }
 0x57f   :  { %2538 = vmatmul.msk.f32.vlgmr.msrb.gmra.mxu0 %vm178_vm10, %v814_v62 }
 0x580   :  { %v869_v55 = vpop.f32.mrf.mxu0 }
 0x581   :  { %2523 = vmatmul.msk.f32.gmra.mxu2 %vm27_vm0, %v869_v55 }
 0x586   :  { %v817_v57 = vpop.f32.mrf.mxu2 }
 0x587   :  { %2539 = vmatmul.msk.f32.gmra.mxu0 %vm178_vm10, %v817_v57  ;;  %1125 = vmatpush.msra.mxu2 %v817_v57 }
 0x589   :  { %1126 = vmatpush.msra.mxu2 %v814_v62 }
 0x58b   :  { %v889_v5 = vpop.f32.mrf.mxu1  ;;  %1314 = vmatpush.msrb.mxu2 %v1230_v27 }
 0x58c   :  { %2524 = vmatmul.msk.f32.vlgmr.msrb.gmra.mxu3 %vm27_vm0, %v889_v5 }
 0x58d   :  { %1315 = vmatpush.msrb.mxu2 %v1229_v30 }
 0x58f   :  { %2546 = vmatmul.msk.f32.vlgmr.msra.gmra.mxu0 %vm178_vm10, %v814_v62  ;;  %1316 = vmatpush.msrb.mxu2 %v1228_v31 }
 0x591   :  { %v843_v9 = vpop.f32.mrf.mxu3  ;;  %1317 = vmatpush.msrb.mxu2 %v1227_v59 }
 0x592   :  { %2540 = vmatmul.msk.f32.vlgmr.msrb.gmra.mxu1 %vm178_vm10, %v843_v9 }
 0x593   :  { %v892_v11 = vpop.f32.mrf.mxu1 }
 0x594   :  { %2525 = vmatmul.msk.f32.gmra.mxu3 %vm27_vm0, %v892_v11 }
 0x597   :  { %2547 = vmatmul.msk.f32.gmra.mxu0 %vm178_vm10, %v817_v57 }
 0x599   :  { %v846_v14 = vpop.f32.mrf.mxu3 }
 0x59a   :  { %1154 = vmatpush.msra.mxu3 %v846_v14  ;;  %2541 = vmatmul.msk.f32.gmra.mxu1 %vm178_vm10, %v846_v14 }
 0x59c   :  { %1155 = vmatpush.msra.mxu3 %v843_v9 }
 0x59e   :  { %1343 = vmatpush.msrb.mxu3 %v1230_v27 }
 0x5a0   :  { %1344 = vmatpush.msrb.mxu3 %v1229_v30 }
 0x5a2   :  { %2548 = vmatmul.msk.f32.vlgmr.msra.gmra.mxu1 %vm178_vm10, %v843_v9  ;;  %1345 = vmatpush.msrb.mxu3 %v1228_v31 }
 0x5a4   :  { %1346 = vmatpush.msrb.mxu3 %v1227_v59 }
 0x5aa   :  { %2549 = vmatmul.msk.f32.gmra.mxu1 %vm178_vm10, %v846_v14 }
 0x5fc   :  { %v3172_v15 = vpop.f32.mrf.mxu2 }
 0x5fd   :  { %v1093_v8 = vsel %vm27_vm0, %v3172_v15, 0.0  ;;  %2534 = vmatmul.msk.f32.vlgmr.msra.gmra.mxu2 %vm27_vm0, %v3172_v15 }
 0x5fe   :  { %1094 = vadd.xlane.f32.xlu0 %v1093_v8  ;;  %1515 = vmatpush.msra.mxu2 %v1449_v32 }
 0x600   :  { %1516 = vmatpush.msra.mxu2 %v1448_v33 }
 0x602   :  { %1517 = vmatpush.msra.mxu2 %v1447_v7 }
 0x604   :  { %v3178_v44 = vpop.f32.mrf.mxu2  ;;  %1518 = vmatpush.msra.mxu2 %v1446_v34 }
 0x605   :  { %v1096_v16 = vsel %vm27_vm0, %v3178_v44, 0.0  ;;  %2535 = vmatmul.msk.f32.gmra.mxu2 %vm27_vm0, %v3178_v44 }
 0x606   :  { %1097 = vadd.xlane.f32.xlu2 %v1096_v16 }
 0x60f   :  { %v3184_v1 = vpop.f32.mrf.mxu3 }
 0x610   :  { %2536 = vmatmul.msk.f32.vlgmr.msra.gmra.mxu3 %vm27_vm0, %v3184_v1  ;;  %v1099_v20 = vsel %vm27_vm0, %v3184_v1, 0.0 }
 0x611   :  { %1100 = vadd.xlane.f32.xlu0 %v1099_v20  ;;  %1538 = vmatpush.msra.mxu3 %v1449_v32 }
 0x613   :  { %1539 = vmatpush.msra.mxu3 %v1448_v33 }
 0x615   :  { %1540 = vmatpush.msra.mxu3 %v1447_v7 }
 0x617   :  { %v3190_v0 = vpop.f32.mrf.mxu3  ;;  %1541 = vmatpush.msra.mxu3 %v1446_v34 }
 0x618   :  { %v1102_v21 = vsel %vm27_vm0, %v3190_v0, 0.0  ;;  %2537 = vmatmul.msk.f32.gmra.mxu3 %vm27_vm0, %v3190_v0 }
 0x619   :  { %1103 = vadd.xlane.f32.xlu0 %v1102_v21 }
 0x671   :  { %v1095_v13 = vpop.xlane.xlu0 %1094 }
 0x672   :  { %v1163_v36 = vmax.f32 %v1095_v13, 1.0  ;;  %v3232_v13 = vpop.f32.mrf.mxu0 }
 0x674   :  { %2665 = vrcp.f32 %v1163_v36  ;;  %v1178_v45 = vand.u32 2147483648, %v1163_v36  ;;  %vm1172_vm12 = vweird.f32 %v1163_v36  ;;  %v1176_v35 = vand.u32 2147483647, %v1163_v36 }
 0x676   :  { %v1179_v51 = vor.u32 1.1754944e-38, %v1178_v45  ;;  %vm1177_vm15 = vcmp.eq.f32.partialorder %v1176_v35, 8.507059e+37 }
 0x679   :  { %v1098_v38 = vpop.xlane.xlu2 %1097 }
 0x67a   :  { %v2666_v42 = vpop.eup %2665  ;;  %v1164_v43 = vmax.f32 %v1098_v38, 1.0 }
 0x67b   :  { %v1168_v25 = vmul.f32 %v2666_v42, %v1163_v36  ;;  %vm1173_vm13 = vweird.f32 %v2666_v42  ;;  %v3234_v36 = vpop.f32.mrf.mxu0 }
 0x67c   :  { %2667 = vrcp.f32 %v1164_v43  ;;  %vm1174_vm14 = vmor %vm1172_vm12, %vm1173_vm13  ;;  %vm1187_vm1 = vweird.f32 %v1164_v43  ;;  %v1191_v28 = vand.u32 2147483647, %v1164_v43  ;;  %v1193_v22 = vand.u32 2147483648, %v1164_v43 }
 0x67d   :  { %v1169_v41 = vsub.f32 1.0, %v1168_v25 }
 0x67e   :  { %v1194_v58 = vor.u32 1.1754944e-38, %v1193_v22  ;;  %vm1192_vm4 = vcmp.eq.f32.partialorder %v1191_v28, 8.507059e+37 }
 0x67f   :  { %v1170_v37 = vmul.f32 %v2666_v42, %v1169_v41 }
 0x680   :  { %v1128_v46 = vpop.f32.mrf.mxu2 }
 0x681   :  { %v1171_v61 = vadd.f32 %v2666_v42, %v1170_v37 }
 0x682   :  { %v2668_v52 = vpop.eup %2667 }
 0x683   :  { %v1175_v29 = vsel %vm1174_vm14, %v2666_v42, %v1171_v61  ;;  %v1183_v50 = vmul.f32 %v2668_v52, %v1164_v43  ;;  %vm1188_vm2 = vweird.f32 %v2668_v52  ;;  %v1261_v38 = vpop.f32.mrf.mxu0  ;;  %v3236_v42 = vpop.f32.mrf.mxu1  ;;  %v2608_v43 = vld [vmem:[%s3555_s3 + $0xa8] ss:$0 sm:$0xff]  ;;  %vm1363_vm14 = vcmask 31744  }
 0x684   :  { %v1180_v17 = vsel %vm1177_vm15, %v1179_v51, %v1175_v29  ;;  %v1101_v53 = vpop.xlane.xlu0 %1100  ;;  %vm1189_vm3 = vmor %vm1187_vm1, %vm1188_vm2 }
 0x685   :  { %v1181_v39 = vmul.f32 %v1180_v17, %v1128_v46  ;;  %v1165_v63 = vmax.f32 %v1101_v53, 1.0  ;;  %v1184_v26 = vsub.f32 1.0, %v1183_v50 }
 0x687   :  { %2669 = vrcp.f32 %v1165_v63  ;;  %2542 = vmatmul.msk.f32.vlgmr.msrb.gmra.mxu2 %vm178_vm10, %v1181_v39  ;;  %v1185_v56 = vmul.f32 %v2668_v52, %v1184_v26  ;;  %v1208_v3 = vand.u32 2147483648, %v1165_v63  ;;  %v1206_v62 = vand.u32 2147483647, %v1165_v63 }
 0x688   :  { %1860 = vmatpush.msrb.mxu2 %v3178_v44  ;;  %v1131_v12 = vpop.f32.mrf.mxu2  ;;  %vm1202_vm6 = vweird.f32 %v1165_v63 }
 0x689   :  { %v1186_v2 = vadd.f32 %v2668_v52, %v1185_v56  ;;  %v1209_v9 = vor.u32 1.1754944e-38, %v1208_v3  ;;  %vm1207_vm8 = vcmp.eq.f32.partialorder %v1206_v62, 8.507059e+37 }
 0x68a   :  { %1861 = vmatpush.msrb.mxu2 %v3172_v15 }
 0x68b   :  { %v1190_v47 = vsel %vm1189_vm3, %v2668_v52, %v1186_v2  ;;  %v1264_v35 = vpop.f32.mrf.mxu0  ;;  %v3245_v46 = vpop.f32.mrf.mxu1 }
 0x68c   :  { %v1195_v54 = vsel %vm1192_vm4, %v1194_v58, %v1190_v47  ;;  %v1104_v10 = vpop.xlane.xlu0 %1103  ;;  %v2609_v47 = vld [vmem:[%s3555_s3 + $0x100] ss:$0 sm:$0xff] }
 0x68d   :  { %v2670_v60 = vpop.eup %2669  ;;  %v1196_v23 = vmul.f32 %v1195_v54, %v1131_v12  ;;  %v1166_v19 = vmax.f32 %v1104_v10, 1.0 }
 0x68e   :  { %v1198_v49 = vmul.f32 %v2670_v60, %v1165_v63  ;;  %vm1203_vm5 = vweird.f32 %v2670_v60 }
 0x68f   :  { %2671 = vrcp.f32 %v1166_v19  ;;  %2543 = vmatmul.msk.f32.gmra.mxu2 %vm178_vm10, %v1196_v23  ;;  %vm1204_vm7 = vmor %vm1202_vm6, %vm1203_vm5  ;;  %vm1217_vm9 = vweird.f32 %v1166_v19  ;;  %v1223_v16 = vand.u32 2147483648, %v1166_v19  ;;  %v1221_v27 = vand.u32 2147483647, %v1166_v19 }
 0x690   :  { %v1199_v18 = vsub.f32 1.0, %v1198_v49 }
 0x691   :  { %v1224_v31 = vor.u32 1.1754944e-38, %v1223_v16  ;;  %vm1222_vm13 = vcmp.eq.f32.partialorder %v1221_v27, 8.507059e+37 }
 0x692   :  { %v1200_v4 = vmul.f32 %v2670_v60, %v1199_v18 }
 0x693   :  { %v1157_v5 = vpop.f32.mrf.mxu3  ;;  %v1290_v17 = vpop.f32.mrf.mxu1 }
 0x694   :  { %v1201_v55 = vadd.f32 %v2670_v60, %v1200_v4  ;;  %v1474_v28 = vpop.f32.mrf.mxu0 }
 0x695   :  { %v2672_v57 = vpop.eup %2671 }
 0x696   :  { %v1205_v11 = vsel %vm1204_vm7, %v2670_v60, %v1201_v55  ;;  %v1213_v14 = vmul.f32 %v2672_v57, %v1166_v19  ;;  %vm1218_vm11 = vweird.f32 %v2672_v57 }
 0x697   :  { %v1210_v8 = vsel %vm1207_vm8, %v1209_v9, %v1205_v11  ;;  %2550 = vmatmul.msk.f32.vlgmr.msra.gmra.mxu2 %vm178_vm10, %v1181_v39  ;;  %vm1219_vm12 = vmor %vm1217_vm9, %vm1218_vm11 }
 0x698   :  { %v1211_v20 = vmul.f32 %v1210_v8, %v1157_v5  ;;  %v1214_v21 = vsub.f32 1.0, %v1213_v14 }
 0x69a   :  { %2544 = vmatmul.msk.f32.vlgmr.msrb.gmra.mxu3 %vm178_vm10, %v1211_v20  ;;  %v1215_v30 = vmul.f32 %v2672_v57, %v1214_v21 }
 0x69b   :  { %1880 = vmatpush.msrb.mxu3 %v3190_v0  ;;  %v1160_v32 = vpop.f32.mrf.mxu3  ;;  %v1293_v12 = vpop.f32.mrf.mxu1 }
 0x69c   :  { %v1216_v59 = vadd.f32 %v2672_v57, %v1215_v30  ;;  %v1477_v56 = vpop.f32.mrf.mxu0 }
 0x69d   :  { %1881 = vmatpush.msrb.mxu3 %v3184_v1 }
 0x69e   :  { %v1220_v33 = vsel %vm1219_vm12, %v2672_v57, %v1216_v59 }
 0x69f   :  { %v1225_v7 = vsel %vm1222_vm13, %v1224_v31, %v1220_v33  ;;  %2551 = vmatmul.msk.f32.gmra.mxu2 %vm178_vm10, %v1196_v23 }
 0x6a0   :  { %v1226_v34 = vmul.f32 %v1225_v7, %v1160_v32 }
 0x6a2   :  { %2545 = vmatmul.msk.f32.gmra.mxu3 %vm178_vm10, %v1226_v34 }
 0x6a3   :  { %v1497_v55 = vpop.f32.mrf.mxu1 }
 0x6aa   :  { %2552 = vmatmul.msk.f32.vlgmr.msra.gmra.mxu3 %vm178_vm10, %v1211_v20 }
 0x6ab   :  { %v1500_v5 = vpop.f32.mrf.mxu1 }
 0x6b2   :  { %2553 = vmatmul.msk.f32.gmra.mxu3 %vm178_vm10, %v1226_v34 }
 0x70a   :  { %v1319_v25 = vpop.f32.mrf.mxu2 }
 0x70b   :  { %v1320_v45 = vadd.f32 %v1319_v25, %v1261_v38 }
 0x70d   :  { %v3241_v41 = vadd.f32 %v2608_v43, %v1320_v45 }
 0x70f   :  { %v1359_v37 = vmul.f32 %v3241_v41, %v3241_v41 }
 0x711   :  { %v1364_v51 = vsel %vm1363_vm14, %v1359_v37, 0.0 }
 0x712   :  { %v1322_v61 = vpop.f32.mrf.mxu2  ;;  %1365 = vadd.xlane.f32.xlu0 %v1364_v51 }
 0x713   :  { %v1323_v52 = vadd.f32 %v1322_v61, %v1264_v35 }
 0x715   :  { %v3248_v29 = vadd.f32 %v2608_v43, %v1323_v52 }
 0x717   :  { %v1360_v50 = vmul.f32 %v3248_v29, %v3248_v29 }
 0x719   :  { %v1367_v53 = vsel %vm1363_vm14, %v1360_v50, 0.0 }
 0x71a   :  { %v1520_v22 = vpop.f32.mrf.mxu2  ;;  %1368 = vadd.xlane.f32.xlu1 %v1367_v53  ;;  %v3289_v53 = vld [vmem:[%s3555_s3 + $0xd0] ss:$0 sm:$0xff] }
 0x71b   :  { %v1521_v14 = vadd.f32 %v1520_v22, %v1474_v28 }
 0x71d   :  { %v1348_v39 = vpop.f32.mrf.mxu3  ;;  %v3275_v20 = vadd.f32 %v2609_v47, %v1521_v14 }
 0x71e   :  { %v1349_v63 = vadd.f32 %v1348_v39, %v1290_v17 }
 0x71f   :  { %v1554_v30 = vmul.f32 %v3275_v20, %v3275_v20 }
 0x720   :  { %v3253_v26 = vadd.f32 %v2608_v43, %v1349_v63 }
 0x721   :  { %v1558_v59 = vsel %vm178_vm10, %v1554_v30, 0.0 }
 0x722   :  { %v1523_v58 = vpop.f32.mrf.mxu2  ;;  %v1361_v2 = vmul.f32 %v3253_v26, %v3253_v26 }
 0x723   :  { %v1524_v54 = vadd.f32 %v1523_v58, %v1477_v56  ;;  %v3295_v56 = vld [vmem:[%s3555_s3 + $0xd8] ss:$0 sm:$0xff] }
 0x724   :  { %v1370_v10 = vsel %vm1363_vm14, %v1361_v2, 0.0 }
 0x725   :  { %v3261_v60 = vadd.f32 %v2609_v47, %v1524_v54  ;;  %1371 = vadd.xlane.f32.xlu0 %v1370_v10  ;;  %v1351_v23 = vpop.f32.mrf.mxu3 }
 0x726   :  { %v1352_v19 = vadd.f32 %v1351_v23, %v1293_v12 }
 0x727   :  { %v1555_v49 = vmul.f32 %v3261_v60, %v3261_v60 }
 0x728   :  { %v3265_v18 = vadd.f32 %v2608_v43, %v1352_v19 }
 0x729   :  { %v1561_v3 = vsel %vm178_vm10, %v1555_v49, 0.0 }
 0x72a   :  { %1562 = vadd.xlane.f32.xlu1 %v1561_v3  ;;  %v1362_v4 = vmul.f32 %v3265_v18, %v3265_v18 }
 0x72c   :  { %v1373_v62 = vsel %vm1363_vm14, %v1362_v4, 0.0 }
 0x72d   :  { %v1543_v57 = vpop.f32.mrf.mxu3  ;;  %1374 = vadd.xlane.f32.xlu0 %v1373_v62 }
 0x72e   :  { %v1544_v27 = vadd.f32 %v1543_v57, %v1497_v55 }
 0x730   :  { %v3280_v31 = vadd.f32 %v2609_v47, %v1544_v27 }
 0x732   :  { %v1556_v32 = vmul.f32 %v3280_v31, %v3280_v31 }
 0x734   :  { %v1564_v33 = vsel %vm178_vm10, %v1556_v32, 0.0 }
 0x735   :  { %v1546_v9 = vpop.f32.mrf.mxu3 }
 0x736   :  { %v1547_v11 = vadd.f32 %v1546_v9, %v1500_v5 }
 0x738   :  { %v3271_v8 = vadd.f32 %v2609_v47, %v1547_v11 }
 0x73a   :  { %v1557_v16 = vmul.f32 %v3271_v8, %v3271_v8 }
 0x73c   :  { %v1567_v21 = vsel %vm178_vm10, %v1557_v16, 0.0 }
 0x73d   :  { %1568 = vadd.xlane.f32.xlu1 %v1567_v21 }
 0x745   :  { %1559 = vadd.xlane.f32.xlu1 %v1558_v59 }
 0x74d   :  { %1565 = vadd.xlane.f32.xlu1 %v1564_v33 }
 0x785   :  { %v1366_v7 = vpop.xlane.xlu0 %1365 }
 0x786   :  { %v1376_v34 = vmax.f32 %v1366_v7, 1e-24 }
 0x788   :  { %2673 = vrsqrt.f32 %v1376_v34  ;;  %vm1386_vm1 = vweird.f32 %v1376_v34 }
 0x78d   :  { %v1369_v38 = vpop.xlane.xlu1 %1368 }
 0x78e   :  { %v2674_v43 = vpop.eup %2673  ;;  %v1377_v25 = vmax.f32 %v1369_v38, 1e-24 }
 0x78f   :  { %v1381_v45 = vmul.f32 %v2674_v43, %v1376_v34  ;;  %vm1387_vm15 = vweird.f32 %v2674_v43 }
 0x790   :  { %2675 = vrsqrt.f32 %v1377_v25  ;;  %vm1388_vm2 = vmor %vm1386_vm1, %vm1387_vm15  ;;  %vm1396_vm5 = vweird.f32 %v1377_v25 }
 0x791   :  { %v1382_v37 = vmul.f32 %v2674_v43, %v1381_v45 }
 0x793   :  { %v1383_v35 = vmul.f32 0.5, %v1382_v37 }
 0x795   :  { %v1384_v51 = vsub.f32 1.5, %v1383_v35 }
 0x796   :  { %v2676_v61 = vpop.eup %2675 }
 0x797   :  { %v1385_v52 = vmul.f32 %v2674_v43, %v1384_v51  ;;  %v1391_v50 = vmul.f32 %v2676_v61, %v1377_v25  ;;  %vm1397_vm4 = vweird.f32 %v2676_v61 }
 0x798   :  { %v1372_v17 = vpop.xlane.xlu0 %1371  ;;  %vm1398_vm6 = vmor %vm1396_vm5, %vm1397_vm4 }
 0x799   :  { %v1389_v28 = vsel %vm1388_vm2, %v2674_v43, %v1385_v52  ;;  %v1392_v22 = vmul.f32 %v2676_v61, %v1391_v50  ;;  %v1378_v39 = vmax.f32 %v1372_v17, 1e-24 }
 0x79a   :  { %v1420_v63 = vmul.f32 %v1389_v28, %v3241_v41 }
 0x79b   :  { %2677 = vrsqrt.f32 %v1378_v39  ;;  %v1393_v58 = vmul.f32 0.5, %v1392_v22  ;;  %vm1406_vm8 = vweird.f32 %v1378_v39  ;;  %v3317_v22 = vld [vmem:[%s3555_s3 + $0x130] ss:$0 sm:$0xff] }
 0x79c   :  { %v1425_v2 = vmul.f32 %v3289_v53, %v1420_v63 }
 0x79d   :  { %v1563_v12 = vpop.xlane.xlu1 %1562  ;;  %v1394_v10 = vsub.f32 1.5, %v1393_v58 }
 0x79e   :  { %v1571_v47 = vmax.f32 %v1563_v12, 1e-24  ;;  %v1430_v54 = vadd.f32 %v3295_v56, %v1425_v2 }
 0x79f   :  { %v1395_v55 = vmul.f32 %v2676_v61, %v1394_v10 }
 0x7a0   :  { %2679 = vrsqrt.f32 %v1571_v47  ;;  %v1375_v23 = vpop.xlane.xlu0 %1374  ;;  %vm1434_vm3 = vcmp.ge.f32.partialorder %v1430_v54, 0.0  ;;  %v1438_v19 = vmul.f32 0.01, %v1430_v54  ;;  %vm1590_vm12 = vweird.f32 %v1571_v47 }
 0x7a1   :  { %v2678_v49 = vpop.eup %2677  ;;  %v1379_v41 = vmax.f32 %v1375_v23, 1e-24  ;;  %v1399_v14 = vsel %vm1398_vm6, %v2676_v61, %v1395_v55 }
 0x7a2   :  { %v1401_v3 = vmul.f32 %v2678_v49, %v1378_v39  ;;  %v3299_v4 = vsel %vm1434_vm3, %v1430_v54, %v1438_v19  ;;  %vm1407_vm7 = vweird.f32 %v2678_v49  ;;  %v1421_v32 = vmul.f32 %v1399_v14, %v3248_v29  ;;  %v3310_v29 = vld [vmem:[%s3555_s3 + $0x128] ss:$0 sm:$0xff] }
 0x7a3   :  { %2681 = vrsqrt.f32 %v1379_v41  ;;  %v1640_v62 = vsel %vm1363_vm14, %v3299_v4, -inf  ;;  %vm1408_vm9 = vmor %vm1406_vm8, %vm1407_vm7  ;;  %vm1416_vm1 = vweird.f32 %v1379_v41 }
 0x7a4   :  { %v1402_v57 = vmul.f32 %v2678_v49, %v1401_v3  ;;  %1641 = vmax.xlane.f32.xlu0 %v1640_v62  ;;  %v1426_v35 = vmul.f32 %v3289_v53, %v1421_v32 }
 0x7a6   :  { %v2680_v5 = vpop.eup %2679  ;;  %v1403_v9 = vmul.f32 0.5, %v1402_v57  ;;  %v1431_v63 = vadd.f32 %v3295_v56, %v1426_v35 }
 0x7a7   :  { %v1585_v11 = vmul.f32 %v2680_v5, %v1571_v47  ;;  %vm1591_vm11 = vweird.f32 %v2680_v5 }
 0x7a8   :  { %v1404_v16 = vsub.f32 1.5, %v1403_v9  ;;  %vm1592_vm13 = vmor %vm1590_vm12, %vm1591_vm11  ;;  %v1439_v10 = vmul.f32 0.01, %v1431_v63  ;;  %vm1435_vm5 = vcmp.ge.f32.partialorder %v1431_v63, 0.0 }
 0x7a9   :  { %v2682_v21 = vpop.eup %2681  ;;  %v1586_v27 = vmul.f32 %v2680_v5, %v1585_v11 }
 0x7aa   :  { %v1405_v30 = vmul.f32 %v2678_v49, %v1404_v16  ;;  %v1411_v59 = vmul.f32 %v2682_v21, %v1379_v41  ;;  %vm1417_vm15 = vweird.f32 %v2682_v21 }
 0x7ab   :  { %v1587_v33 = vmul.f32 0.5, %v1586_v27  ;;  %vm1418_vm2 = vmor %vm1416_vm1, %vm1417_vm15 }
 0x7ac   :  { %v1409_v7 = vsel %vm1408_vm9, %v2678_v49, %v1405_v30  ;;  %v1412_v34 = vmul.f32 %v2682_v21, %v1411_v59 }
 0x7ad   :  { %v1422_v38 = vmul.f32 %v1409_v7, %v3253_v26  ;;  %v1588_v43 = vsub.f32 1.5, %v1587_v33 }
 0x7ae   :  { %v1413_v25 = vmul.f32 0.5, %v1412_v34 }
 0x7af   :  { %v1589_v45 = vmul.f32 %v2680_v5, %v1588_v43  ;;  %v1427_v37 = vmul.f32 %v3289_v53, %v1422_v38 }
 0x7b0   :  { %v1414_v51 = vsub.f32 1.5, %v1413_v25  ;;  %v1569_v61 = vpop.xlane.xlu1 %1568 }
 0x7b1   :  { %v1593_v52 = vsel %vm1592_vm13, %v2680_v5, %v1589_v45  ;;  %v1573_v26 = vmax.f32 %v1569_v61, 1e-24  ;;  %v1432_v50 = vadd.f32 %v3295_v56, %v1427_v37 }
 0x7b2   :  { %v1615_v17 = vmul.f32 %v1593_v52, %v3261_v60  ;;  %v1415_v28 = vmul.f32 %v2682_v21, %v1414_v51 }
 0x7b3   :  { %2683 = vrsqrt.f32 %v1573_v26  ;;  %vm1436_vm3 = vcmp.ge.f32.partialorder %v1432_v50, 0.0  ;;  %v1440_v39 = vmul.f32 0.01, %v1432_v50  ;;  %vm1610_vm8 = vweird.f32 %v1573_v26 }
 0x7b4   :  { %v1419_v58 = vsel %vm1418_vm2, %v2682_v21, %v1415_v28  ;;  %v1620_v2 = vmul.f32 %v3310_v29, %v1615_v17 }
 0x7b5   :  { %v1423_v12 = vmul.f32 %v1419_v58, %v3265_v18  ;;  %v3322_v47 = vsel %vm1436_vm3, %v1432_v50, %v1440_v39  ;;  %v3328_v18 = vsel %vm1435_vm5, %v1431_v63, %v1439_v10 }
 0x7b6   :  { %v1646_v60 = vsel %vm1363_vm14, %v3322_v47, -inf  ;;  %v1625_v54 = vadd.f32 %v3317_v22, %v1620_v2  ;;  %v1643_v11 = vsel %vm1363_vm14, %v3328_v18, -inf }
 0x7b7   :  { %1647 = vmax.xlane.f32.xlu0 %v1646_v60  ;;  %v1428_v23 = vmul.f32 %v3289_v53, %v1423_v12 }
 0x7b8   :  { %v1560_v19 = vpop.xlane.xlu1 %1559  ;;  %vm1629_vm4 = vcmp.ge.f32.partialorder %v1625_v54, 0.0  ;;  %v1633_v49 = vmul.f32 0.01, %v1625_v54 }
 0x7b9   :  { %v2684_v41 = vpop.eup %2683  ;;  %v1570_v3 = vmax.f32 %v1560_v19, 1e-24  ;;  %v1433_v57 = vadd.f32 %v3295_v56, %v1428_v23 }
 0x7ba   :  { %v1605_v62 = vmul.f32 %v2684_v41, %v1573_v26  ;;  %v1637_v55 = vsel %vm1629_vm4, %v1625_v54, %v1633_v49  ;;  %vm1611_vm6 = vweird.f32 %v2684_v41 }
 0x7bb   :  { %2685 = vrsqrt.f32 %v1570_v3  ;;  %1817 = vmatpush.msrb.mxu0 %v1637_v55  ;;  %v1441_v53 = vmul.f32 0.01, %v1433_v57  ;;  %vm1437_vm7 = vcmp.ge.f32.partialorder %v1433_v57, 0.0  ;;  %vm1612_vm9 = vmor %vm1610_vm8, %vm1611_vm6  ;;  %vm1580_vm12 = vweird.f32 %v1570_v3 }
 0x7bc   :  { %v1606_v5 = vmul.f32 %v2684_v41, %v1605_v62 }
 0x7bd   :  { %v3333_v32 = vsel %vm1437_vm7, %v1433_v57, %v1441_v53 }
 0x7be   :  { %v1607_v9 = vmul.f32 0.5, %v1606_v5  ;;  %v1649_v38 = vsel %vm1363_vm14, %v3333_v32, -inf }
 0x7bf   :  { %1644 = vmax.xlane.f32.xlu0 %v1643_v11 }
 0x7c0   :  { %v1608_v14 = vsub.f32 1.5, %v1607_v9  ;;  %v1566_v16 = vpop.xlane.xlu1 %1565 }
 0x7c1   :  { %v2686_v21 = vpop.eup %2685  ;;  %v1572_v27 = vmax.f32 %v1566_v16, 1e-24 }
 0x7c2   :  { %v1609_v30 = vmul.f32 %v2684_v41, %v1608_v14  ;;  %v1575_v59 = vmul.f32 %v2686_v21, %v1570_v3  ;;  %vm1581_vm11 = vweird.f32 %v2686_v21 }
 0x7c3   :  { %2687 = vrsqrt.f32 %v1572_v27  ;;  %vm1582_vm13 = vmor %vm1580_vm12, %vm1581_vm11  ;;  %vm1600_vm2 = vweird.f32 %v1572_v27 }
 0x7c4   :  { %v1613_v56 = vsel %vm1612_vm9, %v2684_v41, %v1609_v30  ;;  %v1576_v33 = vmul.f32 %v2686_v21, %v1575_v59 }
 0x7c5   :  { %v1617_v7 = vmul.f32 %v1613_v56, %v3271_v8 }
 0x7c6   :  { %v1577_v34 = vmul.f32 0.5, %v1576_v33 }
 0x7c7   :  { %1650 = vmax.xlane.f32.xlu0 %v1649_v38  ;;  %v1622_v43 = vmul.f32 %v3310_v29, %v1617_v7 }
 0x7c8   :  { %v1578_v25 = vsub.f32 1.5, %v1577_v34 }
 0x7c9   :  { %v2688_v45 = vpop.eup %2687  ;;  %v1627_v37 = vadd.f32 %v3317_v22, %v1622_v43 }
 0x7ca   :  { %v1579_v35 = vmul.f32 %v2686_v21, %v1578_v25  ;;  %v1595_v51 = vmul.f32 %v2688_v45, %v1572_v27  ;;  %vm1601_vm1 = vweird.f32 %v2688_v45 }
 0x7cb   :  { %vm1631_vm15 = vcmp.ge.f32.partialorder %v1627_v37, 0.0  ;;  %v1635_v61 = vmul.f32 0.01, %v1627_v37  ;;  %vm1602_vm3 = vmor %vm1600_vm2, %vm1601_vm1 }
 0x7cc   :  { %v1583_v52 = vsel %vm1582_vm13, %v2686_v21, %v1579_v35  ;;  %v1596_v8 = vmul.f32 %v2688_v45, %v1595_v51 }
 0x7cd   :  { %v1614_v26 = vmul.f32 %v1583_v52, %v3275_v20  ;;  %v1639_v50 = vsel %vm1631_vm15, %v1627_v37, %v1635_v61 }
 0x7ce   :  { %v1597_v17 = vmul.f32 0.5, %v1596_v8  ;;  %1840 = vmatpush.msrb.mxu1 %v1639_v50 }
 0x7cf   :  { %v1619_v28 = vmul.f32 %v3310_v29, %v1614_v26 }
 0x7d0   :  { %v1598_v39 = vsub.f32 1.5, %v1597_v17 }
 0x7d1   :  { %v1624_v63 = vadd.f32 %v3317_v22, %v1619_v28 }
 0x7d2   :  { %v1599_v58 = vmul.f32 %v2688_v45, %v1598_v39 }
 0x7d3   :  { %vm1628_vm4 = vcmp.ge.f32.partialorder %v1624_v63, 0.0  ;;  %v1632_v2 = vmul.f32 0.01, %v1624_v63 }
 0x7d4   :  { %v1603_v12 = vsel %vm1602_vm3, %v2688_v45, %v1599_v58 }
 0x7d5   :  { %v1616_v60 = vmul.f32 %v1603_v12, %v3280_v31  ;;  %v1636_v54 = vsel %vm1628_vm4, %v1624_v63, %v1632_v2 }
 0x7d6   :  { %1818 = vmatpush.msrb.mxu0 %v1636_v54 }
 0x7d7   :  { %v1621_v20 = vmul.f32 %v3310_v29, %v1616_v60 }
 0x7d9   :  { %v1626_v10 = vadd.f32 %v3317_v22, %v1621_v20 }
 0x7db   :  { %vm1630_vm5 = vcmp.ge.f32.partialorder %v1626_v10, 0.0  ;;  %v1634_v23 = vmul.f32 0.01, %v1626_v10 }
 0x7dd   :  { %v1638_v19 = vsel %vm1630_vm5, %v1626_v10, %v1634_v23 }
 0x7de   :  { %1841 = vmatpush.msrb.mxu1 %v1638_v19 }
 0x817   :  { %v1642_v49 = vpop.xlane.xlu0 %1641 }
 0x818   :  { %v1652_v41 = vsub.f32 %v3299_v4, %v1642_v49 }
 0x81a   :  { %v1656_v3 = vmul.f32 1.442695, %v1652_v41 }
 0x81c   :  { %2689 = vpow2.f32 %v1656_v3 }
 0x822   :  { %v2690_v62 = vpop.eup %2689 }
 0x823   :  { %v1664_v55 = vsel %vm1363_vm14, %v2690_v62, 0.0 }
 0x824   :  { %1665 = vadd.xlane.f32.xlu0 %v1664_v55 }
 0x82a   :  { %v1648_v31 = vpop.xlane.xlu0 %1647 }
 0x82b   :  { %v1654_v57 = vsub.f32 %v3322_v47, %v1648_v31 }
 0x82d   :  { %v1660_v5 = vmul.f32 1.442695, %v1654_v57 }
 0x82f   :  { %2691 = vpow2.f32 %v1660_v5 }
 0x832   :  { %v1645_v29 = vpop.xlane.xlu0 %1644 }
 0x833   :  { %v1653_v22 = vsub.f32 %v3328_v18, %v1645_v29 }
 0x835   :  { %v2692_v9 = vpop.eup %2691  ;;  %v1658_v11 = vmul.f32 1.442695, %v1653_v22 }
 0x836   :  { %v1670_v53 = vsel %vm1363_vm14, %v2692_v9, 0.0 }
 0x837   :  { %2693 = vpow2.f32 %v1658_v11  ;;  %1671 = vadd.xlane.f32.xlu0 %v1670_v53 }
 0x83a   :  { %v1651_v4 = vpop.xlane.xlu0 %1650 }
 0x83b   :  { %v1655_v14 = vsub.f32 %v3333_v32, %v1651_v4 }
 0x83d   :  { %v3352_v16 = vpop.eup %2693  ;;  %v1662_v21 = vmul.f32 1.442695, %v1655_v14 }
 0x83e   :  { %v1667_v47 = vsel %vm1363_vm14, %v3352_v16, 0.0 }
 0x83f   :  { %2695 = vpow2.f32 %v1662_v21  ;;  %1668 = vadd.xlane.f32.xlu0 %v1667_v47 }
 0x845   :  { %v3356_v27 = vpop.eup %2695 }
 0x846   :  { %v1673_v18 = vsel %vm1363_vm14, %v3356_v27, 0.0 }
 0x847   :  { %1674 = vadd.xlane.f32.xlu0 %v1673_v18 }
 0x897   :  { %v1666_v30 = vpop.xlane.xlu0 %1665 }
 0x898   :  { %2697 = vrcp.f32 %v1666_v30  ;;  %v1687_v32 = vand.u32 2147483648, %v1666_v30  ;;  %v1685_v34 = vand.u32 2147483647, %v1666_v30  ;;  %vm1681_vm7 = vweird.f32 %v1666_v30 }
 0x89a   :  { %v1688_v43 = vor.u32 1.1754944e-38, %v1687_v32  ;;  %vm1686_vm9 = vcmp.eq.f32.partialorder %v1685_v34, 8.507059e+37  ;;  %v2170_v32 = vld [vmem:[%s3555_s3 + $0x168] sm:$0xff] }
 0x89e   :  { %v2698_v59 = vpop.eup %2697 }
 0x89f   :  { %v1677_v56 = vmul.f32 %v2698_v59, %v1666_v30  ;;  %vm1682_vm6 = vweird.f32 %v2698_v59 }
 0x8a0   :  { %vm1683_vm8 = vmor %vm1681_vm7, %vm1682_vm6 }
 0x8a1   :  { %v1678_v33 = vsub.f32 1.0, %v1677_v56  ;;  %v2172_v56 = vld [vmem:[%s3555_s3 + $0x178] sm:$0xff] }
 0x8a3   :  { %v1679_v7 = vmul.f32 %v2698_v59, %v1678_v33  ;;  %v2171_v33 = vld [vmem:[%s3555_s3 + $0x170] sm:$0xff] }
 0x8a5   :  { %v1680_v38 = vadd.f32 %v2698_v59, %v1679_v7  ;;  %v2169_v7 = vld [vmem:[%s3555_s3 + $0x160] sm:$0xff] }
 0x8a7   :  { %v1684_v25 = vsel %vm1683_vm8, %v2698_v59, %v1680_v38 }
 0x8a8   :  { %v1689_v45 = vsel %vm1686_vm9, %v1688_v43, %v1684_v25  ;;  %vm2082_vm9 = vcmask 1043456   ;;  %v2733_v43 = vld [vmem:[%s3553_s2 + $0x18] sm:$0xff] }
 0x8a9   :  { %v3360_v37 = vmul.f32 %v2690_v62, %v1689_v45  ;;  %v1014_v25 = vsub.f32 %v2733_v43, %v3245_v46 }
 0x8aa   :  { %v1672_v35 = vpop.xlane.xlu0 %1671 }
 0x8ab   :  { %2699 = vrcp.f32 %v1672_v35  ;;  %1736 = vxpose.xlu0.b32.start [1/2] (short) (narrow) %v3360_v37, 8  ;;  %v1717_v26 = vand.u32 2147483648, %v1672_v35  ;;  %v1715_v17 = vand.u32 2147483647, %v1672_v35  ;;  %vm1711_vm12 = vweird.f32 %v1672_v35 }
 0x8ad   :  { %v1718_v63 = vor.u32 1.1754944e-38, %v1717_v26  ;;  %vm1716_vm15 = vcmp.eq.f32.partialorder %v1715_v17, 8.507059e+37 }
 0x8b1   :  { %v2700_v51 = vpop.eup %2699 }
 0x8b2   :  { %v1707_v61 = vmul.f32 %v2700_v51, %v1672_v35  ;;  %v1669_v52 = vpop.xlane.xlu0 %1668  ;;  %vm1712_vm11 = vweird.f32 %v2700_v51 }
 0x8b3   :  { %2701 = vrcp.f32 %v1669_v52  ;;  %vm1713_vm13 = vmor %vm1711_vm12, %vm1712_vm11  ;;  %v1702_v10 = vand.u32 2147483648, %v1669_v52  ;;  %v1700_v19 = vand.u32 2147483647, %v1669_v52  ;;  %vm1696_vm2 = vweird.f32 %v1669_v52 }
 0x8b4   :  { %v1708_v8 = vsub.f32 1.0, %v1707_v61  ;;  %vm2072_vm11 = vcmask 27648   ;;  %v1050_v61 = vadd.f32 1e-15, %v3087_v40 }
 0x8b5   :  { %v1703_v3 = vor.u32 1.1754944e-38, %v1702_v10  ;;  %vm1701_vm4 = vcmp.eq.f32.partialorder %v1700_v19, 8.507059e+37  ;;  %v1049_v10 = vsub.f32 0.0, %v3099_v48 }
 0x8b6   :  { %v1709_v50 = vmul.f32 %v2700_v51, %v1708_v8 }
 0x8b8   :  { %v1710_v28 = vadd.f32 %v2700_v51, %v1709_v50  ;;  %v1053_v50 = vadd.f32 1e-15, %v3099_v48  ;;  %v2166_v48 = vld [vmem:[%s3555_s3 + $0x148] sm:$0xff] }
 0x8b9   :  { %v2702_v39 = vpop.eup %2701 }
 0x8ba   :  { %v1714_v58 = vsel %vm1713_vm13, %v2700_v51, %v1710_v28  ;;  %v1692_v2 = vmul.f32 %v2702_v39, %v1669_v52  ;;  %v1675_v12 = vpop.xlane.xlu0 %1674  ;;  %vm1697_vm1 = vweird.f32 %v2702_v39  ;;  %v1018_v52 = vmul.f32 %v1014_v25, %v1014_v25 }
 0x8bb   :  { %v1719_v60 = vsel %vm1716_vm15, %v1718_v63, %v1714_v58  ;;  %2703 = vrcp.f32 %v1675_v12  ;;  %vm1698_vm3 = vmor %vm1696_vm2, %vm1697_vm1  ;;  %v1732_v29 = vand.u32 2147483648, %v1675_v12  ;;  %vm1726_vm6 = vweird.f32 %v1675_v12 }
 0x8bc   :  { %v3363_v54 = vmul.f32 %v2692_v9, %v1719_v60  ;;  %v1693_v20 = vsub.f32 1.0, %v1692_v2  ;;  %v1730_v9 = vand.u32 2147483647, %v1675_v12  ;;  %2705 = vlog2.f32 %v1050_v61 }
 0x8bd   :  { %v1733_v53 = vor.u32 1.1754944e-38, %v1732_v29  ;;  %v1028_v46 = vsel %vm27_vm0, %v1018_v52, 0.0  ;;  %2707 = vlog2.f32 %v1053_v50  ;;  %v1046_v58 = vsub.f32 0.0, %v3087_v40 }
 0x8be   :  { %v1694_v23 = vmul.f32 %v2702_v39, %v1693_v20  ;;  %1768 = vxpose.xlu2.b32.start [1/2] (short) (narrow) %v3363_v54, 8  ;;  %vm1731_vm8 = vcmp.eq.f32.partialorder %v1730_v9, 8.507059e+37 }
 0x8c0   :  { %v1695_v49 = vadd.f32 %v2702_v39, %v1694_v23 }
 0x8c1   :  { %v2704_v41 = vpop.eup %2703 }
 0x8c2   :  { %v1699_v62 = vsel %vm1698_vm3, %v2702_v39, %v1695_v49  ;;  %v1722_v55 = vmul.f32 %v2704_v41, %v1675_v12  ;;  %vm1727_vm5 = vweird.f32 %v2704_v41  ;;  %v2706_v28 = vpop.eup %2705 }
 0x8c3   :  { %v1704_v31 = vsel %vm1701_vm4, %v1703_v3, %v1699_v62  ;;  %vm1728_vm7 = vmor %vm1726_vm6, %vm1727_vm5  ;;  %v1055_v63 = vmul.f32 0.6931472, %v2706_v28  ;;  %v2708_v12 = vpop.eup %2707  ;;  %v2027_v3 = vsub.f32 0.0, %v3363_v54  ;;  %vm2270_vm6 = vcmask 257024  }
 0x8c4   :  { %v3367_v57 = vmul.f32 %v3352_v16, %v1704_v31  ;;  %v1723_v5 = vsub.f32 1.0, %v1722_v55  ;;  %v1061_v20 = vmul.f32 0.6931472, %v2708_v12  ;;  %v2167_v55 = vld [vmem:[%s3555_s3 + $0x150] sm:$0xff]  ;;  %v2164_v31 = vld [vmem:[%s3555_s3 + $0x138] sm:$0xff] }
 0x8c5   :  { %v1062_v2 = vmul.f32 %v1055_v63, %v1046_v58  ;;  %v1052_v58 = vadd.f32 1e-15, %v3083_v6 }
 0x8c6   :  { %v1724_v22 = vmul.f32 %v2704_v41, %v1723_v5  ;;  %1737 = vxpose.xlu0.b32.end [2/2] (short) (narrow) %v3367_v57, 8  ;;  %1903 = vmatpush.msra.mxu0 %v3367_v57  ;;  %v1065_v23 = vmul.f32 %v1061_v20, %v1049_v10 }
 0x8c7   :  { %2560 = vmatpush.xpose.msk.msra.mxu2 %vm1363_vm14, %v3367_v57  ;;  %v1066_v60 = vsel %vm27_vm0, %v1062_v2, 0.0 }
 0x8c8   :  { %v1725_v11 = vadd.f32 %v2704_v41, %v1724_v22  ;;  %1904 = vmatpush.msra.mxu0 %v3360_v37  ;;  %v1075_v49 = vsel %vm27_vm0, %v1065_v23, 0.0 }
 0x8ca   :  { %v1729_v4 = vsel %vm1728_vm7, %v2704_v41, %v1725_v11 }
 0x8cb   :  { %v1734_v14 = vsel %vm1731_vm8, %v1733_v53, %v1729_v4  ;;  %2561 = vmatpush.xpose.msk.msra.mxu2 %vm1363_vm14, %v3360_v37 }
 0x8cc   :  { %v3377_v16 = vmul.f32 %v3356_v27, %v1734_v14 }
 0x8ce   :  { %1769 = vxpose.xlu2.b32.end [2/2] (short) (narrow) %v3377_v16, 8  ;;  %1926 = vmatpush.msra.mxu1 %v3377_v16 }
 0x8cf   :  { %2564 = vmatpush.xpose.msk.msra.mxu3 %vm1363_vm14, %v3377_v16 }
 0x8d0   :  { %1927 = vmatpush.msra.mxu1 %v3363_v54 }
 0x8d3   :  { %2565 = vmatpush.xpose.msk.msra.mxu3 %vm1363_vm14, %v3363_v54 }
 0x95f   :  { %v1784_v21 = vpop.trf.xlu2 }
 0x960   :  { %2557 = vmatmul.msk.f32.vlgmr.msrb.gmra.mxu3 %vm27_vm0, %v1784_v21  ;;  %2555 = vmatmul.msk.f32.vlgmr.msrb.gmra.mxu1 %vm27_vm0, %v1784_v21 }
 0x961   :  { %2257 = vmatpush.msrb.mxu3 %v2167_v55 }
 0x962   :  { %v1752_v47 = vpop.trf.xlu0 }
 0x963   :  { %2554 = vmatmul.msk.f32.vlgmr.msrb.gmra.mxu0 %vm27_vm0, %v1752_v47  ;;  %2556 = vmatmul.msk.f32.vlgmr.msrb.gmra.mxu2 %vm27_vm0, %v1752_v47 }
 0x964   :  { %2234 = vmatpush.msrb.mxu2 %v2167_v55  ;;  %2258 = vmatpush.msrb.mxu3 %v2166_v48 }
 0x966   :  { %2235 = vmatpush.msrb.mxu2 %v2166_v48 }
 0x968   :  { %2566 = vmatmul.msk.f32.vlgmr.msra.gmra.mxu3 %vm1363_vm14, %v3363_v54 }
 0x96b   :  { %2562 = vmatmul.msk.f32.vlgmr.msra.gmra.mxu2 %vm1363_vm14, %v3360_v37 }
 0x970   :  { %2567 = vmatmul.msk.f32.gmra.mxu3 %vm1363_vm14, %v3377_v16 }
 0x973   :  { %2563 = vmatmul.msk.f32.gmra.mxu2 %vm1363_vm14, %v3367_v57 }
 0x9dd   :  { %v1843_v27 = vpop.f32.mrf.mxu1 }
 0x9de   :  { %2570 = vmatpush.msk.msrb.mxu1 %vm2082_vm9, %v1843_v27 }
 0x9e0   :  { %v1820_v18 = vpop.f32.mrf.mxu0 }
 0x9e1   :  { %2568 = vmatpush.msk.msrb.mxu0 %vm2082_vm9, %v1820_v18 }
 0x9e3   :  { %v1883_v30 = vpop.f32.mrf.mxu3 }
 0x9e4   :  { %2559 = vmatmul.msk.f32.vlgmr.msra.gmra.mxu1 %vm27_vm0, %v1883_v30 }
 0x9e5   :  { %2211 = vmatpush.msra.mxu1 %v2172_v56 }
 0x9e6   :  { %v1863_v59 = vpop.f32.mrf.mxu2 }
 0x9e7   :  { %2558 = vmatmul.msk.f32.vlgmr.msra.gmra.mxu0 %vm27_vm0, %v1863_v59  ;;  %2212 = vmatpush.msra.mxu1 %v2171_v33 }
 0x9e8   :  { %2189 = vmatpush.msra.mxu0 %v2172_v56 }
 0x9e9   :  { %2213 = vmatpush.msra.mxu1 %v2170_v32 }
 0x9ea   :  { %2190 = vmatpush.msra.mxu0 %v2171_v33 }
 0x9eb   :  { %2214 = vmatpush.msra.mxu1 %v2169_v7 }
 0x9ec   :  { %2191 = vmatpush.msra.mxu0 %v2170_v32 }
 0x9ee   :  { %2192 = vmatpush.msra.mxu0 %v2169_v7  ;;  %v3414_v34 = vpop.f32.mrf.mxu2 }
 0x9f6   :  { %v1958_v8 = vpop.f32.mrf.mxu2 }
 0x9f7   :  { %v1991_v26 = vsub.f32 %v3178_v44, %v1958_v8  ;;  %v2031_v44 = vadd.f32 1e-15, %v3363_v54  ;;  %v2165_v54 = vld [vmem:[%s3555_s3 + $0x140] sm:$0xff] }
 0x9f8   :  { %2259 = vmatpush.msrb.mxu3 %v2165_v54  ;;  %2236 = vmatpush.msrb.mxu2 %v2165_v54  ;;  %v1048_v54 = vsub.f32 0.0, %v3083_v6  ;;  %v2734_v6 = vld [vmem:[%s3553_s2] sm:$0xff] }
 0x9f9   :  { %v1995_v17 = vmul.f32 %v1991_v26, %v1991_v26  ;;  %2709 = vlog2.f32 %v2031_v44 }
 0x9fa   :  { %2260 = vmatpush.msrb.mxu3 %v2164_v31  ;;  %2237 = vmatpush.msrb.mxu2 %v2164_v31 }
 0x9fb   :  { %v2001_v39 = vsel %vm27_vm0, %v1995_v17, 0.0  ;;  %v2614_v17 = vld [vmem:[%s3555_s3 + $0x158] ss:$0 sm:$0xff] }
 0x9ff   :  { %v2710_v19 = vpop.eup %2709 }
 0xa00   :  { %v2038_v41 = vmul.f32 0.6931472, %v2710_v19 }
 0xa02   :  { %v2043_v40 = vmul.f32 %v2038_v41, %v2027_v3  ;;  %v2030_v3 = vadd.f32 1e-15, %v3367_v57 }
 0xa04   :  { %v2051_v62 = vsel %vm1363_vm14, %v2043_v40, 0.0 }
 0xa61   :  { %v1929_v38 = vpop.f32.mrf.mxu1 }
 0xa62   :  { %2571 = vmatmul.msk.f32.vlgmr.msrb.gmra.mxu1 %vm1363_vm14, %v1929_v38  ;;  %v2076_v45 = vsel %vm2072_vm11, %v1929_v38, 0.0 }
 0xa63   :  { %2077 = vadd.xlane.f32.xlu0 %v2076_v45 }
 0xa64   :  { %v1906_v35 = vpop.f32.mrf.mxu0 }
 0xa65   :  { %2569 = vmatmul.msk.f32.vlgmr.msrb.gmra.mxu0 %vm1363_vm14, %v1906_v35  ;;  %v2073_v51 = vsel %vm2072_vm11, %v1906_v35, 0.0 }
 0xa66   :  { %2074 = vadd.xlane.f32.xlu1 %v2073_v51 }
 0xa6a   :  { %2573 = vmatmul.msk.f32.vlgmr.msra.gmra.mxu1 %vm178_vm10, %v1843_v27 }
 0xa6b   :  { %1029 = vadd.xlane.f32.xlu0 %v1028_v46  ;;  %v3450_v46 = vpop.f32.mrf.mxu3 }
 0xa6d   :  { %2572 = vmatmul.msk.f32.vlgmr.msra.gmra.mxu0 %vm178_vm10, %v1820_v18 }
 0xa73   :  { %2002 = vadd.xlane.f32.xlu0 %v2001_v39  ;;  %v1987_v50 = vpop.f32.mrf.mxu3 }
 0xa74   :  { %v1993_v23 = vsub.f32 %v3190_v0, %v1987_v50  ;;  %v2615_v50 = vld [vmem:[%s3555_s3 + $0x180] ss:$0 sm:$0xff] }
 0xa76   :  { %v1997_v40 = vmul.f32 %v1993_v23, %v1993_v23 }
 0xa78   :  { %v2007_v55 = vsel %vm27_vm0, %v1997_v40, 0.0 }
 0xa7b   :  { %1067 = vadd.xlane.f32.xlu0 %v1066_v60 }
 0xa83   :  { %1076 = vadd.xlane.f32.xlu0 %v1075_v49 }
 0xa8b   :  { %2052 = vadd.xlane.f32.xlu0 %v2051_v62 }
 0xad6   :  { %v2078_v5 = vpop.xlane.xlu0 %2077 }
 0xad7   :  { %v2133_v29 = vmax.f32 %v2078_v5, 1.0 }
 0xad9   :  { %2711 = vrcp.f32 %v2133_v29  ;;  %v2075_v22 = vpop.xlane.xlu1 %2074  ;;  %v2160_v4 = vand.u32 2147483648, %v2133_v29  ;;  %vm2154_vm12 = vweird.f32 %v2133_v29  ;;  %v2158_v18 = vand.u32 2147483647, %v2133_v29 }
 0xada   :  { %v2132_v9 = vmax.f32 %v2075_v22, 1.0  ;;  %v2026_v22 = vsub.f32 0.0, %v3367_v57  ;;  %v2735_v57 = vld [vmem:[%s3553_s2 + $0x8] sm:$0xff] }
 0xadb   :  { %v2161_v30 = vor.u32 1.1754944e-38, %v2160_v4  ;;  %vm2159_vm2 = vcmp.eq.f32.partialorder %v2158_v18, 8.507059e+37  ;;  %v1011_v4 = vsub.f32 %v2734_v6, %v3232_v13  ;;  %v2736_v18 = vld [vmem:[%s3553_s2 + $0x10] sm:$0xff] }
 0xadc   :  { %2713 = vrcp.f32 %v2132_v9  ;;  %v2145_v33 = vand.u32 2147483648, %v2132_v9  ;;  %v2143_v7 = vand.u32 2147483647, %v2132_v9  ;;  %vm2139_vm3 = vweird.f32 %v2132_v9 }
 0xadd   :  { %2715 = vlog2.f32 %v1052_v58  ;;  %v2616_v58 = vld [vmem:[%s3555_s3 + $0x188] ss:$0 sm:$0xff] }
 0xade   :  { %v2146_v51 = vor.u32 1.1754944e-38, %v2145_v33  ;;  %vm2144_vm5 = vcmp.eq.f32.partialorder %v2143_v7, 8.507059e+37  ;;  %2717 = vlog2.f32 %v2030_v3  ;;  %v2313_v3 = vld [vmem:[%s3555_s3 + $0x190] sm:$0x1] }
 0xadf   :  { %v2712_v11 = vpop.eup %2711  ;;  %v2129_v43 = vpop.f32.mrf.mxu1 }
 0xae0   :  { %v2150_v53 = vmul.f32 %v2712_v11, %v2133_v29  ;;  %vm2155_vm13 = vweird.f32 %v2712_v11 }
 0xae1   :  { %vm2156_vm15 = vmor %vm2154_vm12, %vm2155_vm13 }
 0xae2   :  { %v2714_v14 = vpop.eup %2713  ;;  %v2151_v21 = vsub.f32 1.0, %v2150_v53  ;;  %v2103_v52 = vpop.f32.mrf.mxu0  ;;  %v2314_v53 = vld [vmem:[%s3555_s3 + $0x198] sm:$0x1] }
 0xae3   :  { %v2135_v47 = vmul.f32 %v2714_v14, %v2132_v9  ;;  %vm2140_vm1 = vweird.f32 %v2714_v14  ;;  %v2716_v62 = vpop.eup %2715 }
 0xae4   :  { %v2152_v27 = vmul.f32 %v2712_v11, %v2151_v21  ;;  %vm2141_vm4 = vmor %vm2139_vm3, %vm2140_vm1  ;;  %v1059_v48 = vmul.f32 0.6931472, %v2716_v62  ;;  %v2718_v0 = vpop.eup %2717  ;;  %v1012_v21 = vsub.f32 %v2735_v57, %v3234_v36 }
 0xae5   :  { %v2136_v59 = vsub.f32 1.0, %v2135_v47  ;;  %v2036_v29 = vmul.f32 0.6931472, %v2718_v0  ;;  %v1030_v0 = vpop.xlane.xlu0 %1029 }
 0xae6   :  { %v2153_v56 = vadd.f32 %v2712_v11, %v2152_v27  ;;  %v1064_v31 = vmul.f32 %v1059_v48, %v1048_v54  ;;  %v1016_v27 = vmul.f32 %v1012_v21, %v1012_v21 }
 0xae7   :  { %v2137_v32 = vmul.f32 %v2714_v14, %v2136_v59  ;;  %v2216_v28 = vpop.f32.mrf.mxu1  ;;  %v2042_v9 = vmul.f32 %v2036_v29, %v2026_v22 }
 0xae8   :  { %v2157_v38 = vsel %vm2156_vm15, %v2712_v11, %v2153_v56  ;;  %v1072_v5 = vsel %vm27_vm0, %v1064_v31, 0.0  ;;  %v1022_v59 = vsel %vm27_vm0, %v1016_v27, 0.0  ;;  %v1990_v56 = vsub.f32 %v3172_v15, %v3414_v34 }
 0xae9   :  { %v2162_v25 = vsel %vm2159_vm2, %v2161_v30, %v2157_v38  ;;  %v2138_v45 = vadd.f32 %v2714_v14, %v2137_v32  ;;  %v2048_v11 = vsel %vm1363_vm14, %v2042_v9, 0.0  ;;  %v1013_v30 = vsub.f32 %v2736_v18, %v3236_v42  ;;  %v2375_v18 = vld [vmem:[%s3555_s3 + $0x1a0] sm:$0xf] }
 0xaea   :  { %v2163_v35 = vmul.f32 %v2162_v25, %v2129_v43  ;;  %v2194_v44 = vpop.f32.mrf.mxu0  ;;  %v1994_v36 = vmul.f32 %v1990_v56, %v1990_v56  ;;  %2582 = vmatpush.msk.msra.mxu3 %vm2082_vm9, %v2375_v18  ;;  %2580 = vmatpush.msk.msra.mxu2 %vm2082_vm9, %v2375_v18 }
 0xaeb   :  { %v2142_v61 = vsel %vm2141_vm4, %v2714_v14, %v2138_v45  ;;  %v1015_v14 = vmul.f32 %v1011_v4, %v1011_v4  ;;  %v1017_v13 = vmul.f32 %v1013_v30, %v1013_v30 }
 0xaec   :  { %v2147_v8 = vsel %vm2144_vm5, %v2146_v51, %v2142_v61  ;;  %2575 = vmatmul.msk.f32.vlgmr.msrb.gmra.mxu3 %vm178_vm10, %v2163_v35  ;;  %v1998_v32 = vsel %vm27_vm0, %v1994_v36, 0.0  ;;  %vm2441_vm5 = vcmask 24576  }
 0xaed   :  { %v2148_v26 = vmul.f32 %v2147_v8, %v2103_v52  ;;  %v1019_v47 = vsel %vm27_vm0, %v1015_v14, 0.0  ;;  %v1025_v33 = vsel %vm27_vm0, %v1017_v13, 0.0 }
 0xaef   :  { %2574 = vmatmul.msk.f32.vlgmr.msrb.gmra.mxu2 %vm178_vm10, %v2148_v26 }
 0xb6f   :  { %v2262_v39 = vpop.f32.mrf.mxu3 }
 0xb70   :  { %v2263_v63 = vadd.f32 %v2262_v39, %v2216_v28 }
 0xb72   :  { %v3456_v2 = vadd.f32 %v2614_v17, %v2263_v63  ;;  %v2239_v12 = vpop.f32.mrf.mxu2 }
 0xb73   :  { %v2240_v60 = vadd.f32 %v2239_v12, %v2194_v44 }
 0xb74   :  { %v2269_v20 = vmul.f32 %v3456_v2, %v3456_v2 }
 0xb75   :  { %v3460_v10 = vadd.f32 %v2614_v17, %v2240_v60 }
 0xb76   :  { %v2274_v19 = vsel %vm2270_vm6, %v2269_v20, 0.0 }
 0xb77   :  { %2275 = vadd.xlane.f32.xlu2 %v2274_v19  ;;  %v2268_v49 = vmul.f32 %v3460_v10, %v3460_v10 }
 0xb79   :  { %v2271_v41 = vsel %vm2270_vm6, %v2268_v49, 0.0 }
 0xb7a   :  { %2272 = vadd.xlane.f32.xlu1 %v2271_v41 }
 0xb7f   :  { %2008 = vadd.xlane.f32.xlu2 %v2007_v55 }
 0xb87   :  { %1073 = vadd.xlane.f32.xlu2 %v1072_v5 }
 0xb8f   :  { %2049 = vadd.xlane.f32.xlu2 %v2048_v11 }
 0xb93   :  { %2317 = vperm.xlu1 %2588, %v2314_v53  }
 0xbbd   :  { %1020 = vadd.xlane.f32.xlu1 %v1019_v47 }
 0xbc5   :  { %1023 = vadd.xlane.f32.xlu1 %v1022_v59 }
 0xbcd   :  { %1026 = vadd.xlane.f32.xlu1 %v1025_v33 }
 0xbd5   :  { %1999 = vadd.xlane.f32.xlu1 %v1998_v32 }
 0xbea   :  { %v2276_v7 = vpop.xlane.xlu2 %2275 }
 0xbeb   :  { %v2278_v38 = vmax.f32 %v2276_v7, 1e-24 }
 0xbed   :  { %2719 = vrsqrt.f32 %v2278_v38  ;;  %v2273_v43 = vpop.xlane.xlu1 %2272  ;;  %vm2295_vm8 = vweird.f32 %v2278_v38 }
 0xbee   :  { %v2277_v25 = vmax.f32 %v2273_v43, 1e-24 }
 0xbf0   :  { %2721 = vrsqrt.f32 %v2277_v25  ;;  %vm2285_vm13 = vweird.f32 %v2277_v25 }
 0xbf3   :  { %v2720_v42 = vpop.eup %2719 }
 0xbf4   :  { %v2290_v45 = vmul.f32 %v2720_v42, %v2278_v38  ;;  %vm2296_vm7 = vweird.f32 %v2720_v42  ;;  %v2376_v38 = vld [vmem:[%s3555_s3 + $0x1a8] sm:$0x1] }
 0xbf5   :  { %vm2297_vm11 = vmor %vm2295_vm8, %vm2296_vm7 }
 0xbf6   :  { %v2722_v35 = vpop.eup %2721  ;;  %v2291_v51 = vmul.f32 %v2720_v42, %v2290_v45 }
 0xbf7   :  { %v2280_v61 = vmul.f32 %v2722_v35, %v2277_v25  ;;  %vm2286_vm12 = vweird.f32 %v2722_v35 }
 0xbf8   :  { %v2292_v52 = vmul.f32 0.5, %v2291_v51  ;;  %vm2287_vm15 = vmor %vm2285_vm13, %vm2286_vm12 }
 0xbf9   :  { %v2281_v15 = vmul.f32 %v2722_v35, %v2280_v61  ;;  %v2429_v61 = vld [vmem:[%s3555_s3 + $0x1b8] sm:$0x1] }
 0xbfa   :  { %v2293_v34 = vsub.f32 1.5, %v2292_v52 }
 0xbfb   :  { %v2282_v8 = vmul.f32 0.5, %v2281_v15 }
 0xbfc   :  { %v2294_v26 = vmul.f32 %v2720_v42, %v2293_v34 }
 0xbfd   :  { %v2283_v17 = vsub.f32 1.5, %v2282_v8 }
 0xbfe   :  { %v2298_v28 = vsel %vm2297_vm11, %v2720_v42, %v2294_v26  ;;  %v2426_v42 = vld [vmem:[%s3555_s3 + $0x1b0] sm:$0x1] }
 0xbff   :  { %v2300_v39 = vmul.f32 %v2298_v28, %v3456_v2  ;;  %v2284_v63 = vmul.f32 %v2722_v35, %v2283_v17 }
 0xc01   :  { %v2303_v44 = vmul.f32 %v2615_v50, %v2300_v39  ;;  %v2288_v12 = vsel %vm2287_vm15, %v2722_v35, %v2284_v63 }
 0xc02   :  { %v2299_v60 = vmul.f32 %v2288_v12, %v3460_v10  ;;  %v1992_v12 = vsub.f32 %v3184_v1, %v3450_v46 }
 0xc03   :  { %v2306_v20 = vadd.f32 %v2616_v58, %v2303_v44 }
 0xc04   :  { %v2302_v23 = vmul.f32 %v2615_v50, %v2299_v60  ;;  %v2438_v50 = vld [vmem:[%s3555_s3 + $0x1c0] sm:$0x1] }
 0xc05   :  { %vm2308_vm1 = vcmp.ge.f32.partialorder %v2306_v20, 0.0  ;;  %v2310_v19 = vmul.f32 0.01, %v2306_v20  ;;  %v2318_v10 = vpop.permute.xlu1 %2317 }
 0xc06   :  { %v2305_v49 = vadd.f32 %v2616_v58, %v2302_v23  ;;  %v1051_v58 = vadd.f32 1e-15, %v3091_v24  ;;  %v1996_v23 = vmul.f32 %v1992_v12, %v1992_v12 }
 0xc07   :  { %v2312_v41 = vsel %vm2308_vm1, %v2306_v20, %v2310_v19  ;;  %v2029_v20 = vadd.f32 1e-15, %v3360_v37 }
 0xc08   :  { %2578 = vmatpush.xpose.msk.msrb.mxu1 %vm178_vm10, %v2312_v41  ;;  %vm2307_vm2 = vcmp.ge.f32.partialorder %v2305_v49, 0.0  ;;  %v2309_v2 = vmul.f32 0.01, %v2305_v49  ;;  %2723 = vlog2.f32 %v1051_v58 }
 0xc09   :  { %2725 = vlog2.f32 %v2029_v20 }
 0xc0a   :  { %v2311_v40 = vsel %vm2307_vm2, %v2305_v49, %v2309_v2  ;;  %v2004_v49 = vsel %vm27_vm0, %v1996_v23, 0.0  ;;  %v1047_v2 = vsub.f32 0.0, %v3091_v24 }
 0xc0b   :  { %2576 = vmatpush.xpose.msk.msrb.mxu0 %vm178_vm10, %v2311_v40  ;;  %2579 = vmatmul.msk.f32.vlgmr.msrb.gmra.mxu1 %vm178_vm10, %v2313_v3 }
 0xc0e   :  { %2577 = vmatmul.msk.f32.vlgmr.msrb.gmra.mxu0 %vm178_vm10, %v2313_v3  ;;  %v2724_v19 = vpop.eup %2723  ;;  %v2032_v3 = vadd.f32 1e-15, %v3377_v16 }
 0xc0f   :  { %v1057_v41 = vmul.f32 0.6931472, %v2724_v19 }
 0xc10   :  { %2727 = vlog2.f32 %v2032_v3 }
 0xc11   :  { %v1063_v40 = vmul.f32 %v1057_v41, %v1047_v2 }
 0xc13   :  { %v1069_v1 = vsel %vm27_vm0, %v1063_v40, 0.0 }
 0xc30   :  { %v1021_v62 = vpop.xlane.xlu1 %1020 }
 0xc38   :  { %v1024_v55 = vpop.xlane.xlu1 %1023 }
 0xc39   :  { %v1031_v48 = vadd.f32 %v1024_v55, %v1021_v62  ;;  %v2025_v62 = vsub.f32 0.0, %v3360_v37 }
 0xc3b   :  { %v1032_v54 = vrot.slane %v1031_v48, 4 }
 0xc3d   :  { %v1033_v31 = vadd.f32 %v1032_v54, %v1031_v48 }
 0xc3f   :  { %v1034_v29 = vrot.slane %v1033_v31, 2 }
 0xc40   :  { %v1027_v5 = vpop.xlane.xlu1 %1026 }
 0xc41   :  { %v1038_v22 = vadd.f32 %v1030_v0, %v1027_v5  ;;  %v1035_v11 = vadd.f32 %v1034_v29, %v1033_v31  ;;  %v2028_v0 = vsub.f32 0.0, %v3377_v16 }
 0xc43   :  { %v1039_v9 = vrot.slane %v1038_v22, 4  ;;  %v1036_v4 = vrot.slane %v1035_v11, 1 }
 0xc45   :  { %v1040_v53 = vadd.f32 %v1039_v9, %v1038_v22  ;;  %v1037_v21 = vadd.f32 %v1036_v4, %v1035_v11  ;;  %v2448_v22 = vld [vmem:[%s3555_s3 + $0x1c8] sm:$0x1]  ;;  %v2009_v4 = vpop.xlane.xlu2 %2008 }
 0xc47   :  { %v1041_v6 = vrot.slane %v1040_v53, 2 }
 0xc48   :  { %v2000_v29 = vpop.xlane.xlu1 %1999 }
 0xc49   :  { %v1042_v14 = vadd.f32 %v1041_v6, %v1040_v53 }
 0xc4b   :  { %v1043_v57 = vrot.slane %v1042_v14, 1 }
 0xc4d   :  { %v1044_v47 = vadd.f32 %v1043_v57, %v1042_v14  ;;  %v2003_v57 = vpop.xlane.xlu0 %2002 }
 0xc4e   :  { %v2010_v16 = vadd.f32 %v2003_v57, %v2000_v29 }
 0xc4f   :  { %v3507_v27 = vadd.f32 %v1044_v47, %v1037_v21 }
 0xc50   :  { %v2011_v47 = vrot.slane %v2010_v16, 4 }
 0xc51   :  { %vm2460_vm7 = vcmp.eq.f32.partialorder %v3507_v27, 0.0 }
 0xc88   :  { %v2366_v30 = vpop.f32.mrf.mxu1 }
 0xc89   :  { %v2367_v59 = vadd.f32 %v2366_v30, %v2318_v10  ;;  %v2012_v30 = vadd.f32 %v2011_v47, %v2010_v16 }
 0xc8b   :  { %vm2370_vm10 = vcmp.ge.f32.partialorder %v2367_v59, 0.0  ;;  %v2372_v13 = vmul.f32 0.01, %v2367_v59  ;;  %v2343_v56 = vpop.f32.mrf.mxu0 }
 0xc8c   :  { %v2344_v33 = vadd.f32 %v2343_v56, %v2318_v10  ;;  %v2726_v10 = vpop.eup %2725 }
 0xc8d   :  { %v2374_v36 = vsel %vm2370_vm10, %v2367_v59, %v2372_v13  ;;  %v2034_v46 = vmul.f32 0.6931472, %v2726_v10  ;;  %v2728_v48 = vpop.eup %2727  ;;  %v2013_v13 = vrot.slane %v2012_v30, 2 }
 0xc8e   :  { %vm2369_vm3 = vcmp.ge.f32.partialorder %v2344_v33, 0.0  ;;  %v2371_v32 = vmul.f32 0.01, %v2344_v33  ;;  %2583 = vmatmul.msk.f32.vlgmr.msra.gmra.mxu3 %vm1363_vm14, %v2374_v36  ;;  %v2040_v31 = vmul.f32 0.6931472, %v2728_v48 }
 0xc8f   :  { %v2041_v55 = vmul.f32 %v2034_v46, %v2025_v62 }
 0xc90   :  { %v2373_v7 = vsel %vm2369_vm3, %v2344_v33, %v2371_v32  ;;  %v2044_v24 = vmul.f32 %v2040_v31, %v2028_v0  ;;  %v2014_v33 = vadd.f32 %v2013_v13, %v2012_v30  ;;  %v1068_v32 = vpop.xlane.xlu0 %1067  ;;  %v2461_v30 = vand.u32 2147483648, %v3507_v27 }
 0xc91   :  { %2581 = vmatmul.msk.f32.vlgmr.msra.gmra.mxu2 %vm1363_vm14, %v2373_v7  ;;  %v2045_v54 = vsel %vm1363_vm14, %v2041_v55, 0.0 }
 0xc92   :  { %v2054_v5 = vsel %vm1363_vm14, %v2044_v24, 0.0  ;;  %vm2458_vm14 = vcmp.eq.f32.partialorder %v3507_v27, inf }
 0xd11   :  { %v2423_v43 = vpop.f32.mrf.mxu3 }
 0xd12   :  { %v2424_v25 = vadd.f32 %v2423_v43, %v2376_v38 }
 0xd14   :  { %v2400_v45 = vpop.f32.mrf.mxu2  ;;  %v2428_v35 = vmul.f32 %v2426_v42, %v2424_v25 }
 0xd15   :  { %v2401_v51 = vadd.f32 %v2400_v45, %v2376_v38  ;;  %v2015_v38 = vrot.slane %v2014_v33, 1 }
 0xd16   :  { %v2431_v15 = vadd.f32 %v2429_v61, %v2428_v35  ;;  %v1077_v35 = vpop.xlane.xlu0 %1076 }
 0xd17   :  { %v2427_v52 = vmul.f32 %v2426_v42, %v2401_v51  ;;  %v2016_v25 = vadd.f32 %v2015_v38, %v2014_v33  ;;  %v1074_v51 = vpop.xlane.xlu2 %1073 }
 0xd18   :  { %v2435_v17 = vmul.f32 0.01, %v2431_v15  ;;  %vm2433_vm4 = vcmp.ge.f32.partialorder %v2431_v15, 0.0 }
 0xd19   :  { %v2430_v34 = vadd.f32 %v2429_v61, %v2427_v52 }
 0xd1a   :  { %v2437_v63 = vsel %vm2433_vm4, %v2431_v15, %v2435_v17 }
 0xd1b   :  { %vm2432_vm9 = vcmp.ge.f32.partialorder %v2430_v34, 0.0  ;;  %v2434_v8 = vmul.f32 0.01, %v2430_v34  ;;  %v2440_v44 = vmul.f32 %v2438_v50, %v2437_v63  ;;  %v1085_v63 = vadd.f32 %v1077_v35, %v1074_v51 }
 0xd1d   :  { %v2436_v26 = vsel %vm2432_vm9, %v2430_v34, %v2434_v8  ;;  %v2445_v60 = vsel %vm2441_vm5, %v2440_v44, 0.0  ;;  %v1086_v23 = vrot.slane %v1085_v63, 4 }
 0xd1e   :  { %v2439_v28 = vmul.f32 %v2438_v50, %v2436_v26  ;;  %v2053_v34 = vpop.xlane.xlu0 %2052 }
 0xd1f   :  { %v2050_v50 = vpop.xlane.xlu2 %2049  ;;  %v1087_v40 = vadd.f32 %v1086_v23, %v1085_v63 }
 0xd20   :  { %v2442_v39 = vsel %vm2441_vm5, %v2439_v28, 0.0 }
 0xd21   :  { %2443 = vadd.xlane.f32.xlu1 %v2442_v39  ;;  %v1088_v48 = vrot.slane %v1087_v40, 2 }
 0xd23   :  { %v1089_v29 = vadd.f32 %v1088_v48, %v1087_v40 }
 0xd29   :  { %2446 = vadd.xlane.f32.xlu1 %v2445_v60 }
 0xd31   :  { %2005 = vadd.xlane.f32.xlu1 %v2004_v49 }
 0xd39   :  { %1070 = vadd.xlane.f32.xlu1 %v1069_v1 }
 0xd41   :  { %2046 = vadd.xlane.f32.xlu1 %v2045_v54 }
 0xd49   :  { %2055 = vadd.xlane.f32.xlu1 %v2054_v5 }
 0xd94   :  { %v2444_v9 = vpop.xlane.xlu1 %2443 }
 0xd95   :  { %v2449_v11 = vadd.f32 %v2448_v22, %v2444_v9 }
 0xd97   :  { %2486 = vperm.xlu2 %2586, %v2449_v11  }
 0xd9c   :  { %v2447_v37 = vpop.xlane.xlu1 %2446 }
 0xd9d   :  { %v2450_v53 = vadd.f32 %v2448_v22, %v2447_v37 }
 0xd9f   :  { %2493 = vperm.xlu0 %2587, %v2450_v53  }
 0xda4   :  { %v2006_v6 = vpop.xlane.xlu1 %2005 }
 0xda5   :  { %v2017_v14 = vadd.f32 %v2009_v4, %v2006_v6  ;;  %v1090_v6 = vrot.slane %v1089_v29, 1 }
 0xda7   :  { %v2018_v21 = vrot.slane %v2017_v14, 4  ;;  %v1091_v13 = vadd.f32 %v1090_v6, %v1089_v29 }
 0xda9   :  { %v2019_v18 = vadd.f32 %v2018_v21, %v2017_v14 }
 0xdab   :  { %v2020_v59 = vrot.slane %v2019_v18, 2 }
 0xdac   :  { %v1071_v36 = vpop.xlane.xlu1 %1070 }
 0xdad   :  { %v2021_v56 = vadd.f32 %v2020_v59, %v2019_v18  ;;  %v1078_v17 = vadd.f32 %v1071_v36, %v1068_v32  ;;  %v2481_v18 = vlaneseq }
 0xdaf   :  { %v2022_v7 = vrot.slane %v2021_v56, 1  ;;  %v1079_v12 = vrot.slane %v1078_v17, 4 }
 0xdb1   :  { %v2023_v43 = vadd.f32 %v2022_v7, %v2021_v56  ;;  %v1080_v41 = vadd.f32 %v1079_v12, %v1078_v17  ;;  %v2482_v7 = vand.u32 127, %v2481_v18 }
 0xdb3   :  { %v2024_v42 = vadd.f32 %v2023_v43, %v2016_v25  ;;  %v1081_v46 = vrot.slane %v1080_v41, 2  ;;  %vm2483_vm8 = vcmp.eq.s32.totalorder %v2482_v7, 0  ;;  %vm2490_vm11 = vcmp.eq.s32.totalorder %v2482_v7, 1 }
 0xdb4   :  { %v2047_v45 = vpop.xlane.xlu1 %2046  ;;  %vm2498_vm12 = vcmp.eq.s32.totalorder %v2482_v7, 2  ;;  %vm2501_vm13 = vcmp.eq.s32.totalorder %v2482_v7, 3 }
 0xdb5   :  { %2729 = vrsqrt.f32 %v2024_v42  ;;  %v2057_v28 = vadd.f32 %v2050_v50, %v2047_v45  ;;  %v1082_v0 = vadd.f32 %v1081_v46, %v1080_v41  ;;  %vm2471_vm0 = vcmp.eq.f32.partialorder %v2024_v42, inf }
 0xdb6   :  { %2731 = vrsqrt.f32 %v3507_v27  ;;  %v2474_v57 = vand.u32 2147483648, %v2024_v42  ;;  %vm2473_vm6 = vcmp.eq.f32.partialorder %v2024_v42, 0.0 }
 0xdb7   :  { %v2058_v60 = vrot.slane %v2057_v28, 4  ;;  %v1083_v11 = vrot.slane %v1082_v0, 1 }
 0xdb9   :  { %v2059_v2 = vadd.f32 %v2058_v60, %v2057_v28  ;;  %v1084_v16 = vadd.f32 %v1083_v11, %v1082_v0 }
 0xdbb   :  { %v2730_v61 = vpop.eup %2729  ;;  %v2060_v62 = vrot.slane %v2059_v2, 2  ;;  %v1092_v36 = vadd.f32 %v1091_v13, %v1084_v16 }
 0xdbc   :  { %v2056_v52 = vpop.xlane.xlu1 %2055  ;;  %v2732_v15 = vpop.eup %2731  ;;  %v2465_v26 = vmul.f32 %v2730_v61, %v2024_v42 }
 0xdbd   :  { %v2064_v8 = vadd.f32 %v2056_v52, %v2053_v34  ;;  %v2452_v39 = vmul.f32 %v2732_v15, %v3507_v27  ;;  %v2061_v24 = vadd.f32 %v2060_v62, %v2059_v2  ;;  %v2478_v45 = vmul.f32 0.03125, %v1092_v36 }
 0xdbe   :  { %v2466_v44 = vmul.f32 %v2730_v61, %v2465_v26 }
 0xdbf   :  { %v2065_v58 = vrot.slane %v2064_v8, 4  ;;  %v2453_v20 = vmul.f32 %v2732_v15, %v2452_v39  ;;  %v2062_v37 = vrot.slane %v2061_v24, 1 }
 0xdc0   :  { %v2467_v49 = vmul.f32 0.5, %v2466_v44 }
 0xdc1   :  { %v2066_v19 = vadd.f32 %v2065_v58, %v2064_v8  ;;  %v2454_v3 = vmul.f32 0.5, %v2453_v20  ;;  %v2063_v21 = vadd.f32 %v2062_v37, %v2061_v24 }
 0xdc2   :  { %v2468_v1 = vsub.f32 1.5, %v2467_v49 }
 0xdc3   :  { %v2067_v10 = vrot.slane %v2066_v19, 2  ;;  %v2455_v55 = vsub.f32 1.5, %v2454_v3 }
 0xdc4   :  { %v2469_v31 = vmul.f32 %v2730_v61, %v2468_v1 }
 0xdc5   :  { %v2068_v54 = vadd.f32 %v2067_v10, %v2066_v19  ;;  %v2456_v5 = vmul.f32 %v2732_v15, %v2455_v55 }
 0xdc6   :  { %v2470_v9 = vmul.f32 %v2469_v31, %v2024_v42 }
 0xdc7   :  { %v2069_v22 = vrot.slane %v2068_v54, 1  ;;  %v2457_v53 = vmul.f32 %v2456_v5, %v3507_v27 }
 0xdc8   :  { %v2472_v14 = vsel %vm2471_vm0, %v2024_v42, %v2470_v9 }
 0xdc9   :  { %v2070_v4 = vadd.f32 %v2069_v22, %v2068_v54  ;;  %v2459_v47 = vsel %vm2458_vm14, %v3507_v27, %v2457_v53  ;;  %v2475_v59 = vsel %vm2473_vm6, %v2474_v57, %v2472_v14 }
 0xdca   :  { %v2462_v33 = vsel %vm2460_vm7, %v2461_v30, %v2459_v47  ;;  %v2476_v32 = vmul.f32 0.001953125, %v2475_v59 }
 0xdcb   :  { %v2071_v56 = vadd.f32 %v2070_v4, %v2063_v21  ;;  %v2463_v43 = vmul.f32 0.001953125, %v2462_v33 }
 0xdcd   :  { %v2479_v38 = vmul.f32 0.03125, %v2071_v56  ;;  %v2477_v35 = vadd.f32 %v2476_v32, %v2463_v43 }
 0xdcf   :  { %v2480_v61 = vadd.f32 %v2479_v38, %v2478_v45  ;;  %v2499_v34 = vsel %vm2498_vm12, %v2477_v35, 0.0 }
 0xdd1   :  { %v2502_v8 = vsel %vm2501_vm13, %v2480_v61, 0.0 }
 0xdf1   :  { %v2487_v25 = vpop.permute.xlu2 %2486 }
 0xdf2   :  { %v2489_v51 = vsel %vm2483_vm8, %v2487_v25, 0.0 }
 0xe11   :  { %v2494_v42 = vpop.permute.xlu0 %2493 }
 0xe12   :  { %v2496_v52 = vsel %vm2490_vm11, %v2494_v42, 0.0 }
 0xe13   :  { %v2497_v15 = vadd.f32 %v2496_v52, %v2489_v51 }
 0xe15   :  { %v2500_v27 = vadd.f32 %v2499_v34, %v2497_v15 }
 0xe17   :  { %v2503_v26 = vadd.f32 %v2502_v8, %v2500_v27 }
 0xe19   :  { %v2504_v50 = vperm.slane %v2503_v26, 0 }
 0xe1b   :  { %2505 = vst [vmem:[%s3557_s4] sm:$0xff] %v2504_v50 }

</bundles_post_ra>
